<compile_context>
chip_gen: v6e
topology: v6e:2x2x1
jax: 0.10.0
libtpu: 0.0.40
codegen_flags: <defaults>
</compile_context>

<pallas_src>
import numpy as np
import jax
import jax.numpy as jnp
from jax.experimental import pallas as pl
from jax.experimental.pallas import tpu as pltpu


# ----------------------------------------------------------------------------
# Fused kernel: one grid step == one full branch (convs + BN + residual + lin).
# ----------------------------------------------------------------------------
def residual_branch_kernel(x_ref, bigw_ref, gamma_ref, beta_ref,
                           linw_ref, linb_ref, s_ref, st_ref,
                           o_ref, pad_ref):
    B, H, WC = x_ref.shape          # (B, H, W*C) lane-dense activations
    eps = 1e-5

    # Zero only the height-halo rows (padding=1 along H); interior rows are
    # rewritten before every conv.  Width padding is folded into the banded
    # weights host-side (out-of-range columns dropped).
    pad_ref[:, 0:1, :] = jnp.zeros((B, 1, WC), jnp.float32)
    pad_ref[:, H + 1:H + 2, :] = jnp.zeros((B, 1, WC), jnp.float32)

    s_mat = s_ref[...]      # (W*C, C)  per-channel gather, pre-scaled by 1/NHW
    st_mat = st_ref[...]    # (C, W*C)  per-channel lane broadcast

    def set_interior(h2d):
        pad_ref[:, 1:H + 1, :] = h2d.reshape(B, H, WC)

    def conv(idx):
        # 3x3 conv as ONE MXU matmul: lane-concat the three ky-shifted halo
        # views -> (B*H, 3*W*C) bf16, against bigw[idx] of shape (3*W*C, W*C).
        lhs = jnp.concatenate(
            [pad_ref[:, ky:ky + H, :].reshape(B * H, WC) for ky in range(3)],
            axis=1).astype(jnp.bfloat16)
        return jnp.dot(lhs, bigw_ref[idx], preferred_element_type=jnp.float32)

    def bn(y, idx):
        # Training-mode BatchNorm2d folded into one per-channel scale/shift.
        # One matmul gathers both moments, one matmul broadcasts scale+shift.
        rs = jnp.sum(y, axis=0, keepdims=True)          # (1, W*C)
        rss = jnp.sum(y * y, axis=0, keepdims=True)     # (1, W*C)
        stats = jnp.dot(jnp.concatenate([rs, rss], axis=0), s_mat,
                        preferred_element_type=jnp.float32)       # (2, C)
        mean = stats[0:1, :]
        var = stats[1:2, :] - mean * mean               # biased variance
        scale = gamma_ref[idx:idx + 1, :] * jax.lax.rsqrt(var + eps)   # (1, C)
        shift = beta_ref[idx:idx + 1, :] - mean * scale                # (1, C)
        lane = jnp.dot(jnp.concatenate([scale, shift], axis=0), st_mat,
                       preferred_element_type=jnp.float32)        # (2, W*C)
        return y * lane[0:1, :] + lane[1:2, :]

    x2d = x_ref[...].reshape(B * H, WC)
    set_interior(x2d)
    h = jnp.maximum(bn(conv(0), 0), 0.0)
    set_interior(h)
    h = jnp.maximum(bn(conv(1), 1), 0.0)
    set_interior(h)
    h = bn(conv(2), 2)
    out = jnp.maximum(x2d + h, 0.0)                     # residual + ReLU

    # Fused flatten + Linear as ONE matmul: lane-concat the H rows of each
    # batch element -> (B, H*W*C) bf16 and hit the pre-permuted (H*W*C, HID)
    # weight (torch.flatten NCHW order baked in).  Single full-tile store.
    out3 = out.reshape(B, H, WC)
    lin_lhs = jnp.concatenate([out3[:, hh, :] for hh in range(H)],
                              axis=1).astype(jnp.bfloat16)        # (B, H*W*C)
    o_ref[...] = jnp.dot(lin_lhs, linw_ref[...],
                         preferred_element_type=jnp.float32) + linb_ref[...]


# ----------------------------------------------------------------------------
# Wrapper: layout glue + pallas_call plumbing.
# ----------------------------------------------------------------------------
def residual_block_forward_fn(x1, x2, params):
    bigw, gamma, beta, linw, linb, s_mat, st_mat = params
    B, C, H, W = x1.shape
    WC = W * C
    HID = linw.shape[-1]

    def to_lane_dense(x):                               # NCHW -> (B, H, W*C)
        return jnp.transpose(x, (0, 2, 3, 1)).reshape(B, H, WC)

    xs = jnp.stack([to_lane_dense(x1), to_lane_dense(x2)])   # (2, B, H, W*C)

    y = pl.pallas_call(
        residual_branch_kernel,
        out_shape=jax.ShapeDtypeStruct((2, B, HID), jnp.float32),
        grid=(2,),
        in_specs=[
            pl.BlockSpec((None, B, H, WC), lambda i: (i, 0, 0, 0)),
            pl.BlockSpec((None, 3, 3 * WC, WC), lambda i: (i, 0, 0, 0)),
            pl.BlockSpec((None, 3, C), lambda i: (i, 0, 0)),
            pl.BlockSpec((None, 3, C), lambda i: (i, 0, 0)),
            pl.BlockSpec((None, H * WC, HID), lambda i: (i, 0, 0)),
            pl.BlockSpec((None, 1, HID), lambda i: (i, 0, 0)),
            pl.BlockSpec((WC, C), lambda i: (0, 0)),
            pl.BlockSpec((C, WC), lambda i: (0, 0)),
        ],
        out_specs=pl.BlockSpec((None, B, HID), lambda i: (i, 0, 0)),
        scratch_shapes=[pltpu.VMEM((B, H + 2, WC), jnp.float32)],
        compiler_params=pltpu.CompilerParams(
            dimension_semantics=("parallel",)),
    )(xs, bigw, gamma, beta, linw, linb, s_mat, st_mat)
    return y[0], y[1]


residual_block_forward = jax.jit(residual_block_forward_fn)


# ----------------------------------------------------------------------------
# Deterministic PyTorch-like parameters + host-side weight preprocessing.
# ----------------------------------------------------------------------------
def branch_params(key, C, H, W, hidden):
    kk = jax.random.split(key, 14)
    convs = [0.1 * jax.random.normal(kk[i], (C, C, 3, 3), jnp.float32) for i in range(3)]
    cbias = [0.1 * jax.random.normal(kk[3 + i], (C,), jnp.float32) for i in range(3)]
    gammas = [1.0 + 0.1 * jax.random.normal(kk[6 + i], (C,), jnp.float32) for i in range(3)]
    betas = [0.1 * jax.random.normal(kk[9 + i], (C,), jnp.float32) for i in range(3)]
    lw = 0.02 * jax.random.normal(kk[12], (hidden, C * H * W), jnp.float32)
    lb = 0.1 * jax.random.normal(kk[13], (hidden,), jnp.float32)
    return dict(convs=convs, cbias=cbias, gammas=gammas, betas=betas, lw=lw, lb=lb)


def _banded_conv_weights(bp, C, W):
    # bigw[l, ky, col*C + ci, x*C + co] = conv_l.weight[co, ci, ky, kx]
    # with col = x + kx - 1; out-of-range columns are dropped (width padding).
    # TODO(synk): bigw is ~90% structural zeros (block tridiagonal); a
    # pltpu.roll-based formulation would cut the v5e weight DMA ~3x.
    bigw = np.zeros((3, 3, W * C, W * C), np.float32)
    for layer, w in enumerate(bp["convs"]):
        w = np.asarray(w)                         # (Cout, Cin, 3, 3)
        for ky in range(3):
            for kx in range(3):
                tap = w[:, :, ky, kx].T           # (Cin, Cout)
                for x in range(W):
                    col = x + kx - 1
                    if 0 <= col < W:
                        bigw[layer, ky, col * C:(col + 1) * C, x * C:(x + 1) * C] = tap
    return bigw


def _permuted_linear_weight(bp, C, H, W, hidden):
    # linw[y, x*C + c, j] = lw[j, c*H*W + y*W + x]  (torch.flatten NCHW order)
    lw = np.asarray(bp["lw"]).reshape(hidden, C, H, W)
    return np.transpose(lw, (2, 3, 1, 0)).reshape(H, W * C, hidden)


def prepare_params(bp1, bp2, B, C, H, W, hidden):
    def per_branch(bp):
        # NOTE: conv bias is intentionally dropped -- it is exactly cancelled
        # by the training-mode BatchNorm mean subtraction.
        bigw = _banded_conv_weights(bp, C, W).reshape(3, 3 * W * C, W * C)
        gamma = np.stack([np.asarray(g) for g in bp["gammas"]])   # (3, C)
        beta = np.stack([np.asarray(b) for b in bp["betas"]])     # (3, C)
        linw = _permuted_linear_weight(bp, C, H, W, hidden)       # (H, W*C, hid)
        linw = linw.reshape(H * W * C, hidden)                    # (H*W*C, hid)
        linb = np.asarray(bp["lb"])[None, :]                      # (1, hid)
        return bigw, gamma, beta, linw, linb

    p1, p2 = per_branch(bp1), per_branch(bp2)
    bigw = jnp.asarray(np.stack([p1[0], p2[0]]), jnp.bfloat16)
    gamma = jnp.asarray(np.stack([p1[1], p2[1]]), jnp.float32)
    beta = jnp.asarray(np.stack([p1[2], p2[2]]), jnp.float32)
    linw = jnp.asarray(np.stack([p1[3], p2[3]]), jnp.bfloat16)
    linb = jnp.asarray(np.stack([p1[4], p2[4]]), jnp.float32)
    s_np = np.tile(np.eye(C, dtype=np.float32), (W, 1))           # (W*C, C)
    s_mat = jnp.asarray(s_np / float(B * H * W))                  # fold 1/NHW
    st_mat = jnp.asarray(s_np.T)                                  # (C, W*C)
    return bigw, gamma, beta, linw, linb, s_mat, st_mat


# ----------------------------------------------------------------------------
# Pure-JAX f32 reference (matches the PyTorch module, BN in training mode).
# ----------------------------------------------------------------------------
def reference_forward(x1, x2, bp1, bp2):
    hp = jax.lax.Precision.HIGHEST

    def conv(x, w, b):
        y = jax.lax.conv_general_dilated(x, w, (1, 1), ((1, 1), (1, 1)),
                                         dimension_numbers=("NCHW", "OIHW", "NCHW"),
                                         precision=hp)
        return y + b[None, :, None, None]

    def bn(x, g, be):
        m = jnp.mean(x, axis=(0, 2, 3), keepdims=True)
        v = jnp.mean((x - m) ** 2, axis=(0, 2, 3), keepdims=True)
        return (x - m) * jax.lax.rsqrt(v + 1e-5) * g[None, :, None, None] + be[None, :, None, None]

    def branch(x, bp):
        h = jax.nn.relu(bn(conv(x, bp["convs"][0], bp["cbias"][0]), bp["gammas"][0], bp["betas"][0]))
        h = jax.nn.relu(bn(conv(h, bp["convs"][1], bp["cbias"][1]), bp["gammas"][1], bp["betas"][1]))
        h = bn(conv(h, bp["convs"][2], bp["cbias"][2]), bp["gammas"][2], bp["betas"][2])
        o = jax.nn.relu(x + h)
        return jnp.dot(o.reshape(x.shape[0], -1), bp["lw"].T, precision=hp) + bp["lb"]

    return branch(x1, bp1), branch(x2, bp2)


if __name__ == "__main__":
    # in_channels == out_channels == 8, padding_max (H) == 8, hidden_size (W == hidden) == 32
    B, C, PAD_MAX, HIDDEN = 2, 8, 8, 32

    key = jax.random.PRNGKey(0)
    k_x1, k_x2, k_p1, k_p2 = jax.random.split(key, 4)
    x1 = jax.random.normal(k_x1, (B, C, PAD_MAX, HIDDEN), jnp.float32)
    x2 = jax.random.normal(k_x2, (B, C, PAD_MAX, HIDDEN), jnp.float32)

    bp1 = branch_params(k_p1, C, PAD_MAX, HIDDEN, HIDDEN)
    bp2 = branch_params(k_p2, C, PAD_MAX, HIDDEN, HIDDEN)
    params = prepare_params(bp1, bp2, B, C, PAD_MAX, HIDDEN, HIDDEN)

    y1, y2 = residual_block_forward(x1, x2, params)
    jax.block_until_ready((y1, y2))

    r1, r2 = reference_forward(x1, x2, bp1, bp2)
    assert y1.shape == (B, HIDDEN) and y2.shape == (B, HIDDEN)
    # Kernel uses bf16 MXU operands (f32 accumulation) across 3 chained convs
    # plus the linear; compare against the full-f32 reference with a bf16-
    # appropriate tolerance.  Layout/permutation bugs would produce O(1) error.
    assert jnp.allclose(y1, r1, atol=2.5e-2, rtol=2.5e-2), "branch-1 mismatch vs reference"
    assert jnp.allclose(y2, r2, atol=2.5e-2, rtol=2.5e-2), "branch-2 mismatch vs reference"

    print("KERNEL_OK")
</pallas_src>

<mosaic_0001>
module attributes {stable_mosaic.version = 11 : i64} {
  func.func @residual_branch_kernel(%arg0: i32, %arg1: memref<1x2x8x256xf32, #tpu.memory_space<vmem>>, %arg2: memref<1x3x768x256xbf16, #tpu.memory_space<vmem>>, %arg3: memref<1x3x8xf32, #tpu.memory_space<vmem>>, %arg4: memref<1x3x8xf32, #tpu.memory_space<vmem>>, %arg5: memref<1x2048x32xbf16, #tpu.memory_space<vmem>>, %arg6: memref<1x1x32xf32, #tpu.memory_space<vmem>>, %arg7: memref<256x8xf32, #tpu.memory_space<vmem>>, %arg8: memref<8x256xf32, #tpu.memory_space<vmem>>, %arg9: memref<1x2x32xf32, #tpu.memory_space<vmem>>, %arg10: memref<2x10x256xf32, #tpu.memory_space<vmem>>) attributes {dimension_semantics = [#tpu.dimension_semantics<parallel>], iteration_bounds = array<i64: 2>, scalar_prefetch = 0 : i64, scratch_operands = 1 : i64, tpu.core_type = #tpu.core_type<tc>, window_params = [{transform_indices = @transform_0, window_bounds = array<i64: 1, 2, 8, 256>}, {transform_indices = @transform_1, window_bounds = array<i64: 1, 3, 768, 256>}, {transform_indices = @transform_2, window_bounds = array<i64: 1, 3, 8>}, {transform_indices = @transform_3, window_bounds = array<i64: 1, 3, 8>}, {transform_indices = @transform_4, window_bounds = array<i64: 1, 2048, 32>}, {transform_indices = @transform_5, window_bounds = array<i64: 1, 1, 32>}, {pipeline_mode = #tpu.pipeline_mode<synchronous>, transform_indices = @transform_6, window_bounds = array<i64: 256, 8>}, {pipeline_mode = #tpu.pipeline_mode<synchronous>, transform_indices = @transform_7, window_bounds = array<i64: 8, 256>}, {transform_indices = @transform_8, window_bounds = array<i64: 1, 2, 32>}]} {
    %cst = arith.constant 0.000000e+00 : f32
    %0 = vector.broadcast %cst : f32 to vector<2x1x256xf32>
    %c0 = arith.constant 0 : index
    %c0_0 = arith.constant 0 : index
    %c0_1 = arith.constant 0 : index
    %1 = vector.load %arg10[%c0, %c0_0, %c0_1] : memref<2x10x256xf32, #tpu.memory_space<vmem>>, vector<2x1x256xf32>
    tpu.vector_store %arg10[%c0, %c0_0, %c0_1], %0 {strides = array<i32>} : memref<2x10x256xf32, #tpu.memory_space<vmem>>, vector<2x1x256xf32>,
    %cst_2 = arith.constant 0.000000e+00 : f32
    %2 = vector.broadcast %cst_2 : f32 to vector<2x1x256xf32>
    %c0_3 = arith.constant 0 : index
    %c9 = arith.constant 9 : index
    %c0_4 = arith.constant 0 : index
    %3 = vector.load %arg10[%c0_3, %c9, %c0_4] : memref<2x10x256xf32, #tpu.memory_space<vmem>>, vector<2x1x256xf32>
    tpu.vector_store %arg10[%c0_3, %c9, %c0_4], %2 {strides = array<i32>} : memref<2x10x256xf32, #tpu.memory_space<vmem>>, vector<2x1x256xf32>,
    %c0_5 = arith.constant 0 : index
    %c0_6 = arith.constant 0 : index
    %4 = vector.load %arg7[%c0_5, %c0_6] : memref<256x8xf32, #tpu.memory_space<vmem>>, vector<256x8xf32>
    %c0_7 = arith.constant 0 : index
    %c0_8 = arith.constant 0 : index
    %5 = vector.load %arg8[%c0_7, %c0_8] : memref<8x256xf32, #tpu.memory_space<vmem>>, vector<8x256xf32>
    %c0_9 = arith.constant 0 : index
    %c0_10 = arith.constant 0 : index
    %c0_11 = arith.constant 0 : index
    %c0_12 = arith.constant 0 : index
    %6 = vector.load %arg1[%c0_9, %c0_10, %c0_11, %c0_12] : memref<1x2x8x256xf32, #tpu.memory_space<vmem>>, vector<1x2x8x256xf32>
    %7 = vector.shape_cast %6 : vector<1x2x8x256xf32> to vector<2x8x256xf32>
    %8 = vector.shape_cast %7 : vector<2x8x256xf32> to vector<16x256xf32>
    %9 = vector.shape_cast %8 : vector<16x256xf32> to vector<2x8x256xf32>
    %c0_13 = arith.constant 0 : index
    %c1 = arith.constant 1 : index
    %c0_14 = arith.constant 0 : index
    %10 = vector.load %arg10[%c0_13, %c1, %c0_14] : memref<2x10x256xf32, #tpu.memory_space<vmem>>, vector<2x8x256xf32>
    tpu.vector_store %arg10[%c0_13, %c1, %c0_14], %9 {strides = array<i32>} : memref<2x10x256xf32, #tpu.memory_space<vmem>>, vector<2x8x256xf32>,
    %c0_15 = arith.constant 0 : index
    %c0_16 = arith.constant 0 : index
    %c0_17 = arith.constant 0 : index
    %11 = vector.load %arg10[%c0_15, %c0_16, %c0_17] : memref<2x10x256xf32, #tpu.memory_space<vmem>>, vector<2x8x256xf32>
    %12 = vector.shape_cast %11 : vector<2x8x256xf32> to vector<16x256xf32>
    %c0_18 = arith.constant 0 : index
    %c1_19 = arith.constant 1 : index
    %c0_20 = arith.constant 0 : index
    %13 = vector.load %arg10[%c0_18, %c1_19, %c0_20] : memref<2x10x256xf32, #tpu.memory_space<vmem>>, vector<2x8x256xf32>
    %14 = vector.shape_cast %13 : vector<2x8x256xf32> to vector<16x256xf32>
    %c0_21 = arith.constant 0 : index
    %c2 = arith.constant 2 : index
    %c0_22 = arith.constant 0 : index
    %15 = vector.load %arg10[%c0_21, %c2, %c0_22] : memref<2x10x256xf32, #tpu.memory_space<vmem>>, vector<2x8x256xf32>
    %16 = vector.shape_cast %15 : vector<2x8x256xf32> to vector<16x256xf32>
    %17 = tpu.concatenate %12, %14, %16 in 1 : vector<16x256xf32>, vector<16x256xf32>, vector<16x256xf32> -> vector<16x768xf32>
    %18 = arith.truncf %17 : vector<16x768xf32> to vector<16x768xbf16>
    %c0_23 = arith.constant 0 : index
    %c0_24 = arith.constant 0 : index
    %c0_25 = arith.constant 0 : index
    %c0_26 = arith.constant 0 : index
    %19 = vector.load %arg2[%c0_23, %c0_24, %c0_25, %c0_26] : memref<1x3x768x256xbf16, #tpu.memory_space<vmem>>, vector<1x1x768x256xbf16>
    %20 = vector.shape_cast %19 : vector<1x1x768x256xbf16> to vector<768x256xbf16>
    %cst_27 = arith.constant dense<0.000000e+00> : vector<16x256xf32>
    %21 = tpu.matmul %18, %20, %cst_27 {dimension_numbers = #tpu.dot_dimension_numbers<[1], [0], [0], [1], [0, 0, 1, 1], [], []>} : vector<16x768xbf16>, vector<768x256xbf16>, vector<16x256xf32> -> vector<16x256xf32>
    %cst_28 = arith.constant dense<0.000000e+00> : vector<256xf32>
    %22 = vector.multi_reduction <add>, %21, %cst_28 [0] : vector<16x256xf32> to vector<256xf32>
    %23 = vector.shape_cast %22 : vector<256xf32> to vector<1x256xf32>
    %24 = arith.mulf %21, %21 : vector<16x256xf32>
    %cst_29 = arith.constant dense<0.000000e+00> : vector<256xf32>
    %25 = vector.multi_reduction <add>, %24, %cst_29 [0] : vector<16x256xf32> to vector<256xf32>
    %26 = vector.shape_cast %25 : vector<256xf32> to vector<1x256xf32>
    %27 = tpu.concatenate %23, %26 in 0 : vector<1x256xf32>, vector<1x256xf32> -> vector<2x256xf32>
    %cst_30 = arith.constant dense<0.000000e+00> : vector<2x8xf32>
    %28 = tpu.matmul %27, %4, %cst_30 {dimension_numbers = #tpu.dot_dimension_numbers<[1], [0], [0], [1], [0, 0, 1, 1], [], []>} : vector<2x256xf32>, vector<256x8xf32>, vector<2x8xf32> -> vector<2x8xf32>
    %29 = vector.extract_strided_slice %28 {offsets = [0, 0], sizes = [1, 8], strides = [1, 1]} : vector<2x8xf32> to vector<1x8xf32>
    %30 = vector.extract_strided_slice %28 {offsets = [1, 0], sizes = [1, 8], strides = [1, 1]} : vector<2x8xf32> to vector<1x8xf32>
    %31 = arith.mulf %29, %29 : vector<1x8xf32>
    %32 = arith.subf %30, %31 : vector<1x8xf32>
    %c0_31 = arith.constant 0 : index
    %c0_32 = arith.constant 0 : index
    %c0_33 = arith.constant 0 : index
    %33 = vector.load %arg3[%c0_31, %c0_32, %c0_33] : memref<1x3x8xf32, #tpu.memory_space<vmem>>, vector<1x1x8xf32>
    %34 = vector.shape_cast %33 : vector<1x1x8xf32> to vector<1x8xf32>
    %cst_34 = arith.constant 9.99999974E-6 : f32
    %35 = vector.broadcast %cst_34 : f32 to vector<1x8xf32>
    %36 = arith.addf %32, %35 : vector<1x8xf32>
    %37 = math.rsqrt %36 : vector<1x8xf32>
    %38 = arith.mulf %34, %37 : vector<1x8xf32>
    %c0_35 = arith.constant 0 : index
    %c0_36 = arith.constant 0 : index
    %c0_37 = arith.constant 0 : index
    %39 = vector.load %arg4[%c0_35, %c0_36, %c0_37] : memref<1x3x8xf32, #tpu.memory_space<vmem>>, vector<1x1x8xf32>
    %40 = vector.shape_cast %39 : vector<1x1x8xf32> to vector<1x8xf32>
    %41 = arith.mulf %29, %38 : vector<1x8xf32>
    %42 = arith.subf %40, %41 : vector<1x8xf32>
    %43 = tpu.concatenate %38, %42 in 0 : vector<1x8xf32>, vector<1x8xf32> -> vector<2x8xf32>
    %cst_38 = arith.constant dense<0.000000e+00> : vector<2x256xf32>
    %44 = tpu.matmul %43, %5, %cst_38 {dimension_numbers = #tpu.dot_dimension_numbers<[1], [0], [0], [1], [0, 0, 1, 1], [], []>} : vector<2x8xf32>, vector<8x256xf32>, vector<2x256xf32> -> vector<2x256xf32>
    %45 = vector.extract_strided_slice %44 {offsets = [0, 0], sizes = [1, 256], strides = [1, 1]} : vector<2x256xf32> to vector<1x256xf32>
    %46 = vector.broadcast %45 : vector<1x256xf32> to vector<16x256xf32>
    %47 = arith.mulf %21, %46 : vector<16x256xf32>
    %48 = vector.extract_strided_slice %44 {offsets = [1, 0], sizes = [1, 256], strides = [1, 1]} : vector<2x256xf32> to vector<1x256xf32>
    %49 = vector.broadcast %48 : vector<1x256xf32> to vector<16x256xf32>
    %50 = arith.addf %47, %49 : vector<16x256xf32>
    %cst_39 = arith.constant 0.000000e+00 : f32
    %51 = vector.broadcast %cst_39 : f32 to vector<16x256xf32>
    %52 = arith.maximumf %50, %51 : vector<16x256xf32>
    %53 = vector.shape_cast %52 : vector<16x256xf32> to vector<2x8x256xf32>
    %c0_40 = arith.constant 0 : index
    %c1_41 = arith.constant 1 : index
    %c0_42 = arith.constant 0 : index
    %54 = vector.load %arg10[%c0_40, %c1_41, %c0_42] : memref<2x10x256xf32, #tpu.memory_space<vmem>>, vector<2x8x256xf32>
    tpu.vector_store %arg10[%c0_40, %c1_41, %c0_42], %53 {strides = array<i32>} : memref<2x10x256xf32, #tpu.memory_space<vmem>>, vector<2x8x256xf32>,
    %c0_43 = arith.constant 0 : index
    %c0_44 = arith.constant 0 : index
    %c0_45 = arith.constant 0 : index
    %55 = vector.load %arg10[%c0_43, %c0_44, %c0_45] : memref<2x10x256xf32, #tpu.memory_space<vmem>>, vector<2x8x256xf32>
    %56 = vector.shape_cast %55 : vector<2x8x256xf32> to vector<16x256xf32>
    %c0_46 = arith.constant 0 : index
    %c1_47 = arith.constant 1 : index
    %c0_48 = arith.constant 0 : index
    %57 = vector.load %arg10[%c0_46, %c1_47, %c0_48] : memref<2x10x256xf32, #tpu.memory_space<vmem>>, vector<2x8x256xf32>
    %58 = vector.shape_cast %57 : vector<2x8x256xf32> to vector<16x256xf32>
    %c0_49 = arith.constant 0 : index
    %c2_50 = arith.constant 2 : index
    %c0_51 = arith.constant 0 : index
    %59 = vector.load %arg10[%c0_49, %c2_50, %c0_51] : memref<2x10x256xf32, #tpu.memory_space<vmem>>, vector<2x8x256xf32>
    %60 = vector.shape_cast %59 : vector<2x8x256xf32> to vector<16x256xf32>
    %61 = tpu.concatenate %56, %58, %60 in 1 : vector<16x256xf32>, vector<16x256xf32>, vector<16x256xf32> -> vector<16x768xf32>
    %62 = arith.truncf %61 : vector<16x768xf32> to vector<16x768xbf16>
    %c0_52 = arith.constant 0 : index
    %c1_53 = arith.constant 1 : index
    %c0_54 = arith.constant 0 : index
    %c0_55 = arith.constant 0 : index
    %63 = vector.load %arg2[%c0_52, %c1_53, %c0_54, %c0_55] : memref<1x3x768x256xbf16, #tpu.memory_space<vmem>>, vector<1x1x768x256xbf16>
    %64 = vector.shape_cast %63 : vector<1x1x768x256xbf16> to vector<768x256xbf16>
    %cst_56 = arith.constant dense<0.000000e+00> : vector<16x256xf32>
    %65 = tpu.matmul %62, %64, %cst_56 {dimension_numbers = #tpu.dot_dimension_numbers<[1], [0], [0], [1], [0, 0, 1, 1], [], []>} : vector<16x768xbf16>, vector<768x256xbf16>, vector<16x256xf32> -> vector<16x256xf32>
    %cst_57 = arith.constant dense<0.000000e+00> : vector<256xf32>
    %66 = vector.multi_reduction <add>, %65, %cst_57 [0] : vector<16x256xf32> to vector<256xf32>
    %67 = vector.shape_cast %66 : vector<256xf32> to vector<1x256xf32>
    %68 = arith.mulf %65, %65 : vector<16x256xf32>
    %cst_58 = arith.constant dense<0.000000e+00> : vector<256xf32>
    %69 = vector.multi_reduction <add>, %68, %cst_58 [0] : vector<16x256xf32> to vector<256xf32>
    %70 = vector.shape_cast %69 : vector<256xf32> to vector<1x256xf32>
    %71 = tpu.concatenate %67, %70 in 0 : vector<1x256xf32>, vector<1x256xf32> -> vector<2x256xf32>
    %cst_59 = arith.constant dense<0.000000e+00> : vector<2x8xf32>
    %72 = tpu.matmul %71, %4, %cst_59 {dimension_numbers = #tpu.dot_dimension_numbers<[1], [0], [0], [1], [0, 0, 1, 1], [], []>} : vector<2x256xf32>, vector<256x8xf32>, vector<2x8xf32> -> vector<2x8xf32>
    %73 = vector.extract_strided_slice %72 {offsets = [0, 0], sizes = [1, 8], strides = [1, 1]} : vector<2x8xf32> to vector<1x8xf32>
    %74 = vector.extract_strided_slice %72 {offsets = [1, 0], sizes = [1, 8], strides = [1, 1]} : vector<2x8xf32> to vector<1x8xf32>
    %75 = arith.mulf %73, %73 : vector<1x8xf32>
    %76 = arith.subf %74, %75 : vector<1x8xf32>
    %c0_60 = arith.constant 0 : index
    %c1_61 = arith.constant 1 : index
    %c0_62 = arith.constant 0 : index
    %77 = vector.load %arg3[%c0_60, %c1_61, %c0_62] : memref<1x3x8xf32, #tpu.memory_space<vmem>>, vector<1x1x8xf32>
    %78 = vector.shape_cast %77 : vector<1x1x8xf32> to vector<1x8xf32>
    %cst_63 = arith.constant 9.99999974E-6 : f32
    %79 = vector.broadcast %cst_63 : f32 to vector<1x8xf32>
    %80 = arith.addf %76, %79 : vector<1x8xf32>
    %81 = math.rsqrt %80 : vector<1x8xf32>
    %82 = arith.mulf %78, %81 : vector<1x8xf32>
    %c0_64 = arith.constant 0 : index
    %c1_65 = arith.constant 1 : index
    %c0_66 = arith.constant 0 : index
    %83 = vector.load %arg4[%c0_64, %c1_65, %c0_66] : memref<1x3x8xf32, #tpu.memory_space<vmem>>, vector<1x1x8xf32>
    %84 = vector.shape_cast %83 : vector<1x1x8xf32> to vector<1x8xf32>
    %85 = arith.mulf %73, %82 : vector<1x8xf32>
    %86 = arith.subf %84, %85 : vector<1x8xf32>
    %87 = tpu.concatenate %82, %86 in 0 : vector<1x8xf32>, vector<1x8xf32> -> vector<2x8xf32>
    %cst_67 = arith.constant dense<0.000000e+00> : vector<2x256xf32>
    %88 = tpu.matmul %87, %5, %cst_67 {dimension_numbers = #tpu.dot_dimension_numbers<[1], [0], [0], [1], [0, 0, 1, 1], [], []>} : vector<2x8xf32>, vector<8x256xf32>, vector<2x256xf32> -> vector<2x256xf32>
    %89 = vector.extract_strided_slice %88 {offsets = [0, 0], sizes = [1, 256], strides = [1, 1]} : vector<2x256xf32> to vector<1x256xf32>
    %90 = vector.broadcast %89 : vector<1x256xf32> to vector<16x256xf32>
    %91 = arith.mulf %65, %90 : vector<16x256xf32>
    %92 = vector.extract_strided_slice %88 {offsets = [1, 0], sizes = [1, 256], strides = [1, 1]} : vector<2x256xf32> to vector<1x256xf32>
    %93 = vector.broadcast %92 : vector<1x256xf32> to vector<16x256xf32>
    %94 = arith.addf %91, %93 : vector<16x256xf32>
    %cst_68 = arith.constant 0.000000e+00 : f32
    %95 = vector.broadcast %cst_68 : f32 to vector<16x256xf32>
    %96 = arith.maximumf %94, %95 : vector<16x256xf32>
    %97 = vector.shape_cast %96 : vector<16x256xf32> to vector<2x8x256xf32>
    %c0_69 = arith.constant 0 : index
    %c1_70 = arith.constant 1 : index
    %c0_71 = arith.constant 0 : index
    %98 = vector.load %arg10[%c0_69, %c1_70, %c0_71] : memref<2x10x256xf32, #tpu.memory_space<vmem>>, vector<2x8x256xf32>
    tpu.vector_store %arg10[%c0_69, %c1_70, %c0_71], %97 {strides = array<i32>} : memref<2x10x256xf32, #tpu.memory_space<vmem>>, vector<2x8x256xf32>,
    %c0_72 = arith.constant 0 : index
    %c0_73 = arith.constant 0 : index
    %c0_74 = arith.constant 0 : index
    %99 = vector.load %arg10[%c0_72, %c0_73, %c0_74] : memref<2x10x256xf32, #tpu.memory_space<vmem>>, vector<2x8x256xf32>
    %100 = vector.shape_cast %99 : vector<2x8x256xf32> to vector<16x256xf32>
    %c0_75 = arith.constant 0 : index
    %c1_76 = arith.constant 1 : index
    %c0_77 = arith.constant 0 : index
    %101 = vector.load %arg10[%c0_75, %c1_76, %c0_77] : memref<2x10x256xf32, #tpu.memory_space<vmem>>, vector<2x8x256xf32>
    %102 = vector.shape_cast %101 : vector<2x8x256xf32> to vector<16x256xf32>
    %c0_78 = arith.constant 0 : index
    %c2_79 = arith.constant 2 : index
    %c0_80 = arith.constant 0 : index
    %103 = vector.load %arg10[%c0_78, %c2_79, %c0_80] : memref<2x10x256xf32, #tpu.memory_space<vmem>>, vector<2x8x256xf32>
    %104 = vector.shape_cast %103 : vector<2x8x256xf32> to vector<16x256xf32>
    %105 = tpu.concatenate %100, %102, %104 in 1 : vector<16x256xf32>, vector<16x256xf32>, vector<16x256xf32> -> vector<16x768xf32>
    %106 = arith.truncf %105 : vector<16x768xf32> to vector<16x768xbf16>
    %c0_81 = arith.constant 0 : index
    %c2_82 = arith.constant 2 : index
    %c0_83 = arith.constant 0 : index
    %c0_84 = arith.constant 0 : index
    %107 = vector.load %arg2[%c0_81, %c2_82, %c0_83, %c0_84] : memref<1x3x768x256xbf16, #tpu.memory_space<vmem>>, vector<1x1x768x256xbf16>
    %108 = vector.shape_cast %107 : vector<1x1x768x256xbf16> to vector<768x256xbf16>
    %cst_85 = arith.constant dense<0.000000e+00> : vector<16x256xf32>
    %109 = tpu.matmul %106, %108, %cst_85 {dimension_numbers = #tpu.dot_dimension_numbers<[1], [0], [0], [1], [0, 0, 1, 1], [], []>} : vector<16x768xbf16>, vector<768x256xbf16>, vector<16x256xf32> -> vector<16x256xf32>
    %cst_86 = arith.constant dense<0.000000e+00> : vector<256xf32>
    %110 = vector.multi_reduction <add>, %109, %cst_86 [0] : vector<16x256xf32> to vector<256xf32>
    %111 = vector.shape_cast %110 : vector<256xf32> to vector<1x256xf32>
    %112 = arith.mulf %109, %109 : vector<16x256xf32>
    %cst_87 = arith.constant dense<0.000000e+00> : vector<256xf32>
    %113 = vector.multi_reduction <add>, %112, %cst_87 [0] : vector<16x256xf32> to vector<256xf32>
    %114 = vector.shape_cast %113 : vector<256xf32> to vector<1x256xf32>
    %115 = tpu.concatenate %111, %114 in 0 : vector<1x256xf32>, vector<1x256xf32> -> vector<2x256xf32>
    %cst_88 = arith.constant dense<0.000000e+00> : vector<2x8xf32>
    %116 = tpu.matmul %115, %4, %cst_88 {dimension_numbers = #tpu.dot_dimension_numbers<[1], [0], [0], [1], [0, 0, 1, 1], [], []>} : vector<2x256xf32>, vector<256x8xf32>, vector<2x8xf32> -> vector<2x8xf32>
    %117 = vector.extract_strided_slice %116 {offsets = [0, 0], sizes = [1, 8], strides = [1, 1]} : vector<2x8xf32> to vector<1x8xf32>
    %118 = vector.extract_strided_slice %116 {offsets = [1, 0], sizes = [1, 8], strides = [1, 1]} : vector<2x8xf32> to vector<1x8xf32>
    %119 = arith.mulf %117, %117 : vector<1x8xf32>
    %120 = arith.subf %118, %119 : vector<1x8xf32>
    %c0_89 = arith.constant 0 : index
    %c2_90 = arith.constant 2 : index
    %c0_91 = arith.constant 0 : index
    %121 = vector.load %arg3[%c0_89, %c2_90, %c0_91] : memref<1x3x8xf32, #tpu.memory_space<vmem>>, vector<1x1x8xf32>
    %122 = vector.shape_cast %121 : vector<1x1x8xf32> to vector<1x8xf32>
    %cst_92 = arith.constant 9.99999974E-6 : f32
    %123 = vector.broadcast %cst_92 : f32 to vector<1x8xf32>
    %124 = arith.addf %120, %123 : vector<1x8xf32>
    %125 = math.rsqrt %124 : vector<1x8xf32>
    %126 = arith.mulf %122, %125 : vector<1x8xf32>
    %c0_93 = arith.constant 0 : index
    %c2_94 = arith.constant 2 : index
    %c0_95 = arith.constant 0 : index
    %127 = vector.load %arg4[%c0_93, %c2_94, %c0_95] : memref<1x3x8xf32, #tpu.memory_space<vmem>>, vector<1x1x8xf32>
    %128 = vector.shape_cast %127 : vector<1x1x8xf32> to vector<1x8xf32>
    %129 = arith.mulf %117, %126 : vector<1x8xf32>
    %130 = arith.subf %128, %129 : vector<1x8xf32>
    %131 = tpu.concatenate %126, %130 in 0 : vector<1x8xf32>, vector<1x8xf32> -> vector<2x8xf32>
    %cst_96 = arith.constant dense<0.000000e+00> : vector<2x256xf32>
    %132 = tpu.matmul %131, %5, %cst_96 {dimension_numbers = #tpu.dot_dimension_numbers<[1], [0], [0], [1], [0, 0, 1, 1], [], []>} : vector<2x8xf32>, vector<8x256xf32>, vector<2x256xf32> -> vector<2x256xf32>
    %133 = vector.extract_strided_slice %132 {offsets = [0, 0], sizes = [1, 256], strides = [1, 1]} : vector<2x256xf32> to vector<1x256xf32>
    %134 = vector.broadcast %133 : vector<1x256xf32> to vector<16x256xf32>
    %135 = arith.mulf %109, %134 : vector<16x256xf32>
    %136 = vector.extract_strided_slice %132 {offsets = [1, 0], sizes = [1, 256], strides = [1, 1]} : vector<2x256xf32> to vector<1x256xf32>
    %137 = vector.broadcast %136 : vector<1x256xf32> to vector<16x256xf32>
    %138 = arith.addf %135, %137 : vector<16x256xf32>
    %139 = arith.addf %8, %138 : vector<16x256xf32>
    %cst_97 = arith.constant 0.000000e+00 : f32
    %140 = vector.broadcast %cst_97 : f32 to vector<16x256xf32>
    %141 = arith.maximumf %139, %140 : vector<16x256xf32>
    %142 = vector.shape_cast %141 : vector<16x256xf32> to vector<2x8x256xf32>
    %143 = vector.extract_strided_slice %142 {offsets = [0, 0, 0], sizes = [2, 1, 256], strides = [1, 1, 1]} : vector<2x8x256xf32> to vector<2x1x256xf32>
    %144 = vector.shape_cast %143 : vector<2x1x256xf32> to vector<2x256xf32>
    %145 = vector.extract_strided_slice %142 {offsets = [0, 1, 0], sizes = [2, 1, 256], strides = [1, 1, 1]} : vector<2x8x256xf32> to vector<2x1x256xf32>
    %146 = vector.shape_cast %145 : vector<2x1x256xf32> to vector<2x256xf32>
    %147 = vector.extract_strided_slice %142 {offsets = [0, 2, 0], sizes = [2, 1, 256], strides = [1, 1, 1]} : vector<2x8x256xf32> to vector<2x1x256xf32>
    %148 = vector.shape_cast %147 : vector<2x1x256xf32> to vector<2x256xf32>
    %149 = vector.extract_strided_slice %142 {offsets = [0, 3, 0], sizes = [2, 1, 256], strides = [1, 1, 1]} : vector<2x8x256xf32> to vector<2x1x256xf32>
    %150 = vector.shape_cast %149 : vector<2x1x256xf32> to vector<2x256xf32>
    %151 = vector.extract_strided_slice %142 {offsets = [0, 4, 0], sizes = [2, 1, 256], strides = [1, 1, 1]} : vector<2x8x256xf32> to vector<2x1x256xf32>
    %152 = vector.shape_cast %151 : vector<2x1x256xf32> to vector<2x256xf32>
    %153 = vector.extract_strided_slice %142 {offsets = [0, 5, 0], sizes = [2, 1, 256], strides = [1, 1, 1]} : vector<2x8x256xf32> to vector<2x1x256xf32>
    %154 = vector.shape_cast %153 : vector<2x1x256xf32> to vector<2x256xf32>
    %155 = vector.extract_strided_slice %142 {offsets = [0, 6, 0], sizes = [2, 1, 256], strides = [1, 1, 1]} : vector<2x8x256xf32> to vector<2x1x256xf32>
    %156 = vector.shape_cast %155 : vector<2x1x256xf32> to vector<2x256xf32>
    %157 = vector.extract_strided_slice %142 {offsets = [0, 7, 0], sizes = [2, 1, 256], strides = [1, 1, 1]} : vector<2x8x256xf32> to vector<2x1x256xf32>
    %158 = vector.shape_cast %157 : vector<2x1x256xf32> to vector<2x256xf32>
    %159 = tpu.concatenate %144, %146, %148, %150, %152, %154, %156, %158 in 1 : vector<2x256xf32>, vector<2x256xf32>, vector<2x256xf32>, vector<2x256xf32>, vector<2x256xf32>, vector<2x256xf32>, vector<2x256xf32>, vector<2x256xf32> -> vector<2x2048xf32>
    %160 = arith.truncf %159 : vector<2x2048xf32> to vector<2x2048xbf16>
    %c0_98 = arith.constant 0 : index
    %c0_99 = arith.constant 0 : index
    %c0_100 = arith.constant 0 : index
    %161 = vector.load %arg5[%c0_98, %c0_99, %c0_100] : memref<1x2048x32xbf16, #tpu.memory_space<vmem>>, vector<1x2048x32xbf16>
    %162 = vector.shape_cast %161 : vector<1x2048x32xbf16> to vector<2048x32xbf16>
    %cst_101 = arith.constant dense<0.000000e+00> : vector<2x32xf32>
    %163 = tpu.matmul %160, %162, %cst_101 {dimension_numbers = #tpu.dot_dimension_numbers<[1], [0], [0], [1], [0, 0, 1, 1], [], []>} : vector<2x2048xbf16>, vector<2048x32xbf16>, vector<2x32xf32> -> vector<2x32xf32>
    %c0_102 = arith.constant 0 : index
    %c0_103 = arith.constant 0 : index
    %c0_104 = arith.constant 0 : index
    %164 = vector.load %arg6[%c0_102, %c0_103, %c0_104] : memref<1x1x32xf32, #tpu.memory_space<vmem>>, vector<1x1x32xf32>
    %165 = vector.shape_cast %164 : vector<1x1x32xf32> to vector<1x32xf32>
    %166 = vector.broadcast %165 : vector<1x32xf32> to vector<2x32xf32>
    %167 = arith.addf %163, %166 : vector<2x32xf32>
    %c0_105 = arith.constant 0 : index
    %c0_106 = arith.constant 0 : index
    %c0_107 = arith.constant 0 : index
    %168 = vector.load %arg9[%c0_105, %c0_106, %c0_107] : memref<1x2x32xf32, #tpu.memory_space<vmem>>, vector<1x2x32xf32>
    %169 = vector.shape_cast %168 : vector<1x2x32xf32> to vector<2x32xf32>
    %170 = vector.shape_cast %167 : vector<2x32xf32> to vector<1x2x32xf32>
    tpu.vector_store %arg9[%c0_105, %c0_106, %c0_107], %170 {strides = array<i32>} : memref<1x2x32xf32, #tpu.memory_space<vmem>>, vector<1x2x32xf32>,
    return
  }
  func.func @transform_0(%arg0: i32) -> (i32, i32, i32, i32) {
    %c0_i32 = arith.constant 0 : i32
    %c0_i32_0 = arith.constant 0 : i32
    %c0_i32_1 = arith.constant 0 : i32
    %c0_i32_2 = arith.constant 0 : i32
    return %arg0, %c0_i32, %c0_i32_0, %c0_i32_1 : i32, i32, i32, i32
  }
  func.func @transform_1(%arg0: i32) -> (i32, i32, i32, i32) {
    %c0_i32 = arith.constant 0 : i32
    %c0_i32_0 = arith.constant 0 : i32
    %c0_i32_1 = arith.constant 0 : i32
    %c0_i32_2 = arith.constant 0 : i32
    return %arg0, %c0_i32, %c0_i32_0, %c0_i32_1 : i32, i32, i32, i32
  }
  func.func @transform_2(%arg0: i32) -> (i32, i32, i32) {
    %c0_i32 = arith.constant 0 : i32
    %c0_i32_0 = arith.constant 0 : i32
    %c0_i32_1 = arith.constant 0 : i32
    return %arg0, %c0_i32, %c0_i32_0 : i32, i32, i32
  }
  func.func @transform_3(%arg0: i32) -> (i32, i32, i32) {
    %c0_i32 = arith.constant 0 : i32
    %c0_i32_0 = arith.constant 0 : i32
    %c0_i32_1 = arith.constant 0 : i32
    return %arg0, %c0_i32, %c0_i32_0 : i32, i32, i32
  }
  func.func @transform_4(%arg0: i32) -> (i32, i32, i32) {
    %c0_i32 = arith.constant 0 : i32
    %c0_i32_0 = arith.constant 0 : i32
    %c0_i32_1 = arith.constant 0 : i32
    return %arg0, %c0_i32, %c0_i32_0 : i32, i32, i32
  }
  func.func @transform_5(%arg0: i32) -> (i32, i32, i32) {
    %c0_i32 = arith.constant 0 : i32
    %c0_i32_0 = arith.constant 0 : i32
    %c0_i32_1 = arith.constant 0 : i32
    return %arg0, %c0_i32, %c0_i32_0 : i32, i32, i32
  }
  func.func @transform_6(%arg0: i32) -> (i32, i32) {
    %c0_i32 = arith.constant 0 : i32
    %c0_i32_0 = arith.constant 0 : i32
    %c0_i32_1 = arith.constant 0 : i32
    return %c0_i32, %c0_i32_0 : i32, i32
  }
  func.func @transform_7(%arg0: i32) -> (i32, i32) {
    %c0_i32 = arith.constant 0 : i32
    %c0_i32_0 = arith.constant 0 : i32
    %c0_i32_1 = arith.constant 0 : i32
    return %c0_i32, %c0_i32_0 : i32, i32
  }
  func.func @transform_8(%arg0: i32) -> (i32, i32, i32) {
    %c0_i32 = arith.constant 0 : i32
    %c0_i32_0 = arith.constant 0 : i32
    %c0_i32_1 = arith.constant 0 : i32
    return %arg0, %c0_i32, %c0_i32_0 : i32, i32, i32
  }
}

</mosaic_0001>

<bundles_post_ra>
// kernel: residual_block_forward_fn.1
= control target key start
LH: loop header
LB: loop body
LE: loop exit
PB: predicated region body
PF: predicated region fallthrough
CT: control target
= control target key end

     0   :  { %s6650_s27 = smov 0   ;;  %s7683_s0 = inlined_call_operand.vmem [shape: f32[2,2,8,256], index: 0, kind: input, shape index: {}]   ;;  %s7684_s1 = inlined_call_operand.vmem [shape: bf16[2,3,768,256], index: 1, kind: input, shape index: {}]   ;;  %s7685_s2 = inlined_call_operand.vmem [shape: f32[2,3,8], index: 2, kind: input, shape index: {}]   ;;  %s7686_s3 = inlined_call_operand.vmem [shape: f32[2,3,8], index: 3, kind: input, shape index: {}]   ;;  %s7687_s4 = inlined_call_operand.vmem [shape: bf16[2,2048,32], index: 4, kind: input, shape index: {}]   ;;  %s7688_s5 = inlined_call_operand.vmem [shape: f32[2,1,32], index: 5, kind: input, shape index: {}]   ;;  %s7689_s6 = inlined_call_operand.vmem [shape: f32[256,8], index: 6, kind: input, shape index: {}]   ;;  %s7690_s7 = inlined_call_operand.vmem [shape: f32[8,256], index: 7, kind: input, shape index: {}]   ;;  %s7691_s8 = inlined_call_operand.vmem [shape: f32[2,2,32], index: 8, kind: output, shape index: {}]  }
   0x1 LB: > { %s5072_s28 = sadd.s32 4294967295, %s6602_s27   ;;  %p5076_p0 = scmp.ge.s32.totalorder %s6602_s27, 1  ;;  %s6602_s27 = sphi %s6650_s27, %s18_s27  }
   0x2   : > { %p308_p1 = scmp.lt.s32.totalorder %s6602_s27, 3 }
   0x4   : > { %p309_p2 = pnand %p5076_p0, %p308_p1 }
   0x5   : > { %p362_p3 = scmp.lt.s32.totalorder (!%p309_p2), %s5072_s28, 1 }
   0x6   : > { %312 = sbr.rel (%p309_p2) target bundleno = 2564 (0xa04), region = 52 }
   0xb   : > { %v393_v0 = vlaneseq  ;;  %s7693_s28 = smov (!%p362_p3, %s5072_s28), 1  ;;  %v6604_v1 = vmov 0.0   ;;  %vm486_vm1 = vcmask 1046528   ;;  %vm519_vm2 = vcmask 1045504  }
   0xc   : > { %s5982_s29 = smul.u32 2304, %s7693_s28  ;;  %s5699_s30 = sshll.u32 %s7693_s28, 5  ;;  %vm1279_vm3 = vcmask 1040384   ;;  %vm1371_vm4 = vcmask 64512   ;;  %vm3533_vm5 = vcmask 1041409   ;;  %vm4960_vm6 = vcmask 254976  }
   0xd   : > { %vm395_vm0 = vcmp.lt.s32.totalorder %v393_v0, 256  ;;  %s6670_s11 = scalar_lea.vmem %s7683_s0, %s5699_s30  ;;  %s5080_s9 = sshll.u32 %s7693_s28, 2 }
   0xe   : > { %397 = vst.msk [vmem:[#allocation2] ss:$8 sm:$0x3] %vm395_vm0, %v6604_v1  ;;  %400 = vst.msk [vmem:[#allocation2 + $0x20] ss:$8 sm:$0x3] %vm395_vm0, %v6604_v1  ;;  %s6675_s14 = scalar_lea.vmem %s7684_s1, %s5982_s29  ;;  %s7037_s13 = scalar_lea.vmem %s7685_s2, %s5080_s9 }
   0xf   : > { %403 = vst.msk [vmem:[#allocation2 + $0x11] ss:$8 sm:$0x3] %vm395_vm0, %v6604_v1  ;;  %406 = vst.msk [vmem:[#allocation2 + $0x31] ss:$8 sm:$0x3] %vm395_vm0, %v6604_v1  ;;  %s7043_s17 = scalar_lea.vmem %s7686_s3, %s5080_s9 }
  0x10   : > { %v443_v2 = vld [vmem:[%s6670_s11 + $0x8] sm:$0xff]  ;;  %v445_v3 = vld [vmem:[%s6670_s11 + $0x18] sm:$0xff]  ;;  %v442_v4 = vld [vmem:[%s6670_s11] sm:$0xff]  ;;  %s5700_s21 = sshll.u32 %s7693_s28, 10  ;;  %s5084_s25 = sshll.u32 %s7693_s28, 1 }
  0x11   : > { %v5992_v5 = vld [vmem:[%s6675_s14 + $0x74] ss:$8 sps:$4 sm:$0xff]   ;;  %v451_v6 = vrot.slane %v443_v2, 7  ;;  %v453_v7 = vrot.slane %v445_v3, 7  ;;  %v450_v9 = vrot.slane %v442_v4, 7  ;;  %s7446_s24 = scalar_lea.vmem %s7687_s4, %s5700_s21  ;;  %s391_s30 = scalar_lea.vmem %s7691_s8, %s5084_s25 }
  0x12   : > { %v5994_v8 = vld [vmem:[%s6675_s14 + $0x174] ss:$8 sps:$4 sm:$0xff]   ;;  %1118 = vmatprep.subr.bf16.mxu0 %v5992_v5  ;;  %v5996_v10 = vld [vmem:[%s6675_s14 + $0x70] ss:$8 sps:$4 sm:$0xff]   ;;  %v5998_v12 = vld [vmem:[%s6675_s14 + $0x64] ss:$8 sps:$4 sm:$0xff]  }
  0x13   : > { %v5997_v11 = vld [vmem:[%s6675_s14 + $0x170] ss:$8 sps:$4 sm:$0xff]   ;;  %459 = vst [vmem:[#allocation2 + $0x8] sm:$0xfe] %v451_v6  ;;  %461 = vst [vmem:[#allocation2 + $0x18] sm:$0x1] %v451_v6  ;;  %1161 = vmatprep.subr.bf16.mxu1 %v5994_v8  ;;  %1119 = vmatpush1.bf16.msra.mxu0 %v5996_v10 }
  0x14   : > { %463 = vst [vmem:[#allocation2 + $0x28] sm:$0xfe] %v453_v7  ;;  %465 = vst [vmem:[#allocation2 + $0x38] sm:$0x1] %v453_v7  ;;  %1162 = vmatpush1.bf16.msra.mxu1 %v5997_v11  ;;  %v6000_v13 = vld [vmem:[%s6675_s14 + $0x164] ss:$8 sps:$4 sm:$0xff]   ;;  %1120 = vmatprep.subr.bf16.mxu0 %v5998_v12 }
  0x15   : > { %458 = vst [vmem:[#allocation2] sm:$0xfe] %v450_v9  ;;  %460 = vst [vmem:[#allocation2 + $0x10] sm:$0x1] %v450_v9  ;;  %v6002_v14 = vld [vmem:[%s6675_s14 + $0x60] ss:$8 sps:$4 sm:$0xff]   ;;  %1163 = vmatprep.subr.bf16.mxu1 %v6000_v13 }
  0x16   : > { %v6003_v15 = vld [vmem:[%s6675_s14 + $0x160] ss:$8 sps:$4 sm:$0xff]   ;;  %v6004_v16 = vld [vmem:[%s6675_s14 + $0x54] ss:$8 sps:$4 sm:$0xff]   ;;  %v6008_v18 = vld [vmem:[%s6675_s14 + $0x50] ss:$8 sps:$4 sm:$0xff]  }
  0x17   : > { %v6006_v17 = vld [vmem:[%s6675_s14 + $0x154] ss:$8 sps:$4 sm:$0xff]   ;;  %v6009_v19 = vld [vmem:[%s6675_s14 + $0x150] ss:$8 sps:$4 sm:$0xff]   ;;  %1121 = vmatpush1.bf16.msra.mxu0 %v6002_v14  ;;  %v6010_v20 = vld [vmem:[%s6675_s14 + $0x44] ss:$8 sps:$4 sm:$0xff]  }
  0x18   : > { %1164 = vmatpush1.bf16.msra.mxu1 %v6003_v15  ;;  %1122 = vmatprep.subr.bf16.mxu0 %v6004_v16  ;;  %v6012_v21 = vld [vmem:[%s6675_s14 + $0x144] ss:$8 sps:$4 sm:$0xff]   ;;  %v6014_v22 = vld [vmem:[%s6675_s14 + $0x40] ss:$8 sps:$4 sm:$0xff]   ;;  %v6016_v24 = vld [vmem:[%s6675_s14 + $0x34] ss:$8 sps:$4 sm:$0xff]  }
  0x19   : > { %1165 = vmatprep.subr.bf16.mxu1 %v6006_v17  ;;  %v6015_v23 = vld [vmem:[%s6675_s14 + $0x140] ss:$8 sps:$4 sm:$0xff]   ;;  %v6018_v25 = vld [vmem:[%s6675_s14 + $0x134] ss:$8 sps:$4 sm:$0xff]   ;;  %v6020_v26 = vld [vmem:[%s6675_s14 + $0x30] ss:$8 sps:$4 sm:$0xff]  }
  0x1a   : > { %v6021_v27 = vld [vmem:[%s6675_s14 + $0x130] ss:$8 sps:$4 sm:$0xff]   ;;  %v6022_v28 = vld [vmem:[%s6675_s14 + $0x24] ss:$8 sps:$4 sm:$0xff]   ;;  %v6026_v30 = vld [vmem:[%s6675_s14 + $0x20] ss:$8 sps:$4 sm:$0xff]  }
  0x1b   : > { %1123 = vmatpush1.bf16.msra.mxu0 %v6008_v18  ;;  %v6024_v29 = vld [vmem:[%s6675_s14 + $0x124] ss:$8 sps:$4 sm:$0xff]   ;;  %v6027_v31 = vld [vmem:[%s6675_s14 + $0x120] ss:$8 sps:$4 sm:$0xff]   ;;  %v6028_v32 = vld [vmem:[%s6675_s14 + $0x14] ss:$8 sps:$4 sm:$0xff]  }
  0x1c   : > { %1166 = vmatpush1.bf16.msra.mxu1 %v6009_v19  ;;  %1124 = vmatprep.subr.bf16.mxu0 %v6010_v20  ;;  %v6030_v33 = vld [vmem:[%s6675_s14 + $0x114] ss:$8 sps:$4 sm:$0xff]   ;;  %v6032_v34 = vld [vmem:[%s6675_s14 + $0x10] ss:$8 sps:$4 sm:$0xff]   ;;  %v6034_v36 = vld [vmem:[%s6675_s14 + $0x4] ss:$8 sps:$4 sm:$0xff]  }
  0x1d   : > { %1167 = vmatprep.subr.bf16.mxu1 %v6012_v21  ;;  %v6033_v35 = vld [vmem:[%s6675_s14 + $0x110] ss:$8 sps:$4 sm:$0xff]   ;;  %v6036_v37 = vld [vmem:[%s6675_s14 + $0x104] ss:$8 sps:$4 sm:$0xff]   ;;  %v6038_v38 = vld [vmem:[%s6675_s14] ss:$8 sps:$4 sm:$0xff]  }
  0x1e   : > { %v6039_v39 = vld [vmem:[%s6675_s14 + $0x100] ss:$8 sps:$4 sm:$0xff]   ;;  %v6040_v40 = vld [vmem:[%s6675_s14 + $0xf4] ss:$8 sps:$4 sm:$0xff]   ;;  %v6044_v42 = vld [vmem:[%s6675_s14 + $0xf0] ss:$8 sps:$4 sm:$0xff]  }
  0x1f   : > { %1125 = vmatpush1.bf16.msra.mxu0 %v6014_v22  ;;  %v6042_v41 = vld [vmem:[%s6675_s14 + $0x1f4] ss:$8 sps:$4 sm:$0xff]   ;;  %v6045_v43 = vld [vmem:[%s6675_s14 + $0x1f0] ss:$8 sps:$4 sm:$0xff]   ;;  %v6046_v44 = vld [vmem:[%s6675_s14 + $0xe4] ss:$8 sps:$4 sm:$0xff]  }
  0x20   : > { %1168 = vmatpush1.bf16.msra.mxu1 %v6015_v23  ;;  %1126 = vmatprep.subr.bf16.mxu0 %v6016_v24  ;;  %v6048_v45 = vld [vmem:[%s6675_s14 + $0x1e4] ss:$8 sps:$4 sm:$0xff]   ;;  %v6050_v46 = vld [vmem:[%s6675_s14 + $0xe0] ss:$8 sps:$4 sm:$0xff]   ;;  %v6052_v48 = vld [vmem:[%s6675_s14 + $0xd4] ss:$8 sps:$4 sm:$0xff]  }
  0x21   : > { %1169 = vmatprep.subr.bf16.mxu1 %v6018_v25  ;;  %v6051_v47 = vld [vmem:[%s6675_s14 + $0x1e0] ss:$8 sps:$4 sm:$0xff]   ;;  %v6054_v49 = vld [vmem:[%s6675_s14 + $0x1d4] ss:$8 sps:$4 sm:$0xff]   ;;  %v6056_v50 = vld [vmem:[%s6675_s14 + $0xd0] ss:$8 sps:$4 sm:$0xff]  }
  0x22   : > { %v6057_v51 = vld [vmem:[%s6675_s14 + $0x1d0] ss:$8 sps:$4 sm:$0xff]   ;;  %v6058_v52 = vld [vmem:[%s6675_s14 + $0xc4] ss:$8 sps:$4 sm:$0xff]   ;;  %v6062_v54 = vld [vmem:[%s6675_s14 + $0xc0] ss:$8 sps:$4 sm:$0xff]  }
  0x23   : > { %1127 = vmatpush1.bf16.msra.mxu0 %v6020_v26  ;;  %v6060_v53 = vld [vmem:[%s6675_s14 + $0x1c4] ss:$8 sps:$4 sm:$0xff]   ;;  %v6063_v55 = vld [vmem:[%s6675_s14 + $0x1c0] ss:$8 sps:$4 sm:$0xff]   ;;  %v6064_v57 = vld [vmem:[%s6675_s14 + $0xb4] ss:$8 sps:$4 sm:$0xff]  }
  0x24   : > { %1170 = vmatpush1.bf16.msra.mxu1 %v6021_v27  ;;  %1128 = vmatprep.subr.bf16.mxu0 %v6022_v28  ;;  %v467_v56 = vld [vmem:[#allocation2 + $0x8] sm:$0xff]  ;;  %v473_v60 = vld [vmem:[#allocation2 + $0x18] sm:$0x1]  ;;  %v6066_v4 = vld [vmem:[%s6675_s14 + $0x1b4] ss:$8 sps:$4 sm:$0xff]  }
  0x25   : > { %1171 = vmatprep.subr.bf16.mxu1 %v6024_v29  ;;  %v469_v58 = vld [vmem:[#allocation2 + $0x28] sm:$0xff]  ;;  %v477_v63 = vld [vmem:[#allocation2 + $0x38] sm:$0x1]  ;;  %v491_v3 = vrot.slane %v473_v60, 1  ;;  %v444_v7 = vld [vmem:[%s6670_s11 + $0x10] sm:$0xff] }
  0x26   : > { %v471_v59 = vld [vmem:[#allocation2 + $0x8] sm:$0xfe]  ;;  %v537_v61 = vpack.c.bf16 %v469_v58, %v467_v56  ;;  %v497_v6 = vrot.slane %v477_v63, 1  ;;  %v452_v9 = vrot.slane %v444_v7, 7  ;;  %v6068_v10 = vld [vmem:[%s6675_s14 + $0xb0] ss:$8 sps:$4 sm:$0xff]  }
  0x27   : > { %1129 = vmatpush1.bf16.msra.mxu0 %v6026_v30  ;;  %v475_v62 = vld [vmem:[#allocation2 + $0x28] sm:$0xfe]  ;;  %v490_v2 = vrot.slane %v471_v59, 1  ;;  %v6069_v12 = vld [vmem:[%s6675_s14 + $0x1b0] ss:$8 sps:$4 sm:$0xff]  }
  0x28   : > { %1172 = vmatpush1.bf16.msra.mxu1 %v6027_v31  ;;  %1130 = vmatprep.subr.bf16.mxu0 %v6028_v32  ;;  %v496_v5 = vrot.slane %v475_v62, 1  ;;  %v6070_v13 = vld [vmem:[%s6675_s14 + $0xa4] ss:$8 sps:$4 sm:$0xff]   ;;  %462 = vst [vmem:[#allocation2 + $0x20] sm:$0xfe] %v452_v9 }
  0x29   : > { %1173 = vmatprep.subr.bf16.mxu1 %v6030_v33  ;;  %1150 = vmatprep.mubr.bf16.mxu0 %v537_v61  ;;  %v492_v8 = vsel %vm486_vm1, %v490_v2, %v491_v3  ;;  %464 = vst [vmem:[#allocation2 + $0x30] sm:$0x1] %v452_v9  ;;  %v6072_v15 = vld [vmem:[%s6675_s14 + $0x1a4] ss:$8 sps:$4 sm:$0xff]   ;;  %v6074_v16 = vld [vmem:[%s6675_s14 + $0xa0] ss:$8 sps:$4 sm:$0xff]  }
  0x2a   : > { %v498_v11 = vsel %vm486_vm1, %v496_v5, %v497_v6  ;;  %v6075_v17 = vld [vmem:[%s6675_s14 + $0x1a0] ss:$8 sps:$4 sm:$0xff]   ;;  %v6076_v18 = vld [vmem:[%s6675_s14 + $0x94] ss:$8 sps:$4 sm:$0xff]   ;;  %v472_v21 = vld [vmem:[#allocation2 + $0x10] sm:$0x1] }
  0x2b   : > { %1131 = vmatpush1.bf16.msra.mxu0 %v6032_v34  ;;  %v539_v14 = vpack.c.bf16 %v498_v11, %v492_v8  ;;  %v6078_v19 = vld [vmem:[%s6675_s14 + $0x194] ss:$8 sps:$4 sm:$0xff]   ;;  %v470_v20 = vld [vmem:[#allocation2] sm:$0xfe]  ;;  %v6080_v22 = vld [vmem:[%s6675_s14 + $0x90] ss:$8 sps:$4 sm:$0xff]  }
  0x2c   : > { %1174 = vmatpush1.bf16.msra.mxu1 %v6033_v35  ;;  %1132 = vmatprep.subr.bf16.mxu0 %v6034_v36  ;;  %v6081_v23 = vld [vmem:[%s6675_s14 + $0x190] ss:$8 sps:$4 sm:$0xff]   ;;  %v6082_v26 = vld [vmem:[%s6675_s14 + $0x84] ss:$8 sps:$4 sm:$0xff]   ;;  %v487_v27 = vrot.slane %v470_v20, 1  ;;  %v488_v28 = vrot.slane %v472_v21, 1 }
  0x2d   : > { %1175 = vmatprep.subr.bf16.mxu1 %v6036_v37  ;;  %1193 = vmatprep.mubr.bf16.mxu1 %v539_v14  ;;  %v6084_v31 = vld [vmem:[%s6675_s14 + $0x184] ss:$8 sps:$4 sm:$0xff]   ;;  %v6086_v32 = vld [vmem:[%s6675_s14 + $0x80] ss:$8 sps:$4 sm:$0xff]   ;;  %v6102_v59 = vld [vmem:[%s6675_s14 + $0x234] ss:$8 sps:$4 sm:$0xff]  }
  0x2e   : > { %v6087_v33 = vld [vmem:[%s6675_s14 + $0x180] ss:$8 sps:$4 sm:$0xff]   ;;  %v489_v36 = vsel %vm486_vm1, %v487_v27, %v488_v28  ;;  %v6100_v60 = vld [vmem:[%s6675_s14 + $0x230] ss:$8 sps:$4 sm:$0xff]   ;;  %v6105_v61 = vld [vmem:[%s6675_s14 + $0x224] ss:$8 sps:$4 sm:$0xff]  }
  0x2f   : > { %1133 = vmatpush1.bf16.msra.mxu0 %v6038_v38  ;;  %v474_v24 = vld [vmem:[#allocation2 + $0x20] sm:$0xfe]  ;;  %v6090_v38 = vld [vmem:[%s6675_s14 + $0x274] ss:$8 sps:$4 sm:$0xff]   ;;  %v6106_v2 = vld [vmem:[%s6675_s14 + $0x210] ss:$8 sps:$4 sm:$0xff]  }
  0x30   : > { %1176 = vmatpush1.bf16.msra.mxu1 %v6039_v39  ;;  %1134 = vmatprep.subr.bf16.mxu0 %v6040_v40  ;;  %v476_v25 = vld [vmem:[#allocation2 + $0x30] sm:$0x1]  ;;  %v493_v29 = vrot.slane %v474_v24, 1  ;;  %v466_v34 = vld [vmem:[#allocation2] sm:$0xff]  ;;  %v6108_v63 = vld [vmem:[%s6675_s14 + $0x214] ss:$8 sps:$4 sm:$0xff]  }
  0x31   : > { %1177 = vmatprep.subr.bf16.mxu1 %v6042_v41  ;;  %v494_v30 = vrot.slane %v476_v25, 1  ;;  %v468_v35 = vld [vmem:[#allocation2 + $0x20] sm:$0xff]  ;;  %v6088_v41 = vld [vmem:[%s6675_s14 + $0x270] ss:$8 sps:$4 sm:$0xff]   ;;  %v6114_v5 = vld [vmem:[%s6675_s14 + $0x2f4] ss:$8 sps:$4 sm:$0xff]  }
  0x32   : > { %v536_v39 = vpack.c.bf16 %v468_v35, %v466_v34  ;;  %v6103_v62 = vld [vmem:[%s6675_s14 + $0x220] ss:$8 sps:$4 sm:$0xff]   ;;  %v6111_v3 = vld [vmem:[%s6675_s14 + $0x204] ss:$8 sps:$4 sm:$0xff]   ;;  %v6112_v6 = vld [vmem:[%s6675_s14 + $0x2f0] ss:$8 sps:$4 sm:$0xff]  }
  0x33   : > { %1135 = vmatpush2.bf16.msra.mxu0 %v6044_v42  ;;  %v495_v37 = vsel %vm486_vm1, %v493_v29, %v494_v30  ;;  %v6093_v42 = vld [vmem:[%s6675_s14 + $0x264] ss:$8 sps:$4 sm:$0xff]   ;;  %v6115_v8 = vld [vmem:[%s6675_s14 + $0x2e0] ss:$8 sps:$4 sm:$0xff]   ;;  %v6120_v9 = vld [vmem:[%s6675_s14 + $0x2d4] ss:$8 sps:$4 sm:$0xff]  }
  0x34   : > { %1178 = vmatpush2.bf16.msra.mxu1 %v6045_v43  ;;  %1136 = vmatprep.subr.bf16.mxu0 %v6046_v44  ;;  %v538_v40 = vpack.c.bf16 %v495_v37, %v489_v36  ;;  %v6091_v43 = vld [vmem:[%s6675_s14 + $0x260] ss:$8 sps:$4 sm:$0xff]   ;;  %v6096_v44 = vld [vmem:[%s6675_s14 + $0x254] ss:$8 sps:$4 sm:$0xff]   ;;  %v6117_v7 = vld [vmem:[%s6675_s14 + $0x2e4] ss:$8 sps:$4 sm:$0xff]  }
  0x35   : > { %1179 = vmatprep.subr.bf16.mxu1 %v6048_v45  ;;  %v504_v45 = vld [vmem:[#allocation2 + $0x8] sm:$0xfc]  ;;  %v6124_v14 = vld [vmem:[%s6675_s14 + $0x2b0] ss:$8 sps:$4 sm:$0xff]   ;;  %v507_v20 = vld [vmem:[#allocation2 + $0x20] sm:$0xfc] }
  0x36   : > { %v6123_v11 = vld [vmem:[%s6675_s14 + $0x2c4] ss:$8 sps:$4 sm:$0xff]   ;;  %v509_v21 = vld [vmem:[#allocation2 + $0x30] sm:$0x3]  ;;  %v6133_v28 = vld [vmem:[%s6675_s14 + $0x280] ss:$8 sps:$4 sm:$0xff]  }
  0x37   : > { %1137 = vmatpush2.bf16.msra.mxu0 %v6050_v46  ;;  %v506_v46 = vld [vmem:[#allocation2 + $0x18] sm:$0x3]  ;;  %v527_v27 = vrot.slane %v509_v21, 2  ;;  %v6798_v34 = vld [vmem:[%s7689_s6 + $0xf0] sm:$0xff]  ;;  %v6810_v36 = vld [vmem:[%s7689_s6 + $0xe8] sm:$0xff] }
  0x38   : > { %1180 = vmatpush2.bf16.msra.mxu1 %v6051_v47  ;;  %1138 = vmatprep.subr.bf16.mxu0 %v6052_v48  ;;  %v508_v47 = vld [vmem:[#allocation2 + $0x28] sm:$0xfc]  ;;  %v510_v48 = vld [vmem:[#allocation2 + $0x38] sm:$0x3]  ;;  %v6804_v35 = vld [vmem:[%s7689_s6 + $0x70] sm:$0xff] }
  0x39   : > { %1181 = vmatprep.subr.bf16.mxu1 %v6054_v49  ;;  %v523_v49 = vrot.slane %v504_v45, 2  ;;  %v6818_v37 = vld [vmem:[%s7689_s6 + $0x68] sm:$0xff] }
  0x3a   : > { %v6866_v45 = vld [vmem:[%s7689_s6 + $0x48] sm:$0xff] }
  0x3b   : > { %1139 = vmatpush2.bf16.msra.mxu0 %v6056_v50  ;;  %v524_v50 = vrot.slane %v506_v46, 2  ;;  %v6872_v46 = vld [vmem:[%s7689_s6 + $0xc0] sm:$0xff] }
  0x3c   : > { %1182 = vmatpush2.bf16.msra.mxu1 %v6057_v51  ;;  %1140 = vmatprep.subr.bf16.mxu0 %v6058_v52  ;;  %v529_v51 = vrot.slane %v508_v47, 2  ;;  %v530_v52 = vrot.slane %v510_v48, 2  ;;  %v6878_v47 = vld [vmem:[%s7689_s6 + $0x40] sm:$0xff]  ;;  %v6884_v48 = vld [vmem:[%s7689_s6 + $0xb8] sm:$0xff] }
  0x3d   : > { %1183 = vmatprep.subr.bf16.mxu1 %v6060_v53  ;;  %v6094_v53 = vld [vmem:[%s6675_s14 + $0x250] ss:$8 sps:$4 sm:$0xff]  }
  0x3e   : > { %v531_v56 = vsel %vm519_vm2, %v529_v51, %v530_v52  ;;  %v6902_v51 = vld [vmem:[%s7689_s6 + $0x30] sm:$0xff]  ;;  %v6908_v52 = vld [vmem:[%s7689_s6 + $0xa8] sm:$0xff] }
  0x3f   : > { %1141 = vmatpush2.bf16.msra.mxu0 %v6062_v54  ;;  %v6099_v54 = vld [vmem:[%s6675_s14 + $0x244] ss:$8 sps:$4 sm:$0xff]  }
  0x40   : > { %1184 = vmatpush2.bf16.msra.mxu1 %v6063_v55  ;;  %1142 = vmatprep.subr.bf16.mxu0 %v6064_v57  ;;  %v525_v55 = vsel %vm519_vm2, %v523_v49, %v524_v50  ;;  %v6097_v57 = vld [vmem:[%s6675_s14 + $0x240] ss:$8 sps:$4 sm:$0xff]   ;;  %v6890_v49 = vld [vmem:[%s7689_s6 + $0x38] sm:$0xff]  ;;  %v6896_v50 = vld [vmem:[%s7689_s6 + $0xb0] sm:$0xff] }
  0x41   : > { %1185 = vmatprep.subr.bf16.mxu1 %v6066_v4  ;;  %v541_v58 = vpack.c.bf16 %v531_v56, %v525_v55  ;;  %v6109_v4 = vld [vmem:[%s6675_s14 + $0x200] ss:$8 sps:$4 sm:$0xff]   ;;  %v6930_v56 = vld [vmem:[%s7689_s6 + $0x98] sm:$0xff] }
  0x42   : > { %v6924_v55 = vld [vmem:[%s7689_s6 + $0x20] sm:$0xff] }
  0x43   : > { %1143 = vmatpush2.bf16.msra.mxu0 %v6068_v10  ;;  %v6118_v10 = vld [vmem:[%s6675_s14 + $0x2d0] ss:$8 sps:$4 sm:$0xff]  }
  0x44   : > { %1186 = vmatpush2.bf16.msra.mxu1 %v6069_v12  ;;  %1144 = vmatprep.subr.bf16.mxu0 %v6070_v13  ;;  %v6121_v12 = vld [vmem:[%s6675_s14 + $0x2c0] ss:$8 sps:$4 sm:$0xff]   ;;  %v6126_v13 = vld [vmem:[%s6675_s14 + $0x2b4] ss:$8 sps:$4 sm:$0xff]  }
  0x45   : > { %1187 = vmatprep.subr.bf16.mxu1 %v6072_v15  ;;  %v6129_v15 = vld [vmem:[%s6675_s14 + $0x2a4] ss:$8 sps:$4 sm:$0xff]  }
  0x47   : > { %1145 = vmatpush2.bf16.msra.mxu0 %v6074_v16  ;;  %v6127_v16 = vld [vmem:[%s6675_s14 + $0x2a0] ss:$8 sps:$4 sm:$0xff]  }
  0x48   : > { %1188 = vmatpush2.bf16.msra.mxu1 %v6075_v17  ;;  %1146 = vmatprep.subr.bf16.mxu0 %v6076_v18  ;;  %v503_v17 = vld [vmem:[#allocation2] sm:$0xfc]  ;;  %v6132_v18 = vld [vmem:[%s6675_s14 + $0x294] ss:$8 sps:$4 sm:$0xff]  }
  0x49   : > { %1189 = vmatprep.subr.bf16.mxu1 %v6078_v19  ;;  %v505_v19 = vld [vmem:[#allocation2 + $0x10] sm:$0x3]  ;;  %v520_v24 = vrot.slane %v503_v17, 2 }
  0x4a   : > { %v521_v25 = vrot.slane %v505_v19, 2 }
  0x4b   : > { %1147 = vmatpush2.bf16.msra.mxu0 %v6080_v22  ;;  %v6130_v22 = vld [vmem:[%s6675_s14 + $0x290] ss:$8 sps:$4 sm:$0xff]  }
  0x4c   : > { %1190 = vmatpush2.bf16.msra.mxu1 %v6081_v23  ;;  %1148 = vmatprep.subr.bf16.mxu0 %v6082_v26  ;;  %v6135_v23 = vld [vmem:[%s6675_s14 + $0x284] ss:$8 sps:$4 sm:$0xff]   ;;  %v526_v26 = vrot.slane %v507_v20, 2  ;;  %v522_v29 = vsel %vm519_vm2, %v520_v24, %v521_v25 }
  0x4d   : > { %1191 = vmatprep.subr.bf16.mxu1 %v6084_v31 }
  0x4e   : > { %v528_v30 = vsel %vm519_vm2, %v526_v26, %v527_v27 }
  0x4f   : > { %1149 = vmatpush2.bf16.msra.mxu0 %v6086_v32  ;;  %v540_v31 = vpack.c.bf16 %v528_v30, %v522_v29  ;;  %v6788_v32 = vld [vmem:[%s7689_s6 + $0xf8] sm:$0xff] }
  0x50   : > { %1192 = vmatpush2.bf16.msra.mxu1 %v6087_v33  ;;  %1204 = vmatprep.subr.bf16.mxu0 %v6090_v38  ;;  %v6793_v33 = vld [vmem:[%s7689_s6 + $0x78] sm:$0xff]  ;;  %v6824_v38 = vld [vmem:[%s7689_s6 + $0xe0] sm:$0xff] }
  0x51   : > { %5701 = vmatprep.subr.mxu1 %v6788_v32 }
  0x52   : > { %1151 = vmatmul.mubr.bf16.vlgmr.msra.gmra.mxu0 %v536_v39  ;;  %v6830_v39 = vld [vmem:[%s7689_s6 + $0x60] sm:$0xff] }
  0x53   : > { %1194 = vmatmul.mubr.bf16.vlgmr.msra.gmra.mxu1 %v538_v40  ;;  %1205 = vmatpush1.bf16.msra.mxu0 %v6088_v41  ;;  %v6836_v40 = vld [vmem:[%s7689_s6 + $0xd8] sm:$0xff] }
  0x54   : > { %1206 = vmatprep.subr.bf16.mxu0 %v6093_v42  ;;  %1236 = vmatprep.mubr.bf16.mxu0 %v541_v58  ;;  %v6842_v41 = vld [vmem:[%s7689_s6 + $0x58] sm:$0xff]  ;;  %v6848_v42 = vld [vmem:[%s7689_s6 + $0xd0] sm:$0xff] }
  0x55   : > { %5702 = vmatpush3.msra.mxu1 %v6793_v33  ;;  %v6942_v58 = vld [vmem:[%s7689_s6 + $0x90] sm:$0xff] }
  0x56   : > { %5703 = vmatprep.subr.mxu1 %v6798_v34 }
  0x57   : > { %1207 = vmatpush1.bf16.msra.mxu0 %v6091_v43  ;;  %5704 = vmatpush3.msra.mxu1 %v6804_v35  ;;  %v6854_v43 = vld [vmem:[%s7689_s6 + $0x50] sm:$0xff] }
  0x58   : > { %1208 = vmatprep.subr.bf16.mxu0 %v6096_v44  ;;  %5705 = vmatprep.subr.mxu1 %v6810_v36  ;;  %v6860_v44 = vld [vmem:[%s7689_s6 + $0xc8] sm:$0xff] }
  0x59   : > { %5706 = vmatpush3.msra.mxu1 %v6818_v37 }
  0x5a   : > { %5707 = vmatprep.subr.mxu1 %v6824_v38 }
  0x5b   : > { %1209 = vmatpush1.bf16.msra.mxu0 %v6094_v53  ;;  %5708 = vmatpush3.msra.mxu1 %v6830_v39  ;;  %v6914_v53 = vld [vmem:[%s7689_s6 + $0x28] sm:$0xff] }
  0x5c   : > { %1210 = vmatprep.subr.bf16.mxu0 %v6099_v54  ;;  %5709 = vmatprep.subr.mxu1 %v6836_v40  ;;  %v6919_v54 = vld [vmem:[%s7689_s6 + $0xa0] sm:$0xff] }
  0x5d   : > { %5710 = vmatpush3.msra.mxu1 %v6842_v41 }
  0x5e   : > { %5711 = vmatprep.subr.mxu1 %v6848_v42 }
  0x5f   : > { %1211 = vmatpush1.bf16.msra.mxu0 %v6097_v57  ;;  %5712 = vmatpush3.msra.mxu1 %v6854_v43  ;;  %v6936_v57 = vld [vmem:[%s7689_s6 + $0x18] sm:$0xff] }
  0x60   : > { %1212 = vmatprep.subr.bf16.mxu0 %v6102_v59  ;;  %5713 = vmatprep.subr.mxu1 %v6860_v44  ;;  %v6948_v59 = vld [vmem:[%s7689_s6 + $0x10] sm:$0xff] }
  0x61   : > { %5714 = vmatpush3.msra.mxu1 %v6866_v45 }
  0x62   : > { %5715 = vmatprep.subr.mxu1 %v6872_v46 }
  0x63   : > { %1213 = vmatpush1.bf16.msra.mxu0 %v6100_v60  ;;  %5716 = vmatpush3.msra.mxu1 %v6878_v47  ;;  %v6954_v60 = vld [vmem:[%s7689_s6 + $0x88] sm:$0xff] }
  0x64   : > { %1214 = vmatprep.subr.bf16.mxu0 %v6105_v61  ;;  %5717 = vmatprep.subr.mxu1 %v6884_v48  ;;  %v6960_v61 = vld [vmem:[%s7689_s6 + $0x8] sm:$0xff] }
  0x65   : > { %5718 = vmatpush3.msra.mxu1 %v6890_v49 }
  0x66   : > { %5719 = vmatprep.subr.mxu1 %v6896_v50 }
  0x67   : > { %1215 = vmatpush1.bf16.msra.mxu0 %v6103_v62  ;;  %5720 = vmatpush3.msra.mxu1 %v6902_v51  ;;  %v6966_v62 = vld [vmem:[%s7689_s6 + $0x80] sm:$0xff] }
  0x68   : > { %1216 = vmatprep.subr.bf16.mxu0 %v6108_v63  ;;  %5721 = vmatprep.subr.mxu1 %v6908_v52  ;;  %v6972_v63 = vld [vmem:[%s7689_s6] sm:$0xff] }
  0x69   : > { %5722 = vmatpush3.msra.mxu1 %v6914_v53 }
  0x6a   : > { %5723 = vmatprep.subr.mxu1 %v6919_v54 }
  0x6b   : > { %1217 = vmatpush1.bf16.msra.mxu0 %v6106_v2  ;;  %5724 = vmatpush3.msra.mxu1 %v6924_v55 }
  0x6c   : > { %1218 = vmatprep.subr.bf16.mxu0 %v6111_v3  ;;  %5725 = vmatprep.subr.mxu1 %v6930_v56 }
  0x6d   : > { %5726 = vmatpush3.msra.mxu1 %v6936_v57 }
  0x6e   : > { %5727 = vmatprep.subr.mxu1 %v6942_v58 }
  0x6f   : > { %1219 = vmatpush1.bf16.msra.mxu0 %v6109_v4  ;;  %5728 = vmatpush3.msra.mxu1 %v6948_v59 }
  0x70   : > { %1220 = vmatprep.subr.bf16.mxu0 %v6114_v5  ;;  %5729 = vmatprep.subr.mxu1 %v6954_v60 }
  0x71   : > { %5730 = vmatpush3.msra.mxu1 %v6960_v61 }
  0x72   : > { %5731 = vmatprep.subr.mxu1 %v6966_v62 }
  0x73   : > { %1221 = vmatpush2.bf16.msra.mxu0 %v6112_v6  ;;  %5732 = vmatpush3.msra.mxu1 %v6972_v63 }
  0x74   : > { %1222 = vmatprep.subr.bf16.mxu0 %v6117_v7 }
  0x77   : > { %1223 = vmatpush2.bf16.msra.mxu0 %v6115_v8 }
  0x78   : > { %1224 = vmatprep.subr.bf16.mxu0 %v6120_v9 }
  0x7b   : > { %1225 = vmatpush2.bf16.msra.mxu0 %v6118_v10 }
  0x7c   : > { %1226 = vmatprep.subr.bf16.mxu0 %v6123_v11 }
  0x7f   : > { %1227 = vmatpush2.bf16.msra.mxu0 %v6121_v12 }
  0x80   : > { %1228 = vmatprep.subr.bf16.mxu0 %v6126_v13 }
  0x83   : > { %1229 = vmatpush2.bf16.msra.mxu0 %v6124_v14 }
  0x84   : > { %1230 = vmatprep.subr.bf16.mxu0 %v6129_v15 }
  0x87   : > { %1231 = vmatpush2.bf16.msra.mxu0 %v6127_v16 }
  0x88   : > { %1232 = vmatprep.subr.bf16.mxu0 %v6132_v18 }
  0x8b   : > { %1233 = vmatpush2.bf16.msra.mxu0 %v6130_v22 }
  0x8c   : > { %1234 = vmatprep.subr.bf16.mxu0 %v6135_v23 }
  0x8f   : > { %1235 = vmatpush2.bf16.msra.mxu0 %v6133_v28 }
  0x92   : > { %1237 = vmatmul.mubr.bf16.vlgmr.msra.gmra.mxu0 %v540_v31 }
 0x112   : > { %v1152_v2 = vpop.f32.mrf.mxu0 }
 0x113   : > { %v1195_v3 = vpop.f32.mrf.mxu1 }
 0x114   : > { %v1154_v4 = vpop.f32.mrf.mxu0  ;;  %v1196_v10 = vadd.f32 %v1195_v3, %v1152_v2 }
 0x115   : > { %v1197_v5 = vpop.f32.mrf.mxu1 }
 0x116   : > { %v1156_v6 = vpop.f32.mrf.mxu0  ;;  %v1198_v11 = vadd.f32 %v1197_v5, %v1154_v4 }
 0x117   : > { %v1199_v7 = vpop.f32.mrf.mxu1 }
 0x118   : > { %v1158_v8 = vpop.f32.mrf.mxu0  ;;  %v1200_v14 = vadd.f32 %v1199_v7, %v1156_v6 }
 0x119   : > { %v1201_v12 = vpop.f32.mrf.mxu1 }
 0x11a   : > { %v1202_v18 = vadd.f32 %v1201_v12, %v1158_v8 }
 0x152   : > { %v1238_v9 = vpop.f32.mrf.mxu0 }
 0x153   : > { %v6977_v15 = vadd.f32 %v1238_v9, %v1196_v10 }
 0x154   : > { %v1240_v13 = vpop.f32.mrf.mxu0 }
 0x155   : > { %v6979_v16 = vadd.f32 %v1240_v13, %v1198_v11  ;;  %v1261_v21 = vmul.f32 %v6977_v15, %v6977_v15 }
 0x156   : > { %v1242_v17 = vpop.f32.mrf.mxu0 }
 0x157   : > { %v6981_v19 = vadd.f32 %v1242_v17, %v1200_v14  ;;  %v1262_v25 = vmul.f32 %v6979_v16, %v6979_v16 }
 0x158   : > { %v1244_v20 = vpop.f32.mrf.mxu0 }
 0x159   : > { %v1247_v22 = vadd.f32 %v6981_v19, %v6977_v15  ;;  %v1263_v23 = vmul.f32 %v6981_v19, %v6981_v19  ;;  %v6989_v24 = vadd.f32 %v1244_v20, %v1202_v18 }
 0x15b   : > { %v1248_v26 = vrot.slane %v1247_v22, 4  ;;  %v1265_v27 = vadd.f32 %v1263_v23, %v1261_v21  ;;  %v1254_v28 = vadd.f32 %v6989_v24, %v6979_v16  ;;  %v1264_v29 = vmul.f32 %v6989_v24, %v6989_v24 }
 0x15d   : > { %v1249_v30 = vadd.f32 %v1248_v26, %v1247_v22  ;;  %v1266_v31 = vrot.slane %v1265_v27, 4  ;;  %v1255_v2 = vrot.slane %v1254_v28, 4  ;;  %v1272_v3 = vadd.f32 %v1264_v29, %v1262_v25 }
 0x15f   : > { %v1250_v4 = vrot.slane %v1249_v30, 2  ;;  %v1267_v5 = vadd.f32 %v1266_v31, %v1265_v27  ;;  %v1256_v6 = vadd.f32 %v1255_v2, %v1254_v28  ;;  %v1273_v7 = vrot.slane %v1272_v3, 4  ;;  %v7008_v31 = vld [vmem:[%s7690_s7] sm:$0xff]  ;;  %v6138_v2 = vld [vmem:[%s6675_s14 + $0x374] ss:$8 sps:$4 sm:$0xff]  }
 0x161   : > { %v1268_v8 = vrot.slane %v1267_v5, 2  ;;  %v1257_v9 = vrot.slane %v1256_v6, 2  ;;  %v1274_v10 = vadd.f32 %v1273_v7, %v1272_v3  ;;  %v1251_v11 = vadd.f32 %v1250_v4, %v1249_v30  ;;  %v7003_v30 = vld [vmem:[%s7690_s7 + $0x8] sm:$0xff]  ;;  %v6142_v3 = vld [vmem:[%s6675_s14 + $0x470] ss:$8 sps:$4 sm:$0xff]  }
 0x162   : > { %1405 = vmatprep.subr.mxu1 %v7003_v30  ;;  %v6144_v4 = vld [vmem:[%s6675_s14 + $0x474] ss:$8 sps:$4 sm:$0xff]   ;;  %v6154_v7 = vld [vmem:[%s6675_s14 + $0x450] ss:$8 sps:$4 sm:$0xff]  }
 0x163   : > { %v1258_v12 = vadd.f32 %v1257_v9, %v1256_v6  ;;  %v1275_v13 = vrot.slane %v1274_v10, 2  ;;  %v1269_v14 = vadd.f32 %v1268_v8, %v1267_v5  ;;  %v1252_v21 = vrot.slane %v1251_v11, 1  ;;  %2188 = vmatprep.subr.bf16.mxu0 %v6144_v4  ;;  %v6148_v5 = vld [vmem:[%s6675_s14 + $0x460] ss:$8 sps:$4 sm:$0xff]   ;;  %v6150_v6 = vld [vmem:[%s6675_s14 + $0x464] ss:$8 sps:$4 sm:$0xff]  }
 0x164   : > { %2189 = vmatpush1.bf16.msra.mxu0 %v6142_v3  ;;  %v6156_v8 = vld [vmem:[%s6675_s14 + $0x454] ss:$8 sps:$4 sm:$0xff]   ;;  %v6160_v9 = vld [vmem:[%s6675_s14 + $0x440] ss:$8 sps:$4 sm:$0xff]  }
 0x165   : > { %v1259_v17 = vrot.slane %v1258_v12, 1  ;;  %v1276_v18 = vadd.f32 %v1275_v13, %v1274_v10  ;;  %v1270_v20 = vrot.slane %v1269_v14, 1  ;;  %v1253_v27 = vadd.f32 %v1252_v21, %v1251_v11  ;;  %2190 = vmatprep.subr.bf16.mxu0 %v6150_v6  ;;  %v6162_v10 = vld [vmem:[%s6675_s14 + $0x444] ss:$8 sps:$4 sm:$0xff]   ;;  %v6166_v11 = vld [vmem:[%s6675_s14 + $0x430] ss:$8 sps:$4 sm:$0xff]  }
 0x166   : > { %v6172_v13 = vld [vmem:[%s6675_s14 + $0x420] ss:$8 sps:$4 sm:$0xff]   ;;  %v6186_v21 = vld [vmem:[%s6675_s14 + $0x404] ss:$8 sps:$4 sm:$0xff]  }
 0x167   : > { %v1277_v22 = vrot.slane %v1276_v18, 1  ;;  %v1271_v23 = vadd.f32 %v1270_v20, %v1269_v14  ;;  %v1260_v25 = vadd.f32 %v1259_v17, %v1258_v12  ;;  %v6168_v12 = vld [vmem:[%s6675_s14 + $0x434] ss:$8 sps:$4 sm:$0xff]   ;;  %v6174_v14 = vld [vmem:[%s6675_s14 + $0x424] ss:$8 sps:$4 sm:$0xff]  }
 0x168   : > { %2191 = vmatpush1.bf16.msra.mxu0 %v6148_v5  ;;  %v6178_v17 = vld [vmem:[%s6675_s14 + $0x410] ss:$8 sps:$4 sm:$0xff]   ;;  %v6184_v20 = vld [vmem:[%s6675_s14 + $0x400] ss:$8 sps:$4 sm:$0xff]  }
 0x169   : > { %v1278_v26 = vadd.f32 %v1277_v22, %v1276_v18  ;;  %v1280_v29 = vsel %vm1279_vm3, %v1253_v27, %v1271_v23  ;;  %2192 = vmatprep.subr.bf16.mxu0 %v6156_v8  ;;  %v6180_v18 = vld [vmem:[%s6675_s14 + $0x414] ss:$8 sps:$4 sm:$0xff]   ;;  %v6190_v22 = vld [vmem:[%s6675_s14 + $0x4f0] ss:$8 sps:$4 sm:$0xff]  }
 0x16a   : > { %v6192_v23 = vld [vmem:[%s6675_s14 + $0x4f4] ss:$8 sps:$4 sm:$0xff]  }
 0x16b   : > { %v1281_v28 = vsel %vm1279_vm3, %v1260_v25, %v1278_v26  ;;  %v6196_v25 = vld [vmem:[%s6675_s14 + $0x4e0] ss:$8 sps:$4 sm:$0xff]   ;;  %v6198_v26 = vld [vmem:[%s6675_s14 + $0x4e4] ss:$8 sps:$4 sm:$0xff]  }
 0x16c   : > { %1346 = vmatprep.mubr.f32.mxu1 %v1281_v28  ;;  %2193 = vmatpush1.bf16.msra.mxu0 %v6154_v7  ;;  %v1357_v7 = vld [vmem:[%s7037_s13] sm:$0x1] }
 0x16d   : > { %1347 = vmatmul.mubr.f32.vlgmr.msra.gmra.mxu1 %v1280_v29  ;;  %2194 = vmatprep.subr.bf16.mxu0 %v6162_v10  ;;  %v1364_v10 = vld [vmem:[%s7043_s17] sm:$0x1] }
 0x16e   : > { %1439 = vmatprep.mubr.f32.mxu1 %v6604_v1  ;;  %1406 = vmatpush1.msra.mxu1 %v7008_v31 }
 0x16f   : > { %2145 = vmatprep.subr.bf16.mxu1 %v6138_v2 }
 0x170   : > { %2195 = vmatpush1.bf16.msra.mxu0 %v6160_v9 }
 0x171   : > { %2196 = vmatprep.subr.bf16.mxu0 %v6168_v12 }
 0x174   : > { %2197 = vmatpush1.bf16.msra.mxu0 %v6166_v11 }
 0x175   : > { %2198 = vmatprep.subr.bf16.mxu0 %v6174_v14  ;;  %v6136_v14 = vld [vmem:[%s6675_s14 + $0x370] ss:$8 sps:$4 sm:$0xff]  }
 0x178   : > { %2199 = vmatpush1.bf16.msra.mxu0 %v6172_v13 }
 0x179   : > { %2200 = vmatprep.subr.bf16.mxu0 %v6180_v18 }
 0x17c   : > { %2201 = vmatpush1.bf16.msra.mxu0 %v6178_v17  ;;  %v6141_v17 = vld [vmem:[%s6675_s14 + $0x364] ss:$8 sps:$4 sm:$0xff]  }
 0x17d   : > { %2202 = vmatprep.subr.bf16.mxu0 %v6186_v21  ;;  %v6147_v21 = vld [vmem:[%s6675_s14 + $0x354] ss:$8 sps:$4 sm:$0xff]  }
 0x180   : > { %2203 = vmatpush1.bf16.msra.mxu0 %v6184_v20  ;;  %v6139_v20 = vld [vmem:[%s6675_s14 + $0x360] ss:$8 sps:$4 sm:$0xff]  }
 0x181   : > { %2204 = vmatprep.subr.bf16.mxu0 %v6192_v23  ;;  %v6153_v23 = vld [vmem:[%s6675_s14 + $0x344] ss:$8 sps:$4 sm:$0xff]  }
 0x184   : > { %2205 = vmatpush2.bf16.msra.mxu0 %v6190_v22  ;;  %v6145_v22 = vld [vmem:[%s6675_s14 + $0x350] ss:$8 sps:$4 sm:$0xff]  }
 0x185   : > { %2206 = vmatprep.subr.bf16.mxu0 %v6198_v26  ;;  %v6159_v26 = vld [vmem:[%s6675_s14 + $0x334] ss:$8 sps:$4 sm:$0xff]  }
 0x188   : > { %2207 = vmatpush2.bf16.msra.mxu0 %v6196_v25  ;;  %v6151_v25 = vld [vmem:[%s6675_s14 + $0x340] ss:$8 sps:$4 sm:$0xff]  }
 0x22d   : > { %v5733_v27 = vpop.f32.mrf.mxu1 }
 0x22f   : > { %v5734_v28 = vpop.f32.mrf.mxu1 }
 0x230   : > { %v5735_v29 = vadd.f32 %v5734_v28, %v5733_v27  ;;  %v6157_v27 = vld [vmem:[%s6675_s14 + $0x330] ss:$8 sps:$4 sm:$0xff]   ;;  %v6165_v28 = vld [vmem:[%s6675_s14 + $0x324] ss:$8 sps:$4 sm:$0xff]  }
 0x232   : > { %v1352_v2 = vmul.f32 %v5735_v29, %v5735_v29 }
 0x234   : > { %v1354_v3 = vrot.slane %v1352_v2, 7  ;;  %v6171_v2 = vld [vmem:[%s6675_s14 + $0x314] ss:$8 sps:$4 sm:$0xff]  }
 0x236   : > { %v1356_v4 = vsub.f32 %v5735_v29, %v1354_v3  ;;  %v6169_v3 = vld [vmem:[%s6675_s14 + $0x310] ss:$8 sps:$4 sm:$0xff]  }
 0x238   : > { %v1358_v5 = vadd.f32 1e-05, %v1356_v4  ;;  %v6177_v4 = vld [vmem:[%s6675_s14 + $0x304] ss:$8 sps:$4 sm:$0xff]  }
 0x23a   : > { %6552 = vrsqrt.f32 %v1358_v5  ;;  %v6175_v5 = vld [vmem:[%s6675_s14 + $0x300] ss:$8 sps:$4 sm:$0xff]  }
 0x247   : > { %v6553_v6 = vpop.eup %6552 }
 0x248   : > { %v1361_v8 = vrot.slane %v6553_v6, 1  ;;  %v6183_v6 = vld [vmem:[%s6675_s14 + $0x3f4] ss:$8 sps:$4 sm:$0xff]  }
 0x24a   : > { %v1363_v9 = vmul.f32 %v1361_v8, %v1357_v7  ;;  %v6181_v7 = vld [vmem:[%s6675_s14 + $0x3f0] ss:$8 sps:$4 sm:$0xff]   ;;  %v6189_v8 = vld [vmem:[%s6675_s14 + $0x3e4] ss:$8 sps:$4 sm:$0xff]  }
 0x24c   : > { %v1365_v11 = vmul.f32 %v5735_v29, %v1363_v9  ;;  %v6163_v29 = vld [vmem:[%s6675_s14 + $0x320] ss:$8 sps:$4 sm:$0xff]  }
 0x24e   : > { %v1366_v12 = vsub.f32 %v1364_v10, %v1365_v11  ;;  %v6195_v10 = vld [vmem:[%s6675_s14 + $0x3d4] ss:$8 sps:$4 sm:$0xff]   ;;  %v6193_v11 = vld [vmem:[%s6675_s14 + $0x3d0] ss:$8 sps:$4 sm:$0xff]  }
 0x250   : > { %v1368_v13 = vrot.slane %v1366_v12, 7  ;;  %v6201_v12 = vld [vmem:[%s6675_s14 + $0x3c4] ss:$8 sps:$4 sm:$0xff]  }
 0x252   : > { %v1370_v18 = vsel %vm1279_vm3, %v1363_v9, %v1368_v13  ;;  %v6187_v9 = vld [vmem:[%s6675_s14 + $0x3e0] ss:$8 sps:$4 sm:$0xff]   ;;  %v6204_v13 = vld [vmem:[%s6675_s14 + $0x4d4] ss:$8 sps:$4 sm:$0xff]  }
 0x253   : > { %5181 = vmatmul.mubr.msk.f32.vlgmr.msra.gmra.mxu1 %vm1371_vm4, %v1370_v18  ;;  %2208 = vmatprep.subr.bf16.mxu0 %v6204_v13  ;;  %v6207_v18 = vld [vmem:[%s6675_s14 + $0x3b4] ss:$8 sps:$4 sm:$0xff]  }
 0x254   : > { %2146 = vmatpush1.bf16.msra.mxu1 %v6136_v14  ;;  %v6199_v14 = vld [vmem:[%s6675_s14 + $0x3c0] ss:$8 sps:$4 sm:$0xff]  }
 0x255   : > { %2147 = vmatprep.subr.bf16.mxu1 %v6141_v17  ;;  %v6202_v17 = vld [vmem:[%s6675_s14 + $0x4d0] ss:$8 sps:$4 sm:$0xff]  }
 0x256   : > { %2209 = vmatpush2.bf16.msra.mxu0 %v6202_v17 }
 0x258   : > { %2148 = vmatpush1.bf16.msra.mxu1 %v6139_v20  ;;  %v6210_v20 = vld [vmem:[%s6675_s14 + $0x4c4] ss:$8 sps:$4 sm:$0xff]  }
 0x259   : > { %2149 = vmatprep.subr.bf16.mxu1 %v6147_v21  ;;  %v6205_v21 = vld [vmem:[%s6675_s14 + $0x3b0] ss:$8 sps:$4 sm:$0xff]   ;;  %2210 = vmatprep.subr.bf16.mxu0 %v6210_v20 }
 0x25c   : > { %2150 = vmatpush1.bf16.msra.mxu1 %v6145_v22  ;;  %v6208_v22 = vld [vmem:[%s6675_s14 + $0x4c0] ss:$8 sps:$4 sm:$0xff]  }
 0x25d   : > { %2151 = vmatprep.subr.bf16.mxu1 %v6153_v23  ;;  %2211 = vmatpush2.bf16.msra.mxu0 %v6208_v22  ;;  %v6213_v23 = vld [vmem:[%s6675_s14 + $0x3a4] ss:$8 sps:$4 sm:$0xff]  }
 0x260   : > { %2152 = vmatpush1.bf16.msra.mxu1 %v6151_v25  ;;  %v6216_v25 = vld [vmem:[%s6675_s14 + $0x4b4] ss:$8 sps:$4 sm:$0xff]  }
 0x261   : > { %2153 = vmatprep.subr.bf16.mxu1 %v6159_v26  ;;  %v6211_v26 = vld [vmem:[%s6675_s14 + $0x3a0] ss:$8 sps:$4 sm:$0xff]   ;;  %2212 = vmatprep.subr.bf16.mxu0 %v6216_v25 }
 0x264   : > { %2154 = vmatpush1.bf16.msra.mxu1 %v6157_v27  ;;  %v6214_v27 = vld [vmem:[%s6675_s14 + $0x4b0] ss:$8 sps:$4 sm:$0xff]  }
 0x265   : > { %2155 = vmatprep.subr.bf16.mxu1 %v6165_v28  ;;  %2213 = vmatpush2.bf16.msra.mxu0 %v6214_v27  ;;  %v6217_v28 = vld [vmem:[%s6675_s14 + $0x390] ss:$8 sps:$4 sm:$0xff]  }
 0x268   : > { %2156 = vmatpush1.bf16.msra.mxu1 %v6163_v29  ;;  %v6219_v29 = vld [vmem:[%s6675_s14 + $0x394] ss:$8 sps:$4 sm:$0xff]  }
 0x269   : > { %2157 = vmatprep.subr.bf16.mxu1 %v6171_v2  ;;  %v6220_v2 = vld [vmem:[%s6675_s14 + $0x4a0] ss:$8 sps:$4 sm:$0xff]  }
 0x26c   : > { %2158 = vmatpush1.bf16.msra.mxu1 %v6169_v3  ;;  %v6222_v3 = vld [vmem:[%s6675_s14 + $0x4a4] ss:$8 sps:$4 sm:$0xff]  }
 0x26d   : > { %2159 = vmatprep.subr.bf16.mxu1 %v6177_v4  ;;  %v6225_v4 = vld [vmem:[%s6675_s14 + $0x384] ss:$8 sps:$4 sm:$0xff]   ;;  %2214 = vmatprep.subr.bf16.mxu0 %v6222_v3 }
 0x26e   : > { %2215 = vmatpush2.bf16.msra.mxu0 %v6220_v2 }
 0x270   : > { %2160 = vmatpush1.bf16.msra.mxu1 %v6175_v5  ;;  %v6228_v5 = vld [vmem:[%s6675_s14 + $0x494] ss:$8 sps:$4 sm:$0xff]  }
 0x271   : > { %2161 = vmatprep.subr.bf16.mxu1 %v6183_v6  ;;  %v6223_v6 = vld [vmem:[%s6675_s14 + $0x380] ss:$8 sps:$4 sm:$0xff]   ;;  %2216 = vmatprep.subr.bf16.mxu0 %v6228_v5 }
 0x274   : > { %2162 = vmatpush2.bf16.msra.mxu1 %v6181_v7  ;;  %v6226_v7 = vld [vmem:[%s6675_s14 + $0x490] ss:$8 sps:$4 sm:$0xff]  }
 0x275   : > { %2163 = vmatprep.subr.bf16.mxu1 %v6189_v8  ;;  %2217 = vmatpush2.bf16.msra.mxu0 %v6226_v7  ;;  %v6231_v8 = vld [vmem:[%s6675_s14 + $0x484] ss:$8 sps:$4 sm:$0xff]  }
 0x276   : > { %2218 = vmatprep.subr.bf16.mxu0 %v6231_v8 }
 0x278   : > { %2164 = vmatpush2.bf16.msra.mxu1 %v6187_v9  ;;  %v6234_v9 = vld [vmem:[%s6675_s14 + $0x574] ss:$8 sps:$4 sm:$0xff]  }
 0x279   : > { %2165 = vmatprep.subr.bf16.mxu1 %v6195_v10  ;;  %v6229_v10 = vld [vmem:[%s6675_s14 + $0x480] ss:$8 sps:$4 sm:$0xff]  }
 0x27a   : > { %2219 = vmatpush2.bf16.msra.mxu0 %v6229_v10 }
 0x27b   : > { %5736 = vmatprep.subr.mxu0 %v6788_v32 }
 0x27c   : > { %2166 = vmatpush2.bf16.msra.mxu1 %v6193_v11  ;;  %v1447_v11 = vshrl.u32 %v393_v0, 7 }
 0x27d   : > { %2167 = vmatprep.subr.bf16.mxu1 %v6201_v12 }
 0x27e   : > { %v7094_v12 = vsub.s32 0, %v1447_v11  ;;  %v7096_v13 = vsub.s32 1, %v1447_v11 }
 0x280   : > { %2168 = vmatpush2.bf16.msra.mxu1 %v6199_v14 }
 0x281   : > { %2169 = vmatprep.subr.bf16.mxu1 %v6207_v18 }
 0x284   : > { %2170 = vmatpush2.bf16.msra.mxu1 %v6205_v21 }
 0x285   : > { %2171 = vmatprep.subr.bf16.mxu1 %v6213_v23 }
 0x288   : > { %2172 = vmatpush2.bf16.msra.mxu1 %v6211_v26 }
 0x289   : > { %2173 = vmatprep.subr.bf16.mxu1 %v6219_v29 }
 0x28c   : > { %2174 = vmatpush2.bf16.msra.mxu1 %v6217_v28 }
 0x28d   : > { %2175 = vmatprep.subr.bf16.mxu1 %v6225_v4 }
 0x290   : > { %2176 = vmatpush2.bf16.msra.mxu1 %v6223_v6 }
 0x291   : > { %2231 = vmatprep.subr.bf16.mxu1 %v6234_v9  ;;  %v6232_v9 = vld [vmem:[%s6675_s14 + $0x570] ss:$8 sps:$4 sm:$0xff]  }
 0x313   : > { %v1441_v14 = vpop.f32.mrf.mxu1 }
 0x314   : > { %v1449_v17 = vrot.slane %v1441_v14, %v7094_v12  ;;  %v1461_v22 = vrot.slane %v1441_v14, %v7096_v13 }
 0x315   : > { %v1443_v18 = vpop.f32.mrf.mxu1 }
 0x316   : > { %v1454_v20 = vmul.f32 %v1449_v17, %v6977_v15  ;;  %v1456_v21 = vmul.f32 %v1449_v17, %v6981_v19  ;;  %v1453_v23 = vrot.slane %v1443_v18, %v7094_v12  ;;  %v1465_v32 = vrot.slane %v1443_v18, %v7096_v13 }
 0x318   : > { %v1466_v25 = vadd.f32 %v1461_v22, %v1454_v20  ;;  %v1468_v0 = vadd.f32 %v1461_v22, %v1456_v21  ;;  %v1455_v26 = vmul.f32 %v1453_v23, %v6979_v16  ;;  %v1457_v27 = vmul.f32 %v1453_v23, %v6989_v24  ;;  %v6237_v22 = vld [vmem:[%s6675_s14 + $0x564] ss:$8 sps:$4 sm:$0xff]  }
 0x31a   : > { %v1470_v28 = vmax.f32 %v1466_v25, 0.0  ;;  %v1472_v29 = vmax.f32 %v1468_v0, 0.0  ;;  %v1467_v2 = vadd.f32 %v1465_v32, %v1455_v26  ;;  %v1469_v3 = vadd.f32 %v1465_v32, %v1457_v27 }
 0x31c   : > { %v1478_v4 = vrot.slane %v1470_v28, 7  ;;  %v1480_v15 = vrot.slane %v1472_v29, 7  ;;  %v1471_v19 = vmax.f32 %v1467_v2, 0.0  ;;  %v1473_v5 = vmax.f32 %v1469_v3, 0.0 }
 0x31e   : > { %1486 = vst [vmem:[#allocation2] sm:$0xfe] %v1478_v4  ;;  %1488 = vst [vmem:[#allocation2 + $0x10] sm:$0x1] %v1478_v4  ;;  %v1479_v6 = vrot.slane %v1471_v19, 7  ;;  %v1481_v7 = vrot.slane %v1473_v5, 7 }
 0x31f   : > { %1490 = vst [vmem:[#allocation2 + $0x20] sm:$0xfe] %v1480_v15  ;;  %1492 = vst [vmem:[#allocation2 + $0x30] sm:$0x1] %v1480_v15 }
 0x320   : > { %1487 = vst [vmem:[#allocation2 + $0x8] sm:$0xfe] %v1479_v6  ;;  %1489 = vst [vmem:[#allocation2 + $0x18] sm:$0x1] %v1479_v6 }
 0x321   : > { %1491 = vst [vmem:[#allocation2 + $0x28] sm:$0xfe] %v1481_v7  ;;  %1493 = vst [vmem:[#allocation2 + $0x38] sm:$0x1] %v1481_v7 }
 0x325   : > { %v1494_v16 = vld [vmem:[#allocation2] sm:$0xff]  ;;  %v1500_v10 = vld [vmem:[#allocation2 + $0x10] sm:$0x1] }
 0x326   : > { %v1496_v24 = vld [vmem:[#allocation2 + $0x20] sm:$0xff]  ;;  %v1515_v21 = vrot.slane %v1500_v10, 1  ;;  %v1504_v27 = vld [vmem:[#allocation2 + $0x30] sm:$0x1] }
 0x327   : > { %v1498_v8 = vld [vmem:[#allocation2] sm:$0xfe]  ;;  %v1495_v11 = vld [vmem:[#allocation2 + $0x8] sm:$0xff]  ;;  %v1562_v32 = vpack.c.bf16 %v1496_v24, %v1494_v16  ;;  %v1501_v25 = vld [vmem:[#allocation2 + $0x18] sm:$0x1] }
 0x328   : > { %v1497_v14 = vld [vmem:[#allocation2 + $0x28] sm:$0xff]  ;;  %v1502_v18 = vld [vmem:[#allocation2 + $0x20] sm:$0xfe]  ;;  %v1514_v20 = vrot.slane %v1498_v8, 1  ;;  %v1505_v26 = vld [vmem:[#allocation2 + $0x38] sm:$0x1] }
 0x329   : > { %v1499_v17 = vld [vmem:[#allocation2 + $0x8] sm:$0xfe]  ;;  %v1563_v23 = vpack.c.bf16 %v1497_v14, %v1495_v11  ;;  %v1518_v29 = vrot.slane %v1501_v25, 1  ;;  %v1524_v3 = vrot.slane %v1505_v26, 1  ;;  %v1533_v15 = vld [vmem:[#allocation2 + $0x18] sm:$0x3] }
 0x32a   : > { %v1503_v0 = vld [vmem:[#allocation2 + $0x28] sm:$0xfe]  ;;  %v1517_v28 = vrot.slane %v1499_v17, 1  ;;  %v1537_v5 = vld [vmem:[#allocation2 + $0x38] sm:$0x3]  ;;  %v1550_v24 = vrot.slane %v1533_v15, 2  ;;  %v1516_v25 = vsel %vm486_vm1, %v1514_v20, %v1515_v21 }
 0x32b   : > { %v1523_v2 = vrot.slane %v1503_v0, 1  ;;  %v1531_v4 = vld [vmem:[#allocation2 + $0x8] sm:$0xfc]  ;;  %2177 = vmatprep.mubr.bf16.mxu1 %v1563_v23  ;;  %v1556_v11 = vrot.slane %v1537_v5, 2  ;;  %v1520_v14 = vrot.slane %v1502_v18, 1  ;;  %v1521_v0 = vrot.slane %v1504_v27, 1 }
 0x32c   : > { %v1535_v19 = vld [vmem:[#allocation2 + $0x28] sm:$0xfc]  ;;  %2178 = vmatmul.mubr.bf16.vlgmr.msra.gmra.mxu1 %v1562_v32  ;;  %v1519_v6 = vsel %vm486_vm1, %v1517_v28, %v1518_v29  ;;  %v1549_v16 = vrot.slane %v1531_v4, 2  ;;  %v6240_v32 = vld [vmem:[%s6675_s14 + $0x554] ss:$8 sps:$4 sm:$0xff]  }
 0x32d   : > { %v1525_v7 = vsel %vm486_vm1, %v1523_v2, %v1524_v3  ;;  %2232 = vmatpush1.bf16.msra.mxu1 %v6232_v9  ;;  %v1555_v10 = vrot.slane %v1535_v19, 2  ;;  %v6235_v17 = vld [vmem:[%s6675_s14 + $0x560] ss:$8 sps:$4 sm:$0xff]   ;;  %v1522_v28 = vsel %vm486_vm1, %v1520_v14, %v1521_v0  ;;  %v6238_v18 = vld [vmem:[%s6675_s14 + $0x550] ss:$8 sps:$4 sm:$0xff]  }
 0x32e   : > { %v1565_v8 = vpack.c.bf16 %v1525_v7, %v1519_v6  ;;  %v1551_v23 = vsel %vm519_vm2, %v1549_v16, %v1550_v24  ;;  %2233 = vmatprep.subr.bf16.mxu1 %v6237_v22  ;;  %v1564_v29 = vpack.c.bf16 %v1522_v28, %v1516_v25  ;;  %v6243_v2 = vld [vmem:[%s6675_s14 + $0x544] ss:$8 sps:$4 sm:$0xff]   ;;  %v6241_v20 = vld [vmem:[%s6675_s14 + $0x540] ss:$8 sps:$4 sm:$0xff]   ;;  %v6246_v21 = vld [vmem:[%s6675_s14 + $0x534] ss:$8 sps:$4 sm:$0xff]  }
 0x32f   : > { %v1557_v26 = vsel %vm519_vm2, %v1555_v10, %v1556_v11  ;;  %v6244_v22 = vld [vmem:[%s6675_s14 + $0x530] ss:$8 sps:$4 sm:$0xff]  }
 0x330   : > { %2220 = vmatprep.mubr.bf16.mxu0 %v1565_v8  ;;  %v1567_v9 = vpack.c.bf16 %v1557_v26, %v1551_v23 }
 0x331   : > { %2234 = vmatpush1.bf16.msra.mxu1 %v6235_v17  ;;  %2221 = vmatmul.mubr.bf16.vlgmr.msra.gmra.mxu0 %v1564_v29 }
 0x332   : > { %2263 = vmatprep.mubr.bf16.mxu1 %v1567_v9  ;;  %2235 = vmatprep.subr.bf16.mxu1 %v6240_v32 }
 0x333   : > { %5737 = vmatpush3.msra.mxu0 %v6793_v33  ;;  %v6249_v33 = vld [vmem:[%s6675_s14 + $0x524] ss:$8 sps:$4 sm:$0xff]  }
 0x334   : > { %5738 = vmatprep.subr.mxu0 %v6798_v34  ;;  %v6247_v34 = vld [vmem:[%s6675_s14 + $0x520] ss:$8 sps:$4 sm:$0xff]  }
 0x335   : > { %2236 = vmatpush1.bf16.msra.mxu1 %v6238_v18  ;;  %5739 = vmatpush3.msra.mxu0 %v6804_v35  ;;  %v6252_v35 = vld [vmem:[%s6675_s14 + $0x514] ss:$8 sps:$4 sm:$0xff]  }
 0x336   : > { %2237 = vmatprep.subr.bf16.mxu1 %v6243_v2  ;;  %5740 = vmatprep.subr.mxu0 %v6810_v36  ;;  %v6250_v36 = vld [vmem:[%s6675_s14 + $0x510] ss:$8 sps:$4 sm:$0xff]  }
 0x337   : > { %5741 = vmatpush3.msra.mxu0 %v6818_v37  ;;  %v6255_v37 = vld [vmem:[%s6675_s14 + $0x504] ss:$8 sps:$4 sm:$0xff]  }
 0x338   : > { %5742 = vmatprep.subr.mxu0 %v6824_v38  ;;  %v6253_v38 = vld [vmem:[%s6675_s14 + $0x500] ss:$8 sps:$4 sm:$0xff]  }
 0x339   : > { %2238 = vmatpush1.bf16.msra.mxu1 %v6241_v20  ;;  %5743 = vmatpush3.msra.mxu0 %v6830_v39  ;;  %v6258_v39 = vld [vmem:[%s6675_s14 + $0x5f4] ss:$8 sps:$4 sm:$0xff]  }
 0x33a   : > { %2239 = vmatprep.subr.bf16.mxu1 %v6246_v21  ;;  %5744 = vmatprep.subr.mxu0 %v6836_v40  ;;  %v6256_v40 = vld [vmem:[%s6675_s14 + $0x5f0] ss:$8 sps:$4 sm:$0xff]  }
 0x33b   : > { %5745 = vmatpush3.msra.mxu0 %v6842_v41  ;;  %v6261_v41 = vld [vmem:[%s6675_s14 + $0x5e4] ss:$8 sps:$4 sm:$0xff]  }
 0x33c   : > { %5746 = vmatprep.subr.mxu0 %v6848_v42  ;;  %v6259_v42 = vld [vmem:[%s6675_s14 + $0x5e0] ss:$8 sps:$4 sm:$0xff]  }
 0x33d   : > { %2240 = vmatpush1.bf16.msra.mxu1 %v6244_v22  ;;  %5747 = vmatpush3.msra.mxu0 %v6854_v43  ;;  %v6264_v43 = vld [vmem:[%s6675_s14 + $0x5d4] ss:$8 sps:$4 sm:$0xff]  }
 0x33e   : > { %2241 = vmatprep.subr.bf16.mxu1 %v6249_v33  ;;  %5748 = vmatprep.subr.mxu0 %v6860_v44  ;;  %v6262_v44 = vld [vmem:[%s6675_s14 + $0x5d0] ss:$8 sps:$4 sm:$0xff]  }
 0x33f   : > { %5749 = vmatpush3.msra.mxu0 %v6866_v45  ;;  %v6267_v45 = vld [vmem:[%s6675_s14 + $0x5c4] ss:$8 sps:$4 sm:$0xff]  }
 0x340   : > { %5750 = vmatprep.subr.mxu0 %v6872_v46  ;;  %v6265_v46 = vld [vmem:[%s6675_s14 + $0x5c0] ss:$8 sps:$4 sm:$0xff]  }
 0x341   : > { %2242 = vmatpush1.bf16.msra.mxu1 %v6247_v34  ;;  %5751 = vmatpush3.msra.mxu0 %v6878_v47  ;;  %v6270_v47 = vld [vmem:[%s6675_s14 + $0x5b4] ss:$8 sps:$4 sm:$0xff]  }
 0x342   : > { %2243 = vmatprep.subr.bf16.mxu1 %v6252_v35  ;;  %5752 = vmatprep.subr.mxu0 %v6884_v48  ;;  %v6268_v48 = vld [vmem:[%s6675_s14 + $0x5b0] ss:$8 sps:$4 sm:$0xff]  }
 0x343   : > { %5753 = vmatpush3.msra.mxu0 %v6890_v49  ;;  %v6273_v49 = vld [vmem:[%s6675_s14 + $0x5a4] ss:$8 sps:$4 sm:$0xff]  }
 0x344   : > { %5754 = vmatprep.subr.mxu0 %v6896_v50  ;;  %v6271_v50 = vld [vmem:[%s6675_s14 + $0x5a0] ss:$8 sps:$4 sm:$0xff]  }
 0x345   : > { %2244 = vmatpush1.bf16.msra.mxu1 %v6250_v36  ;;  %5755 = vmatpush3.msra.mxu0 %v6902_v51  ;;  %v6276_v51 = vld [vmem:[%s6675_s14 + $0x594] ss:$8 sps:$4 sm:$0xff]  }
 0x346   : > { %2245 = vmatprep.subr.bf16.mxu1 %v6255_v37  ;;  %5756 = vmatprep.subr.mxu0 %v6908_v52  ;;  %v1530_v52 = vld [vmem:[#allocation2] sm:$0xfc] }
 0x347   : > { %5757 = vmatpush3.msra.mxu0 %v6914_v53  ;;  %v1532_v53 = vld [vmem:[#allocation2 + $0x10] sm:$0x3] }
 0x348   : > { %5758 = vmatprep.subr.mxu0 %v6919_v54  ;;  %v1534_v54 = vld [vmem:[#allocation2 + $0x20] sm:$0xfc] }
 0x349   : > { %2246 = vmatpush1.bf16.msra.mxu1 %v6253_v38  ;;  %5759 = vmatpush3.msra.mxu0 %v6924_v55  ;;  %v1536_v55 = vld [vmem:[#allocation2 + $0x30] sm:$0x3] }
 0x34a   : > { %2247 = vmatprep.subr.bf16.mxu1 %v6258_v39  ;;  %5760 = vmatprep.subr.mxu0 %v6930_v56  ;;  %v6274_v56 = vld [vmem:[%s6675_s14 + $0x590] ss:$8 sps:$4 sm:$0xff]  }
 0x34b   : > { %5761 = vmatpush3.msra.mxu0 %v6936_v57  ;;  %v6279_v57 = vld [vmem:[%s6675_s14 + $0x584] ss:$8 sps:$4 sm:$0xff]  }
 0x34c   : > { %5762 = vmatprep.subr.mxu0 %v6942_v58  ;;  %v1546_v58 = vrot.slane %v1530_v52, 2 }
 0x34d   : > { %2248 = vmatpush2.bf16.msra.mxu1 %v6256_v40  ;;  %5763 = vmatpush3.msra.mxu0 %v6948_v59  ;;  %v1547_v59 = vrot.slane %v1532_v53, 2 }
 0x34e   : > { %2249 = vmatprep.subr.bf16.mxu1 %v6261_v41  ;;  %5764 = vmatprep.subr.mxu0 %v6954_v60  ;;  %v1552_v60 = vrot.slane %v1534_v54, 2 }
 0x34f   : > { %5765 = vmatpush3.msra.mxu0 %v6960_v61  ;;  %v1553_v61 = vrot.slane %v1536_v55, 2 }
 0x350   : > { %5766 = vmatprep.subr.mxu0 %v6966_v62  ;;  %v6277_v62 = vld [vmem:[%s6675_s14 + $0x580] ss:$8 sps:$4 sm:$0xff]  }
 0x351   : > { %2250 = vmatpush2.bf16.msra.mxu1 %v6259_v42  ;;  %5767 = vmatpush3.msra.mxu0 %v6972_v63  ;;  %v1548_v63 = vsel %vm519_vm2, %v1546_v58, %v1547_v59  ;;  %v1554_v27 = vsel %vm519_vm2, %v1552_v60, %v1553_v61  ;;  %v6280_v59 = vld [vmem:[%s6675_s14 + $0x670] ss:$8 sps:$4 sm:$0xff]   ;;  %v6282_v60 = vld [vmem:[%s6675_s14 + $0x674] ss:$8 sps:$4 sm:$0xff]   ;;  %v6285_v61 = vld [vmem:[%s6675_s14 + $0x664] ss:$8 sps:$4 sm:$0xff]  }
 0x352   : > { %2251 = vmatprep.subr.bf16.mxu1 %v6264_v43  ;;  %v1566_v3 = vpack.c.bf16 %v1554_v27, %v1548_v63  ;;  %3170 = vmatprep.subr.bf16.mxu0 %v6282_v60  ;;  %v6283_v63 = vld [vmem:[%s6675_s14 + $0x660] ss:$8 sps:$4 sm:$0xff]   ;;  %v6291_v27 = vld [vmem:[%s6675_s14 + $0x654] ss:$8 sps:$4 sm:$0xff]   ;;  %v6345_v60 = vld [vmem:[%s6675_s14 + $0x6c4] ss:$8 sps:$4 sm:$0xff]  }
 0x355   : > { %2252 = vmatpush2.bf16.msra.mxu1 %v6262_v44 }
 0x356   : > { %2253 = vmatprep.subr.bf16.mxu1 %v6267_v45 }
 0x359   : > { %2254 = vmatpush2.bf16.msra.mxu1 %v6265_v46 }
 0x35a   : > { %2255 = vmatprep.subr.bf16.mxu1 %v6270_v47 }
 0x35d   : > { %2256 = vmatpush2.bf16.msra.mxu1 %v6268_v48 }
 0x35e   : > { %2257 = vmatprep.subr.bf16.mxu1 %v6273_v49 }
 0x361   : > { %2258 = vmatpush2.bf16.msra.mxu1 %v6271_v50 }
 0x362   : > { %2259 = vmatprep.subr.bf16.mxu1 %v6276_v51 }
 0x365   : > { %2260 = vmatpush2.bf16.msra.mxu1 %v6274_v56 }
 0x366   : > { %2261 = vmatprep.subr.bf16.mxu1 %v6279_v57 }
 0x369   : > { %2262 = vmatpush2.bf16.msra.mxu1 %v6277_v62  ;;  %v6288_v62 = vld [vmem:[%s6675_s14 + $0x774] ss:$8 sps:$4 sm:$0xff]  }
 0x36a   : > { %2430 = vmatprep.subr.mxu1 %v7003_v30 }
 0x36c   : > { %2264 = vmatmul.mubr.bf16.vlgmr.msra.gmra.mxu1 %v1566_v3  ;;  %v6289_v3 = vld [vmem:[%s6675_s14 + $0x650] ss:$8 sps:$4 sm:$0xff]  }
 0x36d   : > { %2431 = vmatpush1.msra.mxu1 %v7008_v31  ;;  %2464 = vmatprep.mubr.f32.mxu1 %v6604_v1 }
 0x36e   : > { %3213 = vmatprep.subr.bf16.mxu1 %v6288_v62  ;;  %v6343_v62 = vld [vmem:[%s6675_s14 + $0x6c0] ss:$8 sps:$4 sm:$0xff]  }
 0x3ec   : > { %v2179_v4 = vpop.f32.mrf.mxu1 }
 0x3ee   : > { %v2181_v15 = vpop.f32.mrf.mxu1 }
 0x3f0   : > { %v2183_v5 = vpop.f32.mrf.mxu1 }
 0x3f1   : > { %v2222_v19 = vpop.f32.mrf.mxu0 }
 0x3f2   : > { %v2185_v7 = vpop.f32.mrf.mxu1  ;;  %v2223_v8 = vadd.f32 %v2222_v19, %v2179_v4  ;;  %v6297_v4 = vld [vmem:[%s6675_s14 + $0x644] ss:$8 sps:$4 sm:$0xff]   ;;  %v6303_v19 = vld [vmem:[%s6675_s14 + $0x634] ss:$8 sps:$4 sm:$0xff]  }
 0x3f3   : > { %v2224_v6 = vpop.f32.mrf.mxu0 }
 0x3f4   : > { %v2225_v10 = vadd.f32 %v2224_v6, %v2181_v15  ;;  %v6295_v15 = vld [vmem:[%s6675_s14 + $0x640] ss:$8 sps:$4 sm:$0xff]   ;;  %v6309_v6 = vld [vmem:[%s6675_s14 + $0x624] ss:$8 sps:$4 sm:$0xff]  }
 0x3f5   : > { %v2226_v16 = vpop.f32.mrf.mxu0 }
 0x3f6   : > { %v2227_v17 = vadd.f32 %v2226_v16, %v2183_v5  ;;  %v6301_v5 = vld [vmem:[%s6675_s14 + $0x630] ss:$8 sps:$4 sm:$0xff]   ;;  %v6315_v16 = vld [vmem:[%s6675_s14 + $0x614] ss:$8 sps:$4 sm:$0xff]  }
 0x3f7   : > { %v2228_v11 = vpop.f32.mrf.mxu0 }
 0x3f8   : > { %v2229_v25 = vadd.f32 %v2228_v11, %v2185_v7  ;;  %v6307_v7 = vld [vmem:[%s6675_s14 + $0x620] ss:$8 sps:$4 sm:$0xff]   ;;  %v6327_v11 = vld [vmem:[%s6675_s14 + $0x6f4] ss:$8 sps:$4 sm:$0xff]  }
 0x42c   : > { %v2265_v24 = vpop.f32.mrf.mxu1 }
 0x42d   : > { %v7179_v23 = vadd.f32 %v2265_v24, %v2223_v8  ;;  %v6313_v24 = vld [vmem:[%s6675_s14 + $0x610] ss:$8 sps:$4 sm:$0xff]   ;;  %v6321_v8 = vld [vmem:[%s6675_s14 + $0x604] ss:$8 sps:$4 sm:$0xff]  }
 0x42e   : > { %v2267_v14 = vpop.f32.mrf.mxu1 }
 0x42f   : > { %v7181_v30 = vadd.f32 %v2267_v14, %v2225_v10  ;;  %v2288_v26 = vmul.f32 %v7179_v23, %v7179_v23  ;;  %v6319_v10 = vld [vmem:[%s6675_s14 + $0x600] ss:$8 sps:$4 sm:$0xff]   ;;  %v6325_v14 = vld [vmem:[%s6675_s14 + $0x6f0] ss:$8 sps:$4 sm:$0xff]  }
 0x430   : > { %v2269_v31 = vpop.f32.mrf.mxu1 }
 0x431   : > { %v7183_v0 = vadd.f32 %v2269_v31, %v2227_v17  ;;  %v2289_v18 = vmul.f32 %v7181_v30, %v7181_v30  ;;  %v6333_v17 = vld [vmem:[%s6675_s14 + $0x6e4] ss:$8 sps:$4 sm:$0xff]   ;;  %v6331_v31 = vld [vmem:[%s6675_s14 + $0x6e0] ss:$8 sps:$4 sm:$0xff]  }
 0x432   : > { %v2271_v32 = vpop.f32.mrf.mxu1 }
 0x433   : > { %v2274_v9 = vadd.f32 %v7183_v0, %v7179_v23  ;;  %v2290_v28 = vmul.f32 %v7183_v0, %v7183_v0  ;;  %v7191_v29 = vadd.f32 %v2271_v32, %v2229_v25  ;;  %v6339_v25 = vld [vmem:[%s6675_s14 + $0x6d4] ss:$8 sps:$4 sm:$0xff]   ;;  %v6337_v32 = vld [vmem:[%s6675_s14 + $0x6d0] ss:$8 sps:$4 sm:$0xff]  }
 0x435   : > { %v2275_v2 = vrot.slane %v2274_v9, 4  ;;  %v2292_v20 = vadd.f32 %v2290_v28, %v2288_v26  ;;  %v2281_v21 = vadd.f32 %v7191_v29, %v7181_v30  ;;  %v2291_v22 = vmul.f32 %v7191_v29, %v7191_v29 }
 0x437   : > { %v2276_v33 = vadd.f32 %v2275_v2, %v2274_v9  ;;  %v2293_v34 = vrot.slane %v2292_v20, 4  ;;  %v2282_v35 = vrot.slane %v2281_v21, 4  ;;  %v2299_v36 = vadd.f32 %v2291_v22, %v2289_v18 }
 0x439   : > { %v2277_v37 = vrot.slane %v2276_v33, 2  ;;  %v2294_v38 = vadd.f32 %v2293_v34, %v2292_v20  ;;  %v2283_v39 = vadd.f32 %v2282_v35, %v2281_v21  ;;  %v2300_v40 = vrot.slane %v2299_v36, 4 }
 0x43b   : > { %v2295_v41 = vrot.slane %v2294_v38, 2  ;;  %v2284_v42 = vrot.slane %v2283_v39, 2  ;;  %v2301_v43 = vadd.f32 %v2300_v40, %v2299_v36  ;;  %v2278_v44 = vadd.f32 %v2277_v37, %v2276_v33  ;;  %v2383_v33 = vld [vmem:[%s7037_s13 + $0x1] sm:$0x1]  ;;  %v6286_v40 = vld [vmem:[%s6675_s14 + $0x770] ss:$8 sps:$4 sm:$0xff]  }
 0x43c   : > { %v2390_v36 = vld [vmem:[%s7043_s17 + $0x1] sm:$0x1] }
 0x43d   : > { %v2285_v45 = vadd.f32 %v2284_v42, %v2283_v39  ;;  %v2302_v46 = vrot.slane %v2301_v43, 2  ;;  %v2296_v47 = vadd.f32 %v2295_v41, %v2294_v38  ;;  %v2279_v51 = vrot.slane %v2278_v44, 1  ;;  %v6294_v41 = vld [vmem:[%s6675_s14 + $0x764] ss:$8 sps:$4 sm:$0xff]  }
 0x43f   : > { %v2286_v48 = vrot.slane %v2285_v45, 1  ;;  %v2303_v49 = vadd.f32 %v2302_v46, %v2301_v43  ;;  %v2297_v50 = vrot.slane %v2296_v47, 1  ;;  %v2280_v56 = vadd.f32 %v2279_v51, %v2278_v44  ;;  %v6292_v43 = vld [vmem:[%s6675_s14 + $0x760] ss:$8 sps:$4 sm:$0xff]   ;;  %v6300_v44 = vld [vmem:[%s6675_s14 + $0x754] ss:$8 sps:$4 sm:$0xff]  }
 0x440   : > { %v6306_v46 = vld [vmem:[%s6675_s14 + $0x744] ss:$8 sps:$4 sm:$0xff]   ;;  %v6316_v51 = vld [vmem:[%s6675_s14 + $0x720] ss:$8 sps:$4 sm:$0xff]  }
 0x441   : > { %v2304_v52 = vrot.slane %v2303_v49, 1  ;;  %v2298_v53 = vadd.f32 %v2297_v50, %v2296_v47  ;;  %v2287_v54 = vadd.f32 %v2286_v48, %v2285_v45  ;;  %v6298_v45 = vld [vmem:[%s6675_s14 + $0x750] ss:$8 sps:$4 sm:$0xff]   ;;  %v6304_v47 = vld [vmem:[%s6675_s14 + $0x740] ss:$8 sps:$4 sm:$0xff]  }
 0x442   : > { %v6312_v48 = vld [vmem:[%s6675_s14 + $0x734] ss:$8 sps:$4 sm:$0xff]   ;;  %v6318_v50 = vld [vmem:[%s6675_s14 + $0x724] ss:$8 sps:$4 sm:$0xff]  }
 0x443   : > { %v2305_v55 = vadd.f32 %v2304_v52, %v2303_v49  ;;  %v2306_v58 = vsel %vm1279_vm3, %v2280_v56, %v2298_v53  ;;  %v6310_v49 = vld [vmem:[%s6675_s14 + $0x730] ss:$8 sps:$4 sm:$0xff]   ;;  %v6324_v52 = vld [vmem:[%s6675_s14 + $0x714] ss:$8 sps:$4 sm:$0xff]  }
 0x444   : > { %v6322_v53 = vld [vmem:[%s6675_s14 + $0x710] ss:$8 sps:$4 sm:$0xff]   ;;  %v6336_v56 = vld [vmem:[%s6675_s14 + $0x7f4] ss:$8 sps:$4 sm:$0xff]  }
 0x445   : > { %v2307_v57 = vsel %vm1279_vm3, %v2287_v54, %v2305_v55  ;;  %v6330_v54 = vld [vmem:[%s6675_s14 + $0x704] ss:$8 sps:$4 sm:$0xff]   ;;  %v6328_v55 = vld [vmem:[%s6675_s14 + $0x700] ss:$8 sps:$4 sm:$0xff]  }
 0x446   : > { %2372 = vmatprep.mubr.f32.mxu0 %v2307_v57  ;;  %v6334_v57 = vld [vmem:[%s6675_s14 + $0x7f0] ss:$8 sps:$4 sm:$0xff]  }
 0x447   : > { %2373 = vmatmul.mubr.f32.vlgmr.msra.gmra.mxu0 %v2306_v58  ;;  %v6342_v58 = vld [vmem:[%s6675_s14 + $0x7e4] ss:$8 sps:$4 sm:$0xff]  }
 0x448   : > { %3171 = vmatpush1.bf16.msra.mxu0 %v6280_v59  ;;  %v6340_v59 = vld [vmem:[%s6675_s14 + $0x7e0] ss:$8 sps:$4 sm:$0xff]  }
 0x449   : > { %3172 = vmatprep.subr.bf16.mxu0 %v6285_v61  ;;  %v6348_v61 = vld [vmem:[%s6675_s14 + $0x7d4] ss:$8 sps:$4 sm:$0xff]  }
 0x44c   : > { %3173 = vmatpush1.bf16.msra.mxu0 %v6283_v63  ;;  %v6346_v63 = vld [vmem:[%s6675_s14 + $0x7d0] ss:$8 sps:$4 sm:$0xff]  }
 0x44d   : > { %3174 = vmatprep.subr.bf16.mxu0 %v6291_v27  ;;  %v6351_v27 = vld [vmem:[%s6675_s14 + $0x6b4] ss:$8 sps:$4 sm:$0xff]  }
 0x450   : > { %3175 = vmatpush1.bf16.msra.mxu0 %v6289_v3  ;;  %v6354_v3 = vld [vmem:[%s6675_s14 + $0x7c4] ss:$8 sps:$4 sm:$0xff]  }
 0x451   : > { %3176 = vmatprep.subr.bf16.mxu0 %v6297_v4  ;;  %v6349_v4 = vld [vmem:[%s6675_s14 + $0x6b0] ss:$8 sps:$4 sm:$0xff]  }
 0x454   : > { %3177 = vmatpush1.bf16.msra.mxu0 %v6295_v15  ;;  %v6352_v15 = vld [vmem:[%s6675_s14 + $0x7c0] ss:$8 sps:$4 sm:$0xff]  }
 0x455   : > { %3178 = vmatprep.subr.bf16.mxu0 %v6303_v19  ;;  %v6357_v19 = vld [vmem:[%s6675_s14 + $0x6a4] ss:$8 sps:$4 sm:$0xff]  }
 0x458   : > { %3179 = vmatpush1.bf16.msra.mxu0 %v6301_v5  ;;  %v6360_v5 = vld [vmem:[%s6675_s14 + $0x7b4] ss:$8 sps:$4 sm:$0xff]  }
 0x459   : > { %3180 = vmatprep.subr.bf16.mxu0 %v6309_v6  ;;  %v6355_v6 = vld [vmem:[%s6675_s14 + $0x6a0] ss:$8 sps:$4 sm:$0xff]  }
 0x45c   : > { %3181 = vmatpush1.bf16.msra.mxu0 %v6307_v7  ;;  %v6358_v7 = vld [vmem:[%s6675_s14 + $0x7b0] ss:$8 sps:$4 sm:$0xff]  }
 0x45d   : > { %3182 = vmatprep.subr.bf16.mxu0 %v6315_v16  ;;  %v6363_v16 = vld [vmem:[%s6675_s14 + $0x694] ss:$8 sps:$4 sm:$0xff]  }
 0x460   : > { %3183 = vmatpush1.bf16.msra.mxu0 %v6313_v24  ;;  %v6366_v24 = vld [vmem:[%s6675_s14 + $0x7a4] ss:$8 sps:$4 sm:$0xff]  }
 0x461   : > { %3184 = vmatprep.subr.bf16.mxu0 %v6321_v8  ;;  %v6361_v8 = vld [vmem:[%s6675_s14 + $0x690] ss:$8 sps:$4 sm:$0xff]  }
 0x464   : > { %3185 = vmatpush1.bf16.msra.mxu0 %v6319_v10  ;;  %v6364_v10 = vld [vmem:[%s6675_s14 + $0x7a0] ss:$8 sps:$4 sm:$0xff]  }
 0x465   : > { %3186 = vmatprep.subr.bf16.mxu0 %v6327_v11  ;;  %v6369_v11 = vld [vmem:[%s6675_s14 + $0x684] ss:$8 sps:$4 sm:$0xff]  }
 0x468   : > { %3187 = vmatpush2.bf16.msra.mxu0 %v6325_v14  ;;  %v6372_v14 = vld [vmem:[%s6675_s14 + $0x794] ss:$8 sps:$4 sm:$0xff]  }
 0x469   : > { %3188 = vmatprep.subr.bf16.mxu0 %v6333_v17  ;;  %v6367_v17 = vld [vmem:[%s6675_s14 + $0x680] ss:$8 sps:$4 sm:$0xff]  }
 0x46c   : > { %3189 = vmatpush2.bf16.msra.mxu0 %v6331_v31  ;;  %v6370_v31 = vld [vmem:[%s6675_s14 + $0x790] ss:$8 sps:$4 sm:$0xff]  }
 0x46d   : > { %3190 = vmatprep.subr.bf16.mxu0 %v6339_v25  ;;  %v6375_v25 = vld [vmem:[%s6675_s14 + $0x784] ss:$8 sps:$4 sm:$0xff]  }
 0x470   : > { %3191 = vmatpush2.bf16.msra.mxu0 %v6337_v32  ;;  %v6378_v32 = vld [vmem:[%s6675_s14 + $0x874] ss:$8 sps:$4 sm:$0xff]  }
 0x471   : > { %3192 = vmatprep.subr.bf16.mxu0 %v6345_v60 }
 0x474   : > { %3193 = vmatpush2.bf16.msra.mxu0 %v6343_v62 }
 0x475   : > { %3194 = vmatprep.subr.bf16.mxu0 %v6351_v27 }
 0x478   : > { %3195 = vmatpush2.bf16.msra.mxu0 %v6349_v4 }
 0x479   : > { %3196 = vmatprep.subr.bf16.mxu0 %v6357_v19 }
 0x47c   : > { %3197 = vmatpush2.bf16.msra.mxu0 %v6355_v6 }
 0x47d   : > { %3198 = vmatprep.subr.bf16.mxu0 %v6363_v16 }
 0x480   : > { %3199 = vmatpush2.bf16.msra.mxu0 %v6361_v8 }
 0x481   : > { %3200 = vmatprep.subr.bf16.mxu0 %v6369_v11 }
 0x484   : > { %3201 = vmatpush2.bf16.msra.mxu0 %v6367_v17 }
 0x485   : > { %3256 = vmatprep.subr.bf16.mxu0 %v6378_v32 }
 0x507   : > { %v5768_v26 = vpop.f32.mrf.mxu0 }
 0x509   : > { %v5769_v9 = vpop.f32.mrf.mxu0 }
 0x50a   : > { %v5770_v28 = vadd.f32 %v5769_v9, %v5768_v26  ;;  %v6373_v26 = vld [vmem:[%s6675_s14 + $0x780] ss:$8 sps:$4 sm:$0xff]   ;;  %v6558_v9 = vld [vmem:[%s7689_s6 + $0xf8] sm:$0xff] }
 0x50c   : > { %v2378_v18 = vmul.f32 %v5770_v28, %v5770_v28 }
 0x50e   : > { %v2380_v2 = vrot.slane %v2378_v18, 7 }
 0x510   : > { %v2382_v20 = vsub.f32 %v5770_v28, %v2380_v2 }
 0x512   : > { %v2384_v21 = vadd.f32 1e-05, %v2382_v20 }
 0x514   : > { %6554 = vrsqrt.f32 %v2384_v21 }
 0x521   : > { %v6555_v22 = vpop.eup %6554 }
 0x522   : > { %v2387_v34 = vrot.slane %v6555_v22, 1 }
 0x524   : > { %v2389_v35 = vmul.f32 %v2387_v34, %v2383_v33 }
 0x526   : > { %v2391_v37 = vmul.f32 %v5770_v28, %v2389_v35 }
 0x528   : > { %v2392_v38 = vsub.f32 %v2390_v36, %v2391_v37 }
 0x52a   : > { %v2394_v39 = vrot.slane %v2392_v38, 7 }
 0x52c   : > { %v2396_v42 = vsel %vm1279_vm3, %v2389_v35, %v2394_v39 }
 0x52d   : > { %5374 = vmatmul.mubr.msk.f32.vlgmr.msra.gmra.mxu1 %vm1371_vm4, %v2396_v42 }
 0x52e   : > { %3214 = vmatpush1.bf16.msra.mxu1 %v6286_v40 }
 0x52f   : > { %3215 = vmatprep.subr.bf16.mxu1 %v6294_v41 }
 0x532   : > { %3216 = vmatpush1.bf16.msra.mxu1 %v6292_v43 }
 0x533   : > { %3217 = vmatprep.subr.bf16.mxu1 %v6300_v44 }
 0x536   : > { %3218 = vmatpush1.bf16.msra.mxu1 %v6298_v45 }
 0x537   : > { %3219 = vmatprep.subr.bf16.mxu1 %v6306_v46 }
 0x53a   : > { %3220 = vmatpush1.bf16.msra.mxu1 %v6304_v47 }
 0x53b   : > { %3221 = vmatprep.subr.bf16.mxu1 %v6312_v48  ;;  %v6376_v48 = vld [vmem:[%s6675_s14 + $0x870] ss:$8 sps:$4 sm:$0xff]  }
 0x53e   : > { %3222 = vmatpush1.bf16.msra.mxu1 %v6310_v49 }
 0x53f   : > { %3223 = vmatprep.subr.bf16.mxu1 %v6318_v50 }
 0x542   : > { %3224 = vmatpush1.bf16.msra.mxu1 %v6316_v51 }
 0x543   : > { %3225 = vmatprep.subr.bf16.mxu1 %v6324_v52 }
 0x546   : > { %3226 = vmatpush1.bf16.msra.mxu1 %v6322_v53 }
 0x547   : > { %3227 = vmatprep.subr.bf16.mxu1 %v6330_v54 }
 0x54a   : > { %3228 = vmatpush1.bf16.msra.mxu1 %v6328_v55 }
 0x54b   : > { %3229 = vmatprep.subr.bf16.mxu1 %v6336_v56  ;;  %v6381_v56 = vld [vmem:[%s6675_s14 + $0x864] ss:$8 sps:$4 sm:$0xff]  }
 0x54e   : > { %3230 = vmatpush2.bf16.msra.mxu1 %v6334_v57 }
 0x54f   : > { %3231 = vmatprep.subr.bf16.mxu1 %v6342_v58 }
 0x552   : > { %3232 = vmatpush2.bf16.msra.mxu1 %v6340_v59 }
 0x553   : > { %3233 = vmatprep.subr.bf16.mxu1 %v6348_v61 }
 0x556   : > { %3234 = vmatpush2.bf16.msra.mxu1 %v6346_v63 }
 0x557   : > { %3235 = vmatprep.subr.bf16.mxu1 %v6354_v3 }
 0x55a   : > { %3236 = vmatpush2.bf16.msra.mxu1 %v6352_v15 }
 0x55b   : > { %3237 = vmatprep.subr.bf16.mxu1 %v6360_v5 }
 0x55e   : > { %3238 = vmatpush2.bf16.msra.mxu1 %v6358_v7 }
 0x55f   : > { %3239 = vmatprep.subr.bf16.mxu1 %v6366_v24 }
 0x562   : > { %3240 = vmatpush2.bf16.msra.mxu1 %v6364_v10 }
 0x563   : > { %3241 = vmatprep.subr.bf16.mxu1 %v6372_v14 }
 0x566   : > { %3242 = vmatpush2.bf16.msra.mxu1 %v6370_v31  ;;  %v6379_v31 = vld [vmem:[%s6675_s14 + $0x860] ss:$8 sps:$4 sm:$0xff]  }
 0x567   : > { %3243 = vmatprep.subr.bf16.mxu1 %v6375_v25 }
 0x56a   : > { %3244 = vmatpush2.bf16.msra.mxu1 %v6373_v26 }
 0x56b   : > { %5771 = vmatprep.subr.mxu1 %v6558_v9  ;;  %v6384_v9 = vld [vmem:[%s6675_s14 + $0x854] ss:$8 sps:$4 sm:$0xff]  }
 0x5ed   : > { %v2466_v28 = vpop.f32.mrf.mxu1 }
 0x5ee   : > { %v2474_v18 = vrot.slane %v2466_v28, %v7094_v12  ;;  %v2486_v22 = vrot.slane %v2466_v28, %v7096_v13 }
 0x5ef   : > { %v2468_v2 = vpop.f32.mrf.mxu1 }
 0x5f0   : > { %v2479_v20 = vmul.f32 %v2474_v18, %v7179_v23  ;;  %v2481_v21 = vmul.f32 %v2474_v18, %v7183_v0  ;;  %v2478_v33 = vrot.slane %v2468_v2, %v7094_v12  ;;  %v2490_v34 = vrot.slane %v2468_v2, %v7096_v13 }
 0x5f2   : > { %v2491_v35 = vadd.f32 %v2486_v22, %v2479_v20  ;;  %v2493_v36 = vadd.f32 %v2486_v22, %v2481_v21  ;;  %v2480_v37 = vmul.f32 %v2478_v33, %v7181_v30  ;;  %v2482_v38 = vmul.f32 %v2478_v33, %v7191_v29  ;;  %v6382_v21 = vld [vmem:[%s6675_s14 + $0x850] ss:$8 sps:$4 sm:$0xff]   ;;  %v6387_v22 = vld [vmem:[%s6675_s14 + $0x844] ss:$8 sps:$4 sm:$0xff]  }
 0x5f3   : > { %v6559_v33 = vld [vmem:[%s7689_s6 + $0x78] sm:$0xff] }
 0x5f4   : > { %v2495_v39 = vmax.f32 %v2491_v35, 0.0  ;;  %v2497_v40 = vmax.f32 %v2493_v36, 0.0  ;;  %v2492_v41 = vadd.f32 %v2490_v34, %v2480_v37  ;;  %v2494_v42 = vadd.f32 %v2490_v34, %v2482_v38  ;;  %v6385_v34 = vld [vmem:[%s6675_s14 + $0x840] ss:$8 sps:$4 sm:$0xff]   ;;  %v6560_v35 = vld [vmem:[%s7689_s6 + $0xf0] sm:$0xff] }
 0x5f5   : > { %v6390_v36 = vld [vmem:[%s6675_s14 + $0x834] ss:$8 sps:$4 sm:$0xff]   ;;  %v6562_v38 = vld [vmem:[%s7689_s6 + $0xe8] sm:$0xff] }
 0x5f6   : > { %v2503_v43 = vrot.slane %v2495_v39, 7  ;;  %v2505_v23 = vrot.slane %v2497_v40, 7  ;;  %v2496_v0 = vmax.f32 %v2492_v41, 0.0  ;;  %v2498_v44 = vmax.f32 %v2494_v42, 0.0  ;;  %v6561_v37 = vld [vmem:[%s7689_s6 + $0x70] sm:$0xff]  ;;  %v6563_v39 = vld [vmem:[%s7689_s6 + $0x68] sm:$0xff] }
 0x5f7   : > { %v6388_v40 = vld [vmem:[%s6675_s14 + $0x830] ss:$8 sps:$4 sm:$0xff]   ;;  %v6564_v41 = vld [vmem:[%s7689_s6 + $0xe0] sm:$0xff] }
 0x5f8   : > { %2511 = vst [vmem:[#allocation2] sm:$0xfe] %v2503_v43  ;;  %2513 = vst [vmem:[#allocation2 + $0x10] sm:$0x1] %v2503_v43  ;;  %v2504_v45 = vrot.slane %v2496_v0, 7  ;;  %v2506_v46 = vrot.slane %v2498_v44, 7 }
 0x5f9   : > { %2515 = vst [vmem:[#allocation2 + $0x20] sm:$0xfe] %v2505_v23  ;;  %2517 = vst [vmem:[#allocation2 + $0x30] sm:$0x1] %v2505_v23  ;;  %v6393_v42 = vld [vmem:[%s6675_s14 + $0x824] ss:$8 sps:$4 sm:$0xff]  }
 0x5fa   : > { %2512 = vst [vmem:[#allocation2 + $0x8] sm:$0xfe] %v2504_v45  ;;  %2514 = vst [vmem:[#allocation2 + $0x18] sm:$0x1] %v2504_v45  ;;  %v6565_v43 = vld [vmem:[%s7689_s6 + $0x60] sm:$0xff]  ;;  %v6566_v23 = vld [vmem:[%s7689_s6 + $0xd8] sm:$0xff] }
 0x5fb   : > { %2516 = vst [vmem:[#allocation2 + $0x28] sm:$0xfe] %v2506_v46  ;;  %2518 = vst [vmem:[#allocation2 + $0x38] sm:$0x1] %v2506_v46  ;;  %v6567_v0 = vld [vmem:[%s7689_s6 + $0x58] sm:$0xff]  ;;  %v6568_v45 = vld [vmem:[%s7689_s6 + $0xd0] sm:$0xff] }
 0x5fc   : > { %v6391_v44 = vld [vmem:[%s6675_s14 + $0x820] ss:$8 sps:$4 sm:$0xff]   ;;  %v6396_v46 = vld [vmem:[%s6675_s14 + $0x814] ss:$8 sps:$4 sm:$0xff]  }
 0x5ff   : > { %v2519_v30 = vld [vmem:[#allocation2] sm:$0xff]  ;;  %v2525_v49 = vld [vmem:[#allocation2 + $0x10] sm:$0x1] }
 0x600   : > { %v2521_v29 = vld [vmem:[#allocation2 + $0x20] sm:$0xff]  ;;  %v2540_v55 = vrot.slane %v2525_v49, 1  ;;  %v2529_v62 = vld [vmem:[#allocation2 + $0x30] sm:$0x1] }
 0x601   : > { %v2523_v47 = vld [vmem:[#allocation2] sm:$0xfe]  ;;  %v2520_v50 = vld [vmem:[#allocation2 + $0x8] sm:$0xff]  ;;  %v2587_v58 = vpack.c.bf16 %v2521_v29, %v2519_v30  ;;  %v2526_v59 = vld [vmem:[#allocation2 + $0x18] sm:$0x1]  ;;  %v2546_v26 = vrot.slane %v2529_v62, 1 }
 0x602   : > { %v2522_v51 = vld [vmem:[#allocation2 + $0x28] sm:$0xff]  ;;  %v2527_v53 = vld [vmem:[#allocation2 + $0x20] sm:$0xfe]  ;;  %v2539_v54 = vrot.slane %v2523_v47, 1  ;;  %v2530_v61 = vld [vmem:[#allocation2 + $0x38] sm:$0x1] }
 0x603   : > { %v2524_v52 = vld [vmem:[#allocation2 + $0x8] sm:$0xfe]  ;;  %v2588_v57 = vpack.c.bf16 %v2522_v51, %v2520_v50  ;;  %v2543_v27 = vrot.slane %v2526_v59, 1  ;;  %v2549_v4 = vrot.slane %v2530_v61, 1  ;;  %v2558_v19 = vld [vmem:[#allocation2 + $0x18] sm:$0x3] }
 0x604   : > { %v2528_v60 = vld [vmem:[#allocation2 + $0x28] sm:$0xfe]  ;;  %v2542_v63 = vrot.slane %v2524_v52, 1  ;;  %v2562_v6 = vld [vmem:[#allocation2 + $0x38] sm:$0x3]  ;;  %v2575_v8 = vrot.slane %v2558_v19, 2  ;;  %v2541_v32 = vsel %vm486_vm1, %v2539_v54, %v2540_v55 }
 0x605   : > { %v2548_v3 = vrot.slane %v2528_v60, 1  ;;  %v2556_v15 = vld [vmem:[#allocation2 + $0x8] sm:$0xfc]  ;;  %3202 = vmatprep.mubr.bf16.mxu0 %v2588_v57  ;;  %v2581_v14 = vrot.slane %v2562_v6, 2  ;;  %v2545_v17 = vrot.slane %v2527_v53, 1  ;;  %v6569_v30 = vld [vmem:[%s7689_s6 + $0x50] sm:$0xff] }
 0x606   : > { %v2560_v5 = vld [vmem:[#allocation2 + $0x28] sm:$0xfc]  ;;  %3203 = vmatmul.mubr.bf16.vlgmr.msra.gmra.mxu0 %v2587_v58  ;;  %v2544_v7 = vsel %vm486_vm1, %v2542_v63, %v2543_v27  ;;  %v2574_v24 = vrot.slane %v2556_v15, 2  ;;  %v6572_v49 = vld [vmem:[%s7689_s6 + $0xc0] sm:$0xff]  ;;  %v6574_v52 = vld [vmem:[%s7689_s6 + $0xb8] sm:$0xff] }
 0x607   : > { %v2550_v16 = vsel %vm486_vm1, %v2548_v3, %v2549_v4  ;;  %3257 = vmatpush1.bf16.msra.mxu0 %v6376_v48  ;;  %v2580_v11 = vrot.slane %v2560_v5, 2  ;;  %v2547_v2 = vsel %vm486_vm1, %v2545_v17, %v2546_v26  ;;  %v6570_v29 = vld [vmem:[%s7689_s6 + $0xc8] sm:$0xff]  ;;  %v6394_v48 = vld [vmem:[%s6675_s14 + $0x810] ss:$8 sps:$4 sm:$0xff]   ;;  %v6573_v51 = vld [vmem:[%s7689_s6 + $0x40] sm:$0xff] }
 0x608   : > { %v2590_v10 = vpack.c.bf16 %v2550_v16, %v2544_v7  ;;  %v2576_v25 = vsel %vm519_vm2, %v2574_v24, %v2575_v8  ;;  %3258 = vmatprep.subr.bf16.mxu0 %v6381_v56  ;;  %v2589_v20 = vpack.c.bf16 %v2547_v2, %v2541_v32  ;;  %v6571_v47 = vld [vmem:[%s7689_s6 + $0x48] sm:$0xff]  ;;  %v6575_v53 = vld [vmem:[%s7689_s6 + $0x38] sm:$0xff]  ;;  %v6576_v55 = vld [vmem:[%s7689_s6 + $0xb0] sm:$0xff] }
 0x609   : > { %v2582_v28 = vsel %vm519_vm2, %v2580_v11, %v2581_v14  ;;  %v6399_v50 = vld [vmem:[%s6675_s14 + $0x804] ss:$8 sps:$4 sm:$0xff]   ;;  %v6397_v54 = vld [vmem:[%s6675_s14 + $0x800] ss:$8 sps:$4 sm:$0xff]   ;;  %v6402_v56 = vld [vmem:[%s6675_s14 + $0x8f4] ss:$8 sps:$4 sm:$0xff]  }
 0x60a   : > { %3245 = vmatprep.mubr.bf16.mxu1 %v2590_v10  ;;  %v2592_v18 = vpack.c.bf16 %v2582_v28, %v2576_v25  ;;  %v6577_v57 = vld [vmem:[%s7689_s6 + $0x30] sm:$0xff]  ;;  %v6578_v58 = vld [vmem:[%s7689_s6 + $0xa8] sm:$0xff]  ;;  %v6580_v61 = vld [vmem:[%s7689_s6 + $0xa0] sm:$0xff] }
 0x60b   : > { %3259 = vmatpush1.bf16.msra.mxu0 %v6379_v31  ;;  %3246 = vmatmul.mubr.bf16.vlgmr.msra.gmra.mxu1 %v2589_v20  ;;  %v6579_v59 = vld [vmem:[%s7689_s6 + $0x28] sm:$0xff]  ;;  %v6400_v60 = vld [vmem:[%s6675_s14 + $0x8f0] ss:$8 sps:$4 sm:$0xff]   ;;  %v6581_v63 = vld [vmem:[%s7689_s6 + $0x20] sm:$0xff] }
 0x60c   : > { %3288 = vmatprep.mubr.bf16.mxu0 %v2592_v18  ;;  %3260 = vmatprep.subr.bf16.mxu0 %v6384_v9  ;;  %v6405_v62 = vld [vmem:[%s6675_s14 + $0x8e4] ss:$8 sps:$4 sm:$0xff]   ;;  %v6582_v27 = vld [vmem:[%s7689_s6 + $0x98] sm:$0xff]  ;;  %v6403_v4 = vld [vmem:[%s6675_s14 + $0x8e0] ss:$8 sps:$4 sm:$0xff]  }
 0x60d   : > { %5772 = vmatpush3.msra.mxu1 %v6559_v33  ;;  %v6583_v3 = vld [vmem:[%s7689_s6 + $0x18] sm:$0xff]  ;;  %v6584_v15 = vld [vmem:[%s7689_s6 + $0x90] sm:$0xff]  ;;  %v6586_v6 = vld [vmem:[%s7689_s6 + $0x88] sm:$0xff] }
 0x60e   : > { %5773 = vmatprep.subr.mxu1 %v6560_v35  ;;  %v6408_v19 = vld [vmem:[%s6675_s14 + $0x8d4] ss:$8 sps:$4 sm:$0xff]   ;;  %v6587_v7 = vld [vmem:[%s7689_s6 + $0x8] sm:$0xff]  ;;  %v6406_v16 = vld [vmem:[%s6675_s14 + $0x8d0] ss:$8 sps:$4 sm:$0xff]  }
 0x60f   : > { %3261 = vmatpush1.bf16.msra.mxu0 %v6382_v21  ;;  %5774 = vmatpush3.msra.mxu1 %v6561_v37  ;;  %v6585_v5 = vld [vmem:[%s7689_s6 + $0x10] sm:$0xff]  ;;  %v6588_v24 = vld [vmem:[%s7689_s6 + $0x80] sm:$0xff]  ;;  %v6590_v11 = vld [vmem:[%s7690_s7 + $0x8] sm:$0xff] }
 0x610   : > { %3262 = vmatprep.subr.bf16.mxu0 %v6387_v22  ;;  %5775 = vmatprep.subr.mxu1 %v6562_v38  ;;  %v6411_v8 = vld [vmem:[%s6675_s14 + $0x8c4] ss:$8 sps:$4 sm:$0xff]   ;;  %v6409_v14 = vld [vmem:[%s6675_s14 + $0x8c0] ss:$8 sps:$4 sm:$0xff]   ;;  %v6414_v17 = vld [vmem:[%s6675_s14 + $0x8b4] ss:$8 sps:$4 sm:$0xff]  }
 0x611   : > { %5776 = vmatpush3.msra.mxu1 %v6563_v39  ;;  %v6589_v10 = vld [vmem:[%s7689_s6] sm:$0xff]  ;;  %v6412_v31 = vld [vmem:[%s6675_s14 + $0x8b0] ss:$8 sps:$4 sm:$0xff]   ;;  %v6420_v26 = vld [vmem:[%s6675_s14 + $0x894] ss:$8 sps:$4 sm:$0xff]  }
 0x612   : > { %5777 = vmatprep.subr.mxu1 %v6564_v41  ;;  %v6417_v25 = vld [vmem:[%s6675_s14 + $0x8a4] ss:$8 sps:$4 sm:$0xff]   ;;  %v6415_v32 = vld [vmem:[%s6675_s14 + $0x8a0] ss:$8 sps:$4 sm:$0xff]   ;;  %v2557_v28 = vld [vmem:[#allocation2 + $0x10] sm:$0x3] }
 0x613   : > { %3263 = vmatpush1.bf16.msra.mxu0 %v6385_v34  ;;  %5778 = vmatpush3.msra.mxu1 %v6565_v43  ;;  %v2555_v9 = vld [vmem:[#allocation2] sm:$0xfc]  ;;  %v2561_v2 = vld [vmem:[#allocation2 + $0x30] sm:$0x3]  ;;  %v2572_v33 = vrot.slane %v2557_v28, 2 }
 0x614   : > { %3264 = vmatprep.subr.bf16.mxu0 %v6390_v36  ;;  %5779 = vmatprep.subr.mxu1 %v6566_v23  ;;  %v2559_v18 = vld [vmem:[#allocation2 + $0x20] sm:$0xfc]  ;;  %v6418_v20 = vld [vmem:[%s6675_s14 + $0x890] ss:$8 sps:$4 sm:$0xff]   ;;  %v2571_v22 = vrot.slane %v2555_v9, 2  ;;  %v2578_v35 = vrot.slane %v2561_v2, 2 }
 0x615   : > { %5780 = vmatpush3.msra.mxu1 %v6567_v0  ;;  %v6423_v21 = vld [vmem:[%s6675_s14 + $0x884] ss:$8 sps:$4 sm:$0xff]   ;;  %v2577_v34 = vrot.slane %v2559_v18, 2  ;;  %v6421_v36 = vld [vmem:[%s6675_s14 + $0x880] ss:$8 sps:$4 sm:$0xff]  }
 0x616   : > { %5781 = vmatprep.subr.mxu1 %v6568_v45  ;;  %v2573_v37 = vsel %vm519_vm2, %v2571_v22, %v2572_v33  ;;  %v6591_v33 = vld [vmem:[%s7690_s7] sm:$0xff] }
 0x617   : > { %3265 = vmatpush1.bf16.msra.mxu0 %v6388_v40  ;;  %5782 = vmatpush3.msra.mxu1 %v6569_v30  ;;  %v2579_v38 = vsel %vm519_vm2, %v2577_v34, %v2578_v35  ;;  %v6424_v34 = vld [vmem:[%s7446_s24 + $0x78] sm:$0xff]  }
 0x618   : > { %3266 = vmatprep.subr.bf16.mxu0 %v6393_v42  ;;  %5783 = vmatprep.subr.mxu1 %v6570_v29  ;;  %v2591_v39 = vpack.c.bf16 %v2579_v38, %v2573_v37  ;;  %v6425_v35 = vld [vmem:[%s7446_s24 + $0xf8] sm:$0xff]   ;;  %v6431_v37 = vld [vmem:[%s7446_s24 + $0xb0] sm:$0xff]   ;;  %v6433_v38 = vld [vmem:[%s7446_s24 + $0xe8] sm:$0xff]  }
 0x619   : > { %5784 = vmatpush3.msra.mxu1 %v6571_v47 }
 0x61a   : > { %5785 = vmatprep.subr.mxu1 %v6572_v49 }
 0x61b   : > { %3267 = vmatpush1.bf16.msra.mxu0 %v6391_v44  ;;  %5786 = vmatpush3.msra.mxu1 %v6573_v51 }
 0x61c   : > { %3268 = vmatprep.subr.bf16.mxu0 %v6396_v46  ;;  %5787 = vmatprep.subr.mxu1 %v6574_v52 }
 0x61d   : > { %5788 = vmatpush3.msra.mxu1 %v6575_v53 }
 0x61e   : > { %5789 = vmatprep.subr.mxu1 %v6576_v55 }
 0x61f   : > { %3269 = vmatpush1.bf16.msra.mxu0 %v6394_v48  ;;  %5790 = vmatpush3.msra.mxu1 %v6577_v57 }
 0x620   : > { %3270 = vmatprep.subr.bf16.mxu0 %v6399_v50  ;;  %5791 = vmatprep.subr.mxu1 %v6578_v58 }
 0x621   : > { %5792 = vmatpush3.msra.mxu1 %v6579_v59 }
 0x622   : > { %5793 = vmatprep.subr.mxu1 %v6580_v61 }
 0x623   : > { %3271 = vmatpush1.bf16.msra.mxu0 %v6397_v54  ;;  %5794 = vmatpush3.msra.mxu1 %v6581_v63 }
 0x624   : > { %3272 = vmatprep.subr.bf16.mxu0 %v6402_v56  ;;  %5795 = vmatprep.subr.mxu1 %v6582_v27 }
 0x625   : > { %5796 = vmatpush3.msra.mxu1 %v6583_v3 }
 0x626   : > { %5797 = vmatprep.subr.mxu1 %v6584_v15 }
 0x627   : > { %3273 = vmatpush2.bf16.msra.mxu0 %v6400_v60  ;;  %5798 = vmatpush3.msra.mxu1 %v6585_v5 }
 0x628   : > { %3274 = vmatprep.subr.bf16.mxu0 %v6405_v62  ;;  %5799 = vmatprep.subr.mxu1 %v6586_v6 }
 0x629   : > { %5800 = vmatpush3.msra.mxu1 %v6587_v7 }
 0x62a   : > { %5801 = vmatprep.subr.mxu1 %v6588_v24 }
 0x62b   : > { %3275 = vmatpush2.bf16.msra.mxu0 %v6403_v4  ;;  %5802 = vmatpush3.msra.mxu1 %v6589_v10 }
 0x62c   : > { %3276 = vmatprep.subr.bf16.mxu0 %v6408_v19  ;;  %3455 = vmatprep.subr.mxu1 %v6590_v11 }
 0x62f   : > { %3277 = vmatpush2.bf16.msra.mxu0 %v6406_v16 }
 0x630   : > { %3278 = vmatprep.subr.bf16.mxu0 %v6411_v8 }
 0x633   : > { %3279 = vmatpush2.bf16.msra.mxu0 %v6409_v14 }
 0x634   : > { %3280 = vmatprep.subr.bf16.mxu0 %v6414_v17 }
 0x637   : > { %3281 = vmatpush2.bf16.msra.mxu0 %v6412_v31 }
 0x638   : > { %3282 = vmatprep.subr.bf16.mxu0 %v6417_v25 }
 0x63b   : > { %3283 = vmatpush2.bf16.msra.mxu0 %v6415_v32 }
 0x63c   : > { %3284 = vmatprep.subr.bf16.mxu0 %v6420_v26 }
 0x63f   : > { %3285 = vmatpush2.bf16.msra.mxu0 %v6418_v20 }
 0x640   : > { %3286 = vmatprep.subr.bf16.mxu0 %v6423_v21 }
 0x643   : > { %3287 = vmatpush2.bf16.msra.mxu0 %v6421_v36  ;;  %v6429_v36 = vld [vmem:[%s7446_s24 + $0xf0] sm:$0xff]  }
 0x644   : > { %5828 = vmatprep.subr.bf16.mxu0 %v6425_v35 }
 0x646   : > { %3289 = vmatmul.mubr.bf16.vlgmr.msra.gmra.mxu0 %v2591_v39  ;;  %v6435_v39 = vld [vmem:[%s7446_s24 + $0xa8] sm:$0xff]  }
 0x6c6   : > { %v3204_v40 = vpop.f32.mrf.mxu0 }
 0x6c8   : > { %v3206_v41 = vpop.f32.mrf.mxu0 }
 0x6ca   : > { %v3208_v43 = vpop.f32.mrf.mxu0 }
 0x6cb   : > { %v3247_v42 = vpop.f32.mrf.mxu1 }
 0x6cc   : > { %v3210_v0 = vpop.f32.mrf.mxu0  ;;  %v3248_v46 = vadd.f32 %v3247_v42, %v3204_v40  ;;  %v6437_v40 = vld [vmem:[%s7446_s24 + $0xe0] sm:$0xff]  }
 0x6cd   : > { %v3249_v23 = vpop.f32.mrf.mxu1 }
 0x6ce   : > { %v3250_v30 = vadd.f32 %v3249_v23, %v3206_v41  ;;  %v6439_v41 = vld [vmem:[%s7446_s24 + $0xa0] sm:$0xff]  }
 0x6cf   : > { %v3251_v44 = vpop.f32.mrf.mxu1 }
 0x6d0   : > { %v3252_v48 = vadd.f32 %v3251_v44, %v3208_v43 }
 0x6d1   : > { %v3253_v29 = vpop.f32.mrf.mxu1 }
 0x6d2   : > { %v3254_v52 = vadd.f32 %v3253_v29, %v3210_v0  ;;  %v3408_v29 = vld [vmem:[%s7037_s13 + $0x2] sm:$0x1] }
 0x706   : > { %v3290_v45 = vpop.f32.mrf.mxu0 }
 0x707   : > { %v7416_v49 = vadd.f32 %v3290_v45, %v3248_v46 }
 0x708   : > { %v3292_v47 = vpop.f32.mrf.mxu0 }
 0x709   : > { %v7418_v50 = vadd.f32 %v3292_v47, %v3250_v30  ;;  %v3313_v55 = vmul.f32 %v7416_v49, %v7416_v49 }
 0x70a   : > { %v3294_v51 = vpop.f32.mrf.mxu0 }
 0x70b   : > { %v7420_v53 = vadd.f32 %v3294_v51, %v3252_v48  ;;  %v3314_v59 = vmul.f32 %v7418_v50, %v7418_v50  ;;  %v3415_v51 = vld [vmem:[%s7043_s17 + $0x2] sm:$0x1]  ;;  %s387_s17 = scalar_lea.vmem %s7688_s5, %s7693_s28 }
 0x70c   : > { %v3296_v54 = vpop.f32.mrf.mxu0 }
 0x70d   : > { %v3299_v56 = vadd.f32 %v7420_v53, %v7416_v49  ;;  %v3315_v57 = vmul.f32 %v7420_v53, %v7420_v53  ;;  %v7428_v58 = vadd.f32 %v3296_v54, %v3254_v52 }
 0x70f   : > { %v3300_v60 = vrot.slane %v3299_v56, 4  ;;  %v3317_v61 = vadd.f32 %v3315_v57, %v3313_v55  ;;  %v3306_v62 = vadd.f32 %v7428_v58, %v7418_v50  ;;  %v3316_v63 = vmul.f32 %v7428_v58, %v7428_v58  ;;  %v6428_v57 = vld [vmem:[%s7446_s24 + $0x70] sm:$0xff]  }
 0x711   : > { %v3301_v27 = vadd.f32 %v3300_v60, %v3299_v56  ;;  %v3318_v3 = vrot.slane %v3317_v61, 4  ;;  %v3307_v4 = vrot.slane %v3306_v62, 4  ;;  %v3324_v15 = vadd.f32 %v3316_v63, %v3314_v59  ;;  %v6426_v56 = vld [vmem:[%s7446_s24 + $0x38] sm:$0xff]   ;;  %v6430_v60 = vld [vmem:[%s7446_s24 + $0x30] sm:$0xff]   ;;  %v6436_v63 = vld [vmem:[%s7446_s24 + $0x60] sm:$0xff]  }
 0x713   : > { %v3302_v19 = vrot.slane %v3301_v27, 2  ;;  %v3319_v5 = vadd.f32 %v3318_v3, %v3317_v61  ;;  %v3308_v6 = vadd.f32 %v3307_v4, %v3306_v62  ;;  %v3325_v7 = vrot.slane %v3324_v15, 4  ;;  %v6432_v61 = vld [vmem:[%s7446_s24 + $0x68] sm:$0xff]   ;;  %v6440_v3 = vld [vmem:[%s7446_s24 + $0x58] sm:$0xff]  }
 0x714   : > { %v6434_v62 = vld [vmem:[%s7446_s24 + $0x28] sm:$0xff]   ;;  %v6441_v4 = vld [vmem:[%s7446_s24 + $0xd8] sm:$0xff]  }
 0x715   : > { %v3320_v16 = vrot.slane %v3319_v5, 2  ;;  %v3309_v24 = vrot.slane %v3308_v6, 2  ;;  %v3326_v8 = vadd.f32 %v3325_v7, %v3324_v15  ;;  %v3303_v10 = vadd.f32 %v3302_v19, %v3301_v27  ;;  %v6438_v27 = vld [vmem:[%s7446_s24 + $0x20] sm:$0xff]   ;;  %v6442_v15 = vld [vmem:[%s7446_s24 + $0x18] sm:$0xff]   ;;  %v6446_v7 = vld [vmem:[%s7446_s24 + $0x10] sm:$0xff]  }
 0x716   : > { %v6443_v19 = vld [vmem:[%s7446_s24 + $0x98] sm:$0xff]  }
 0x717   : > { %v3310_v11 = vadd.f32 %v3309_v24, %v3308_v6  ;;  %v3327_v14 = vrot.slane %v3326_v8, 2  ;;  %v3321_v17 = vadd.f32 %v3320_v16, %v3319_v5  ;;  %v3304_v26 = vrot.slane %v3303_v10, 1  ;;  %v6444_v5 = vld [vmem:[%s7446_s24 + $0x50] sm:$0xff]   ;;  %v6448_v24 = vld [vmem:[%s7446_s24 + $0x48] sm:$0xff]  }
 0x718   : > { %v6445_v6 = vld [vmem:[%s7446_s24 + $0xd0] sm:$0xff]  }
 0x719   : > { %v3311_v31 = vrot.slane %v3310_v11, 1  ;;  %v3328_v25 = vadd.f32 %v3327_v14, %v3326_v8  ;;  %v3322_v32 = vrot.slane %v3321_v17, 1  ;;  %v3305_v20 = vadd.f32 %v3304_v26, %v3303_v10  ;;  %v6447_v16 = vld [vmem:[%s7446_s24 + $0x90] sm:$0xff]   ;;  %v6449_v8 = vld [vmem:[%s7446_s24 + $0xc8] sm:$0xff]   ;;  %v6452_v14 = vld [vmem:[%s7446_s24 + $0x40] sm:$0xff]  }
 0x71a   : > { %v6450_v10 = vld [vmem:[%s7446_s24 + $0x8] sm:$0xff]   ;;  %v6457_v26 = vld [vmem:[%s7446_s24 + $0x1f8] sm:$0xff]  }
 0x71b   : > { %v3329_v9 = vrot.slane %v3328_v25, 1  ;;  %v3323_v28 = vadd.f32 %v3322_v32, %v3321_v17  ;;  %v3312_v18 = vadd.f32 %v3311_v31, %v3310_v11  ;;  %v6451_v11 = vld [vmem:[%s7446_s24 + $0x88] sm:$0xff]   ;;  %v6453_v17 = vld [vmem:[%s7446_s24 + $0xc0] sm:$0xff]   ;;  %v6456_v32 = vld [vmem:[%s7446_s24 + $0x178] sm:$0xff]  }
 0x71c   : > { %v6454_v31 = vld [vmem:[%s7446_s24] sm:$0xff]  }
 0x71d   : > { %v3330_v2 = vadd.f32 %v3329_v9, %v3328_v25  ;;  %v3331_v22 = vsel %vm1279_vm3, %v3305_v20, %v3323_v28  ;;  %v6455_v25 = vld [vmem:[%s7446_s24 + $0x80] sm:$0xff]  }
 0x71f   : > { %v3332_v21 = vsel %vm1279_vm3, %v3312_v18, %v3330_v2 }
 0x720   : > { %3397 = vmatprep.mubr.f32.mxu1 %v3332_v21 }
 0x721   : > { %3398 = vmatmul.mubr.f32.vlgmr.msra.gmra.mxu1 %v3331_v22 }
 0x722   : > { %3456 = vmatpush1.msra.mxu1 %v6591_v33  ;;  %3489 = vmatprep.mubr.f32.mxu1 %v6604_v1  ;;  %v6427_v1 = vld [vmem:[%s7446_s24 + $0xb8] sm:$0xff]  }
 0x723   : > { %5806 = vmatprep.subr.bf16.mxu1 %v6424_v34  ;;  %5829 = vmatpush3.bf16.msra.mxu0 %v6427_v1 }
 0x724   : > { %5830 = vmatprep.subr.bf16.mxu0 %v6429_v36 }
 0x727   : > { %5831 = vmatpush3.bf16.msra.mxu0 %v6431_v37  ;;  %v6592_v37 = vld [vmem:[%s6670_s11] sm:$0xff] }
 0x728   : > { %5832 = vmatprep.subr.bf16.mxu0 %v6433_v38 }
 0x72b   : > { %5833 = vmatpush3.bf16.msra.mxu0 %v6435_v39  ;;  %v6593_v39 = vld [vmem:[%s6670_s11 + $0x10] sm:$0xff] }
 0x72c   : > { %5834 = vmatprep.subr.bf16.mxu0 %v6437_v40 }
 0x72f   : > { %5835 = vmatpush3.bf16.msra.mxu0 %v6439_v41 }
 0x730   : > { %5836 = vmatprep.subr.bf16.mxu0 %v6441_v4  ;;  %v6461_v4 = vld [vmem:[%s7446_s24 + $0x1f0] sm:$0xff]  }
 0x733   : > { %5837 = vmatpush3.bf16.msra.mxu0 %v6443_v19 }
 0x734   : > { %5838 = vmatprep.subr.bf16.mxu0 %v6445_v6 }
 0x737   : > { %5839 = vmatpush3.bf16.msra.mxu0 %v6447_v16  ;;  %v6463_v16 = vld [vmem:[%s7446_s24 + $0x1b0] sm:$0xff]  }
 0x738   : > { %5840 = vmatprep.subr.bf16.mxu0 %v6449_v8 }
 0x73b   : > { %5841 = vmatpush3.bf16.msra.mxu0 %v6451_v11  ;;  %v6464_v11 = vld [vmem:[%s7446_s24 + $0x168] sm:$0xff]  }
 0x73c   : > { %5842 = vmatprep.subr.bf16.mxu0 %v6453_v17 }
 0x73f   : > { %5843 = vmatpush3.bf16.msra.mxu0 %v6455_v25 }
 0x740   : > { %5872 = vmatprep.subr.bf16.mxu0 %v6457_v26 }
 0x7e1   : > { %v5803_v42 = vpop.f32.mrf.mxu1 }
 0x7e3   : > { %v5804_v43 = vpop.f32.mrf.mxu1 }
 0x7e4   : > { %v5805_v23 = vadd.f32 %v5804_v43, %v5803_v42 }
 0x7e6   : > { %v3403_v0 = vmul.f32 %v5805_v23, %v5805_v23 }
 0x7e8   : > { %v3405_v44 = vrot.slane %v3403_v0, 7 }
 0x7ea   : > { %v3407_v45 = vsub.f32 %v5805_v23, %v3405_v44 }
 0x7ec   : > { %v3409_v46 = vadd.f32 1e-05, %v3407_v45 }
 0x7ee   : > { %6556 = vrsqrt.f32 %v3409_v46 }
 0x7fb   : > { %v6557_v30 = vpop.eup %6556 }
 0x7fc   : > { %v3412_v47 = vrot.slane %v6557_v30, 1 }
 0x7fe   : > { %v3414_v48 = vmul.f32 %v3412_v47, %v3408_v29 }
 0x800   : > { %v3416_v52 = vmul.f32 %v5805_v23, %v3414_v48  ;;  %v6595_v23 = vld [vmem:[%s6670_s11 + $0x18] sm:$0xff] }
 0x802   : > { %v3417_v54 = vsub.f32 %v3415_v51, %v3416_v52 }
 0x804   : > { %v3419_v55 = vrot.slane %v3417_v54, 7 }
 0x806   : > { %v3421_v59 = vsel %vm1279_vm3, %v3414_v48, %v3419_v55 }
 0x807   : > { %5567 = vmatmul.mubr.msk.f32.vlgmr.msra.gmra.mxu1 %vm1371_vm4, %v3421_v59  ;;  %v6458_v59 = vld [vmem:[%s7446_s24 + $0x138] sm:$0xff]  }
 0x808   : > { %5807 = vmatpush3.bf16.msra.mxu1 %v6426_v56 }
 0x809   : > { %5808 = vmatprep.subr.bf16.mxu1 %v6428_v57 }
 0x80c   : > { %5809 = vmatpush3.bf16.msra.mxu1 %v6430_v60  ;;  %v6459_v60 = vld [vmem:[%s7446_s24 + $0x1b8] sm:$0xff]  }
 0x80d   : > { %5810 = vmatprep.subr.bf16.mxu1 %v6432_v61 }
 0x810   : > { %5811 = vmatpush3.bf16.msra.mxu1 %v6434_v62 }
 0x811   : > { %5812 = vmatprep.subr.bf16.mxu1 %v6436_v63 }
 0x814   : > { %5813 = vmatpush3.bf16.msra.mxu1 %v6438_v27 }
 0x815   : > { %5814 = vmatprep.subr.bf16.mxu1 %v6440_v3  ;;  %v6460_v3 = vld [vmem:[%s7446_s24 + $0x170] sm:$0xff]  }
 0x818   : > { %5815 = vmatpush3.bf16.msra.mxu1 %v6442_v15 }
 0x819   : > { %5816 = vmatprep.subr.bf16.mxu1 %v6444_v5 }
 0x81c   : > { %5817 = vmatpush3.bf16.msra.mxu1 %v6446_v7  ;;  %v6462_v7 = vld [vmem:[%s7446_s24 + $0x130] sm:$0xff]  }
 0x81d   : > { %5818 = vmatprep.subr.bf16.mxu1 %v6448_v24 }
 0x820   : > { %5819 = vmatpush3.bf16.msra.mxu1 %v6450_v10 }
 0x821   : > { %5820 = vmatprep.subr.bf16.mxu1 %v6452_v14  ;;  %v6465_v14 = vld [vmem:[%s7446_s24 + $0x1e8] sm:$0xff]  }
 0x824   : > { %5821 = vmatpush3.bf16.msra.mxu1 %v6454_v31 }
 0x825   : > { %5850 = vmatprep.subr.bf16.mxu1 %v6456_v32 }
 0x8c7   : > { %v3491_v9 = vpop.f32.mrf.mxu1 }
 0x8c8   : > { %v3499_v28 = vrot.slane %v3491_v9, %v7094_v12  ;;  %v3511_v21 = vrot.slane %v3491_v9, %v7096_v13 }
 0x8c9   : > { %v3493_v18 = vpop.f32.mrf.mxu1 }
 0x8ca   : > { %v3504_v2 = vmul.f32 %v3499_v28, %v7416_v49  ;;  %v3506_v20 = vmul.f32 %v3499_v28, %v7420_v53  ;;  %v3503_v22 = vrot.slane %v3493_v18, %v7094_v12  ;;  %v3515_v33 = vrot.slane %v3493_v18, %v7096_v13  ;;  %v6594_v12 = vld [vmem:[%s6670_s11 + $0x8] sm:$0xff] }
 0x8cb   : > { %v6466_v18 = vld [vmem:[%s7446_s24 + $0x128] sm:$0xff]  }
 0x8cc   : > { %v3516_v34 = vadd.f32 %v3511_v21, %v3504_v2  ;;  %v3518_v35 = vadd.f32 %v3511_v21, %v3506_v20  ;;  %v3505_v1 = vmul.f32 %v3503_v22, %v7418_v50  ;;  %v3507_v36 = vmul.f32 %v3503_v22, %v7428_v58  ;;  %v6467_v2 = vld [vmem:[%s7446_s24 + $0x1a8] sm:$0xff]  }
 0x8ce   : > { %v3520_v38 = vadd.f32 %v6592_v37, %v3516_v34  ;;  %v3522_v49 = vadd.f32 %v6593_v39, %v3518_v35  ;;  %v3517_v40 = vadd.f32 %v3515_v33, %v3505_v1  ;;  %v3519_v53 = vadd.f32 %v3515_v33, %v3507_v36  ;;  %v6468_v33 = vld [vmem:[%s7446_s24 + $0x160] sm:$0xff]   ;;  %v6472_v39 = vld [vmem:[%s7446_s24 + $0x158] sm:$0xff]  }
 0x8cf   : > { %v6469_v34 = vld [vmem:[%s7446_s24 + $0x1e0] sm:$0xff]  }
 0x8d0   : > { %v7496_v41 = vmax.f32 %v3520_v38, 0.0  ;;  %v7498_v42 = vmax.f32 %v3522_v49, 0.0  ;;  %v3521_v43 = vadd.f32 %v6594_v12, %v3517_v40  ;;  %v3523_v13 = vadd.f32 %v6595_v23, %v3519_v53  ;;  %v6470_v37 = vld [vmem:[%s7446_s24 + $0x120] sm:$0xff]   ;;  %v6473_v49 = vld [vmem:[%s7446_s24 + $0x1d8] sm:$0xff]   ;;  %v6476_v12 = vld [vmem:[%s7446_s24 + $0x150] sm:$0xff]  }
 0x8d1   : > { %v6471_v38 = vld [vmem:[%s7446_s24 + $0x1a0] sm:$0xff]   ;;  %v6474_v40 = vld [vmem:[%s7446_s24 + $0x118] sm:$0xff]   ;;  %v6478_v23 = vld [vmem:[%s7446_s24 + $0x110] sm:$0xff]  }
 0x8d2   : > { %v7502_v0 = vmax.f32 %v3521_v43, 0.0  ;;  %v7504_v50 = vmax.f32 %v3523_v13, 0.0  ;;  %v3532_v58 = vrot.slane %v7498_v42, 7  ;;  %v3539_v44 = vrot.slane %v7496_v41, 1  ;;  %v6475_v53 = vld [vmem:[%s7446_s24 + $0x198] sm:$0xff]   ;;  %v6477_v43 = vld [vmem:[%s7446_s24 + $0x1d0] sm:$0xff]  }
 0x8d3   : > { %v3561_v5 = vrot.slane %v7496_v41, 4  ;;  %v3562_v6 = vrot.slane %v7498_v42, 3  ;;  %v3569_v24 = vrot.slane %v7496_v41, 5  ;;  %v3570_v8 = vrot.slane %v7498_v42, 4  ;;  %v6479_v13 = vld [vmem:[%s7446_s24 + $0x190] sm:$0xff]  }
 0x8d4   : > { %v3535_v45 = vrot.slane %v7504_v50, 7  ;;  %v3541_v46 = vrot.slane %v7502_v0, 1  ;;  %v3534_v30 = vsel %vm3533_vm5, %v3532_v58, %v7496_v41  ;;  %v3540_v29 = vsel %vm3533_vm5, %v7498_v42, %v3539_v44  ;;  %v6480_v58 = vld [vmem:[%s7446_s24 + $0x148] sm:$0xff]  }
 0x8d5   : > { %v3548_v47 = vrot.slane %v7502_v0, 2  ;;  %v3549_v48 = vrot.slane %v7504_v50, 1  ;;  %v3556_v54 = vrot.slane %v7502_v0, 3  ;;  %v3557_v55 = vrot.slane %v7504_v50, 2  ;;  %v6481_v44 = vld [vmem:[%s7446_s24 + $0x1c8] sm:$0xff]  }
 0x8d6   : > { %v3536_v51 = vsel %vm3533_vm5, %v3535_v45, %v7502_v0  ;;  %v3542_v52 = vsel %vm3533_vm5, %v7504_v50, %v3541_v46  ;;  %v3593_v62 = vpack.c.bf16 %v3534_v30, %v3534_v30  ;;  %v3595_v63 = vpack.c.bf16 %v3540_v29, %v3540_v29  ;;  %v6482_v45 = vld [vmem:[%s7446_s24 + $0x108] sm:$0xff]   ;;  %v6484_v30 = vld [vmem:[%s7446_s24 + $0x140] sm:$0xff]  }
 0x8d7   : > { %v3594_v56 = vpack.c.bf16 %v3536_v51, %v3536_v51  ;;  %v3596_v57 = vpack.c.bf16 %v3542_v52, %v3542_v52  ;;  %v3550_v61 = vsel %vm3533_vm5, %v3549_v48, %v3548_v47  ;;  %v3558_v27 = vsel %vm3533_vm5, %v3557_v55, %v3556_v54  ;;  %v6483_v46 = vld [vmem:[%s7446_s24 + $0x188] sm:$0xff]   ;;  %v6485_v29 = vld [vmem:[%s7446_s24 + $0x1c0] sm:$0xff]  }
 0x8d8   : > { %v3598_v15 = vpack.c.bf16 %v3550_v61, %v3550_v61  ;;  %v3600_v19 = vpack.c.bf16 %v3558_v27, %v3558_v27  ;;  %v3580_v10 = vrot.slane %v7502_v0, 6  ;;  %v7538_v17 = vsel %vm3533_vm5, %v3562_v6, %v3561_v5  ;;  %v6490_v27 = vld [vmem:[%s7446_s24 + $0x238] sm:$0xff]   ;;  %v6493_v5 = vld [vmem:[%s7446_s24 + $0x2f0] sm:$0xff]  }
 0x8d9   : > { %4672 = vmatprep.mubr.bf16.mxu1 %v3594_v56  ;;  %4712 = vmatprep.mubr.bf16.mxu0 %v3596_v57  ;;  %v3581_v31 = vrot.slane %v7504_v50, 5  ;;  %v7542_v25 = vsel %vm3533_vm5, %v3570_v8, %v3569_v24  ;;  %v3588_v32 = vrot.slane %v7502_v0, 7  ;;  %v3589_v9 = vrot.slane %v7504_v50, 6  ;;  %v6486_v56 = vld [vmem:[%s7446_s24 + $0x100] sm:$0xff]   ;;  %v6496_v24 = vld [vmem:[%s7446_s24 + $0x268] sm:$0xff]  }
 0x8da   : > { %4673 = vmatmul.mubr.bf16.vlgmr.msra.gmra.mxu1 %v3593_v62  ;;  %4713 = vmatmul.mubr.bf16.vlgmr.msra.gmra.mxu0 %v3595_v63  ;;  %v3577_v28 = vrot.slane %v7496_v41, 6  ;;  %v3578_v20 = vrot.slane %v7498_v42, 5  ;;  %v3585_v21 = vrot.slane %v7496_v41, 7  ;;  %v3586_v22 = vrot.slane %v7498_v42, 6  ;;  %v6487_v57 = vld [vmem:[%s7446_s24 + $0x180] sm:$0xff]   ;;  %v6497_v8 = vld [vmem:[%s7446_s24 + $0x2e8] sm:$0xff]  }
 0x8db   : > { %5851 = vmatpush3.bf16.msra.mxu1 %v6458_v59  ;;  %5873 = vmatpush3.bf16.msra.mxu0 %v6459_v60  ;;  %v7546_v26 = vsel %vm3533_vm5, %v3581_v31, %v3580_v10  ;;  %v7558_v35 = vsel %vm3533_vm5, %v3589_v9, %v3588_v32  ;;  %v3545_v47 = vrot.slane %v7496_v41, 2  ;;  %v3546_v48 = vrot.slane %v7498_v42, 1  ;;  %v6498_v10 = vld [vmem:[%s7446_s24 + $0x228] sm:$0xff]   ;;  %v6501_v31 = vld [vmem:[%s7446_s24 + $0x2e0] sm:$0xff]  }
 0x8dc   : > { %4752 = vmatprep.mubr.bf16.mxu1 %v3598_v15  ;;  %4792 = vmatprep.mubr.bf16.mxu0 %v3600_v19  ;;  %v7561_v1 = vsel %vm3533_vm5, %v3578_v20, %v3577_v28  ;;  %v7564_v36 = vsel %vm3533_vm5, %v3586_v22, %v3585_v21  ;;  %v3553_v51 = vrot.slane %v7496_v41, 3  ;;  %v3554_v52 = vrot.slane %v7498_v42, 2  ;;  %v6488_v41 = vld [vmem:[%s7446_s24 + $0x278] sm:$0xff]   ;;  %v6492_v19 = vld [vmem:[%s7446_s24 + $0x270] sm:$0xff]   ;;  %v6502_v32 = vld [vmem:[%s7446_s24 + $0x220] sm:$0xff]  }
 0x8dd   : > { %5852 = vmatprep.subr.bf16.mxu1 %v6460_v3  ;;  %5874 = vmatprep.subr.bf16.mxu0 %v6461_v4  ;;  %v3564_v54 = vrot.slane %v7502_v0, 4  ;;  %v3565_v55 = vrot.slane %v7504_v50, 3  ;;  %v3572_v59 = vrot.slane %v7502_v0, 5  ;;  %v3573_v60 = vrot.slane %v7504_v50, 4  ;;  %v6489_v42 = vld [vmem:[%s7446_s24 + $0x2f8] sm:$0xff]   ;;  %v6503_v9 = vld [vmem:[%s7446_s24 + $0x2a0] sm:$0xff]  }
 0x8de   : > { %v3547_v61 = vsel %vm3533_vm5, %v3546_v48, %v3545_v47  ;;  %v3555_v62 = vsel %vm3533_vm5, %v3554_v52, %v3553_v51  ;;  %v6491_v4 = vld [vmem:[%s7446_s24 + $0x2b8] sm:$0xff]   ;;  %v6508_v21 = vld [vmem:[%s7446_s24 + $0x250] sm:$0xff]   ;;  %v6528_v51 = vld [vmem:[%s7446_s24 + $0x368] sm:$0xff]  }
 0x8df   : > { %5853 = vmatpush3.bf16.msra.mxu1 %v6462_v7  ;;  %5875 = vmatpush3.bf16.msra.mxu0 %v6463_v16  ;;  %v3566_v63 = vsel %vm3533_vm5, %v3565_v55, %v3564_v54  ;;  %v3574_v0 = vsel %vm3533_vm5, %v3573_v60, %v3572_v59  ;;  %v3597_v50 = vpack.c.bf16 %v3547_v61, %v3547_v61  ;;  %v6494_v7 = vld [vmem:[%s7446_s24 + $0x230] sm:$0xff]   ;;  %v6504_v28 = vld [vmem:[%s7446_s24 + $0x258] sm:$0xff]   ;;  %v6530_v52 = vld [vmem:[%s7446_s24 + $0x328] sm:$0xff]  }
 0x8e0   : > { %5854 = vmatprep.subr.bf16.mxu1 %v6464_v11  ;;  %5876 = vmatprep.subr.bf16.mxu0 %v6465_v14  ;;  %v3599_v3 = vpack.c.bf16 %v3555_v62, %v3555_v62  ;;  %v3602_v15 = vpack.c.bf16 %v3566_v63, %v3566_v63  ;;  %v3604_v6 = vpack.c.bf16 %v3574_v0, %v3574_v0  ;;  %v6495_v16 = vld [vmem:[%s7446_s24 + $0x2b0] sm:$0xff]   ;;  %v6499_v11 = vld [vmem:[%s7446_s24 + $0x2a8] sm:$0xff]   ;;  %v6500_v14 = vld [vmem:[%s7446_s24 + $0x260] sm:$0xff]  }
 0x8e1   : > { %v6507_v20 = vld [vmem:[%s7446_s24 + $0x298] sm:$0xff]   ;;  %v6509_v22 = vld [vmem:[%s7446_s24 + $0x2d0] sm:$0xff]   ;;  %v6532_v54 = vld [vmem:[%s7446_s24 + $0x360] sm:$0xff]  }
 0x8e2   : > { %v6525_v47 = vld [vmem:[%s7446_s24 + $0x3f0] sm:$0xff]   ;;  %v6533_v55 = vld [vmem:[%s7446_s24 + $0x3e0] sm:$0xff]   ;;  %v6536_v59 = vld [vmem:[%s7446_s24 + $0x358] sm:$0xff]  }
 0x8e3   : > { %5855 = vmatpush3.bf16.msra.mxu1 %v6466_v18  ;;  %5877 = vmatpush3.bf16.msra.mxu0 %v6467_v2  ;;  %v6505_v18 = vld [vmem:[%s7446_s24 + $0x2d8] sm:$0xff]   ;;  %v6526_v48 = vld [vmem:[%s7446_s24 + $0x330] sm:$0xff]   ;;  %v6544_v0 = vld [vmem:[%s7446_s24 + $0x348] sm:$0xff]  }
 0x8e4   : > { %5856 = vmatprep.subr.bf16.mxu1 %v6468_v33  ;;  %5878 = vmatprep.subr.bf16.mxu0 %v6469_v34  ;;  %v6506_v2 = vld [vmem:[%s7446_s24 + $0x218] sm:$0xff]   ;;  %v6510_v33 = vld [vmem:[%s7446_s24 + $0x210] sm:$0xff]  }
 0x8e5   : > { %v6511_v34 = vld [vmem:[%s7446_s24 + $0x290] sm:$0xff]   ;;  %v6537_v60 = vld [vmem:[%s7446_s24 + $0x3d8] sm:$0xff]  }
 0x8e6   : > { %v6540_v61 = vld [vmem:[%s7446_s24 + $0x350] sm:$0xff]  }
 0x8e7   : > { %5857 = vmatpush3.bf16.msra.mxu1 %v6470_v37  ;;  %5879 = vmatpush3.bf16.msra.mxu0 %v6471_v38  ;;  %v6512_v37 = vld [vmem:[%s7446_s24 + $0x248] sm:$0xff]   ;;  %v6541_v62 = vld [vmem:[%s7446_s24 + $0x3d0] sm:$0xff]  }
 0x8e8   : > { %5858 = vmatprep.subr.bf16.mxu1 %v6472_v39  ;;  %5880 = vmatprep.subr.bf16.mxu0 %v6473_v49  ;;  %v6513_v38 = vld [vmem:[%s7446_s24 + $0x2c8] sm:$0xff]   ;;  %v6542_v63 = vld [vmem:[%s7446_s24 + $0x310] sm:$0xff]  }
 0x8e9   : > { %v6514_v39 = vld [vmem:[%s7446_s24 + $0x208] sm:$0xff]  }
 0x8ea   : > { %v6515_v49 = vld [vmem:[%s7446_s24 + $0x288] sm:$0xff]  }
 0x8eb   : > { %5859 = vmatpush3.bf16.msra.mxu1 %v6474_v40  ;;  %5881 = vmatpush3.bf16.msra.mxu0 %v6475_v53  ;;  %v6516_v40 = vld [vmem:[%s7446_s24 + $0x240] sm:$0xff]  }
 0x8ec   : > { %5860 = vmatprep.subr.bf16.mxu1 %v6476_v12  ;;  %5882 = vmatprep.subr.bf16.mxu0 %v6477_v43  ;;  %v6517_v53 = vld [vmem:[%s7446_s24 + $0x2c0] sm:$0xff]  }
 0x8ed   : > { %v6518_v12 = vld [vmem:[%s7446_s24 + $0x200] sm:$0xff]  }
 0x8ee   : > { %v6519_v43 = vld [vmem:[%s7446_s24 + $0x280] sm:$0xff]  }
 0x8ef   : > { %5861 = vmatpush3.bf16.msra.mxu1 %v6478_v23  ;;  %5883 = vmatpush3.bf16.msra.mxu0 %v6479_v13  ;;  %v6520_v23 = vld [vmem:[%s7446_s24 + $0x378] sm:$0xff]  }
 0x8f0   : > { %5862 = vmatprep.subr.bf16.mxu1 %v6480_v58  ;;  %5884 = vmatprep.subr.bf16.mxu0 %v6481_v44  ;;  %v6521_v13 = vld [vmem:[%s7446_s24 + $0x3f8] sm:$0xff]   ;;  %v3601_v44 = vpack.c.bf16 %v7538_v17, %v7538_v17  ;;  %v3608_v17 = vpack.c.bf16 %v7558_v35, %v7558_v35  ;;  %v6531_v35 = vld [vmem:[%s7446_s24 + $0x3a8] sm:$0xff]  }
 0x8f1   : > { %v6522_v58 = vld [vmem:[%s7446_s24 + $0x338] sm:$0xff]  }
 0x8f3   : > { %5863 = vmatpush3.bf16.msra.mxu1 %v6482_v45  ;;  %5885 = vmatpush3.bf16.msra.mxu0 %v6483_v46  ;;  %v6523_v45 = vld [vmem:[%s7446_s24 + $0x3b8] sm:$0xff]   ;;  %v3603_v46 = vpack.c.bf16 %v7542_v25, %v7542_v25  ;;  %v6527_v25 = vld [vmem:[%s7446_s24 + $0x3b0] sm:$0xff]  }
 0x8f4   : > { %5864 = vmatprep.subr.bf16.mxu1 %v6484_v30  ;;  %5886 = vmatprep.subr.bf16.mxu0 %v6485_v29  ;;  %v6524_v30 = vld [vmem:[%s7446_s24 + $0x370] sm:$0xff]   ;;  %v3606_v29 = vpack.c.bf16 %v7546_v26, %v7546_v26  ;;  %v6529_v26 = vld [vmem:[%s7446_s24 + $0x3e8] sm:$0xff]  }
 0x8f7   : > { %5865 = vmatpush3.bf16.msra.mxu1 %v6486_v56  ;;  %5887 = vmatpush3.bf16.msra.mxu0 %v6487_v57  ;;  %v6534_v56 = vld [vmem:[%s7446_s24 + $0x320] sm:$0xff]  }
 0x8f8   : > { %5894 = vmatprep.subr.bf16.mxu1 %v6488_v41  ;;  %5916 = vmatprep.subr.bf16.mxu0 %v6489_v42  ;;  %v6535_v57 = vld [vmem:[%s7446_s24 + $0x3a0] sm:$0xff]   ;;  %v6538_v41 = vld [vmem:[%s7446_s24 + $0x318] sm:$0xff]  }
 0x8f9   : > { %v6539_v42 = vld [vmem:[%s7446_s24 + $0x398] sm:$0xff]  }
 0x8fa   : > { %4753 = vmatmul.mubr.bf16.vlgmr.msra.gmra.mxu1 %v3597_v50  ;;  %4793 = vmatmul.mubr.bf16.vlgmr.msra.gmra.mxu0 %v3599_v3  ;;  %v6545_v50 = vld [vmem:[%s7446_s24 + $0x3c8] sm:$0xff]  }
 0x8fb   : > { %5895 = vmatpush3.bf16.msra.mxu1 %v6490_v27  ;;  %4832 = vmatprep.mubr.bf16.mxu1 %v3602_v15  ;;  %v6543_v27 = vld [vmem:[%s7446_s24 + $0x390] sm:$0xff]   ;;  %v6546_v3 = vld [vmem:[%s7446_s24 + $0x308] sm:$0xff]   ;;  %v6548_v15 = vld [vmem:[%s7446_s24 + $0x340] sm:$0xff]  }
 0x8fc   : > { %5917 = vmatpush3.bf16.msra.mxu0 %v6491_v4  ;;  %4872 = vmatprep.mubr.bf16.mxu0 %v3604_v6  ;;  %v6547_v4 = vld [vmem:[%s7446_s24 + $0x388] sm:$0xff]   ;;  %v6551_v6 = vld [vmem:[%s7446_s24 + $0x380] sm:$0xff]  }
 0x8fd   : > { %5896 = vmatprep.subr.bf16.mxu1 %v6492_v19  ;;  %5918 = vmatprep.subr.bf16.mxu0 %v6493_v5  ;;  %v6549_v19 = vld [vmem:[%s7446_s24 + $0x3c0] sm:$0xff]  }
 0x8fe   : > { %v6550_v5 = vld [vmem:[%s7446_s24 + $0x300] sm:$0xff]  }
 0x8ff   : > { %5897 = vmatpush3.bf16.msra.mxu1 %v6494_v7  ;;  %v3605_v7 = vpack.c.bf16 %v7561_v1, %v7561_v1 }
 0x900   : > { %5919 = vmatpush3.bf16.msra.mxu0 %v6495_v16  ;;  %5898 = vmatprep.subr.bf16.mxu1 %v6496_v24  ;;  %v3607_v16 = vpack.c.bf16 %v7564_v36, %v7564_v36 }
 0x901   : > { %5920 = vmatprep.subr.bf16.mxu0 %v6497_v8 }
 0x903   : > { %5899 = vmatpush3.bf16.msra.mxu1 %v6498_v10  ;;  %v5568_v10 = vld [vmem:[%s387_s17] ss:$0 sm:$0xff] }
 0x904   : > { %5921 = vmatpush3.bf16.msra.mxu0 %v6499_v11  ;;  %5900 = vmatprep.subr.bf16.mxu1 %v6500_v14 }
 0x905   : > { %5922 = vmatprep.subr.bf16.mxu0 %v6501_v31 }
 0x907   : > { %5901 = vmatpush3.bf16.msra.mxu1 %v6502_v32 }
 0x908   : > { %5923 = vmatpush3.bf16.msra.mxu0 %v6503_v9  ;;  %5902 = vmatprep.subr.bf16.mxu1 %v6504_v28 }
 0x909   : > { %5924 = vmatprep.subr.bf16.mxu0 %v6505_v18 }
 0x90b   : > { %5903 = vmatpush3.bf16.msra.mxu1 %v6506_v2 }
 0x90c   : > { %5925 = vmatpush3.bf16.msra.mxu0 %v6507_v20  ;;  %5904 = vmatprep.subr.bf16.mxu1 %v6508_v21 }
 0x90d   : > { %5926 = vmatprep.subr.bf16.mxu0 %v6509_v22 }
 0x90f   : > { %5905 = vmatpush3.bf16.msra.mxu1 %v6510_v33 }
 0x910   : > { %5927 = vmatpush3.bf16.msra.mxu0 %v6511_v34  ;;  %5906 = vmatprep.subr.bf16.mxu1 %v6512_v37 }
 0x911   : > { %5928 = vmatprep.subr.bf16.mxu0 %v6513_v38 }
 0x913   : > { %5907 = vmatpush3.bf16.msra.mxu1 %v6514_v39 }
 0x914   : > { %5929 = vmatpush3.bf16.msra.mxu0 %v6515_v49  ;;  %5908 = vmatprep.subr.bf16.mxu1 %v6516_v40 }
 0x915   : > { %5930 = vmatprep.subr.bf16.mxu0 %v6517_v53 }
 0x917   : > { %5909 = vmatpush3.bf16.msra.mxu1 %v6518_v12 }
 0x918   : > { %5931 = vmatpush3.bf16.msra.mxu0 %v6519_v43  ;;  %5938 = vmatprep.subr.bf16.mxu1 %v6520_v23 }
 0x919   : > { %5960 = vmatprep.subr.bf16.mxu0 %v6521_v13 }
 0x91a   : > { %4833 = vmatmul.mubr.bf16.vlgmr.msra.gmra.mxu1 %v3601_v44 }
 0x91b   : > { %4873 = vmatmul.mubr.bf16.vlgmr.msra.gmra.mxu0 %v3603_v46  ;;  %5939 = vmatpush3.bf16.msra.mxu1 %v6522_v58 }
 0x91c   : > { %4912 = vmatprep.mubr.bf16.mxu1 %v3606_v29  ;;  %5961 = vmatpush3.bf16.msra.mxu0 %v6523_v45 }
 0x91d   : > { %4952 = vmatprep.mubr.bf16.mxu0 %v3608_v17  ;;  %5940 = vmatprep.subr.bf16.mxu1 %v6524_v30 }
 0x91e   : > { %5962 = vmatprep.subr.bf16.mxu0 %v6525_v47 }
 0x91f   : > { %5941 = vmatpush3.bf16.msra.mxu1 %v6526_v48 }
 0x920   : > { %5963 = vmatpush3.bf16.msra.mxu0 %v6527_v25  ;;  %5942 = vmatprep.subr.bf16.mxu1 %v6528_v51 }
 0x921   : > { %5964 = vmatprep.subr.bf16.mxu0 %v6529_v26 }
 0x923   : > { %5943 = vmatpush3.bf16.msra.mxu1 %v6530_v52 }
 0x924   : > { %5965 = vmatpush3.bf16.msra.mxu0 %v6531_v35  ;;  %5944 = vmatprep.subr.bf16.mxu1 %v6532_v54 }
 0x925   : > { %5966 = vmatprep.subr.bf16.mxu0 %v6533_v55 }
 0x927   : > { %5945 = vmatpush3.bf16.msra.mxu1 %v6534_v56 }
 0x928   : > { %5967 = vmatpush3.bf16.msra.mxu0 %v6535_v57  ;;  %5946 = vmatprep.subr.bf16.mxu1 %v6536_v59 }
 0x929   : > { %5968 = vmatprep.subr.bf16.mxu0 %v6537_v60 }
 0x92b   : > { %5947 = vmatpush3.bf16.msra.mxu1 %v6538_v41 }
 0x92c   : > { %5969 = vmatpush3.bf16.msra.mxu0 %v6539_v42  ;;  %5948 = vmatprep.subr.bf16.mxu1 %v6540_v61 }
 0x92d   : > { %5970 = vmatprep.subr.bf16.mxu0 %v6541_v62 }
 0x92f   : > { %5949 = vmatpush3.bf16.msra.mxu1 %v6542_v63 }
 0x930   : > { %5971 = vmatpush3.bf16.msra.mxu0 %v6543_v27  ;;  %5950 = vmatprep.subr.bf16.mxu1 %v6544_v0 }
 0x931   : > { %5972 = vmatprep.subr.bf16.mxu0 %v6545_v50 }
 0x933   : > { %5951 = vmatpush3.bf16.msra.mxu1 %v6546_v3 }
 0x934   : > { %5973 = vmatpush3.bf16.msra.mxu0 %v6547_v4  ;;  %5952 = vmatprep.subr.bf16.mxu1 %v6548_v15 }
 0x935   : > { %5974 = vmatprep.subr.bf16.mxu0 %v6549_v19 }
 0x937   : > { %5953 = vmatpush3.bf16.msra.mxu1 %v6550_v5 }
 0x938   : > { %5975 = vmatpush3.bf16.msra.mxu0 %v6551_v6 }
 0x93a   : > { %4913 = vmatmul.mubr.bf16.vlgmr.msra.gmra.mxu1 %v3605_v7 }
 0x93b   : > { %4953 = vmatmul.mubr.bf16.vlgmr.msra.gmra.mxu0 %v3607_v16 }
 0x99a   : > { %v5822_v24 = vpop.f32.mrf.mxu1  ;;  %v5844_v8 = vpop.f32.mrf.mxu0 }
 0x99c   : > { %v5823_v11 = vpop.f32.mrf.mxu1  ;;  %v5845_v14 = vpop.f32.mrf.mxu0 }
 0x99d   : > { %v5824_v31 = vadd.f32 %v5823_v11, %v5822_v24  ;;  %v5846_v32 = vadd.f32 %v5845_v14, %v5844_v8 }
 0x99e   : > { %v5825_v9 = vpop.f32.mrf.mxu1  ;;  %v5847_v28 = vpop.f32.mrf.mxu0 }
 0x99f   : > { %v4675_v18 = vadd.f32 %v5824_v31, %v5568_v10 }
 0x9a0   : > { %v5826_v1 = vpop.f32.mrf.mxu1  ;;  %v5848_v2 = vpop.f32.mrf.mxu0 }
 0x9a1   : > { %v4715_v20 = vadd.f32 %v5846_v32, %v4675_v18 }
 0x9ba   : > { %v5866_v36 = vpop.f32.mrf.mxu1  ;;  %v5888_v21 = vpop.f32.mrf.mxu0 }
 0x9bc   : > { %v5867_v22 = vpop.f32.mrf.mxu1  ;;  %v5889_v33 = vpop.f32.mrf.mxu0 }
 0x9bd   : > { %v5868_v44 = vadd.f32 %v5867_v22, %v5866_v36  ;;  %v5890_v46 = vadd.f32 %v5889_v33, %v5888_v21 }
 0x9be   : > { %v5869_v34 = vpop.f32.mrf.mxu1  ;;  %v5891_v37 = vpop.f32.mrf.mxu0 }
 0x9bf   : > { %v4755_v45 = vadd.f32 %v5868_v44, %v4715_v20 }
 0x9c0   : > { %v5870_v38 = vpop.f32.mrf.mxu1  ;;  %v5892_v39 = vpop.f32.mrf.mxu0 }
 0x9c1   : > { %v4795_v29 = vadd.f32 %v5890_v46, %v4755_v45 }
 0x9da   : > { %v5910_v49 = vpop.f32.mrf.mxu1 }
 0x9db   : > { %v5932_v40 = vpop.f32.mrf.mxu0 }
 0x9dc   : > { %v5911_v53 = vpop.f32.mrf.mxu1 }
 0x9dd   : > { %v5933_v12 = vpop.f32.mrf.mxu0  ;;  %v5912_v30 = vadd.f32 %v5911_v53, %v5910_v49 }
 0x9de   : > { %v5913_v43 = vpop.f32.mrf.mxu1  ;;  %v5934_v48 = vadd.f32 %v5933_v12, %v5932_v40 }
 0x9df   : > { %v5935_v23 = vpop.f32.mrf.mxu0  ;;  %v4835_v47 = vadd.f32 %v5912_v30, %v4795_v29 }
 0x9e0   : > { %v5914_v13 = vpop.f32.mrf.mxu1 }
 0x9e1   : > { %v5936_v58 = vpop.f32.mrf.mxu0  ;;  %v4875_v26 = vadd.f32 %v5934_v48, %v4835_v47 }
 0x9fa   : > { %v5954_v17 = vpop.f32.mrf.mxu1 }
 0x9fb   : > { %v5976_v25 = vpop.f32.mrf.mxu0 }
 0x9fc   : > { %v5955_v51 = vpop.f32.mrf.mxu1 }
 0x9fd   : > { %v5956_v52 = vadd.f32 %v5955_v51, %v5954_v17  ;;  %v5977_v35 = vpop.f32.mrf.mxu0 }
 0x9fe   : > { %v5957_v54 = vpop.f32.mrf.mxu1  ;;  %v5978_v56 = vadd.f32 %v5977_v35, %v5976_v25 }
 0x9ff   : > { %v4915_v55 = vadd.f32 %v5956_v52, %v4875_v26  ;;  %v5979_v57 = vpop.f32.mrf.mxu0 }
 0xa00   : > { %v5958_v59 = vpop.f32.mrf.mxu1 }
 0xa01   : > { %v4955_v60 = vadd.f32 %v5978_v56, %v4915_v55  ;;  %v5980_v41 = vpop.f32.mrf.mxu0 }
 0xa03   : > { %4961 = vst.msk [vmem:[%s391_s30] sm:$0x3] %vm4960_vm6, %v4955_v60 }
 0xa04 PF: > { %s18_s27 = sadd.s32 1, %s6602_s27  }
 0xa05   : > { %p15_p4 = scmp.ge.s32.totalorder %s18_s27, 4  }
 0xa07   :  { %17 = sbr.rel (!%p15_p4) target bundleno = 1 (0x1), region = 102 }

</bundles_post_ra>
